<compile_context>
chip_gen: v6e
topology: v6e:2x2x1
jax: 0.10.0
libtpu: 0.0.40
codegen_flags: <defaults>
</compile_context>

<pallas_src>
import jax
import jax.numpy as jnp
import numpy as np
from jax.experimental import pallas as pl
from jax.experimental.pallas import tpu as pltpu


# ----------------------------- VMEM budgeting -------------------------------

def _vmem_limit_bytes():
    cap = 64 * 1024 * 1024                       # v7x per-core VMEM (smallest)
    try:
        info = pltpu.get_tpu_info()
        cap = int(getattr(info, "vmem_capacity_bytes", cap)) or cap
    except Exception:
        pass
    return int(min(cap * 3 // 4, 112 * 1024 * 1024))


_VMEM_LIMIT = _vmem_limit_bytes()
_BLOCK_BUDGET = _VMEM_LIMIT // 4                 # per-call block footprint target


def _pick_rows(rows, row_bytes, budget):
    """Largest row tile (fixed candidates) that fits `budget` and divides
    `rows`; falls back to a full-array block or a tile the caller pads to."""
    cap = max(8, budget // max(1, row_bytes))
    cands = (4096, 2048, 1024, 512, 256, 128, 64, 32, 16, 8)
    for t in cands:
        if t <= cap and rows % t == 0:
            return t, rows
    if rows <= cap:
        return rows, rows
    for t in cands:
        if t <= cap:
            return t, pl.cdiv(rows, t) * t
    return 8, pl.cdiv(rows, 8) * 8


# ------------------------------ Pallas kernels ------------------------------

def _gemm_stats_kernel(a_ref, b_ref, y_ref, ssum_ref, ssq_ref):
    """y = a @ b (bf16 in, f32 acc) + per-column sum / sum-of-squares."""
    acc = jnp.dot(a_ref[...], b_ref[...], preferred_element_type=jnp.float32)
    y_ref[...] = acc.astype(y_ref.dtype)
    ssum_ref[...] = jnp.sum(acc, axis=0, keepdims=True)
    ssq_ref[...] = jnp.sum(acc * acc, axis=0, keepdims=True)


def _affine_relu_kernel(x_ref, scale_ref, shift_ref, o_ref):
    """BatchNorm apply + ReLU: relu(x * scale + shift), f32 math."""
    x = x_ref[...].astype(jnp.float32)
    o_ref[...] = jnp.maximum(x * scale_ref[...] + shift_ref[...], 0.0
                             ).astype(o_ref.dtype)


# ------------------------------ Pallas wrappers -----------------------------

def gemm_bn_stats(a, b, out_dtype=jnp.bfloat16):
    """Single-block GEMM with BN-stats epilogue (layer 0 fits VMEM whole)."""
    M, K = a.shape
    _, C = b.shape
    return pl.pallas_call(
        _gemm_stats_kernel,
        out_shape=(jax.ShapeDtypeStruct((M, C), out_dtype),
                   jax.ShapeDtypeStruct((1, C), jnp.float32),
                   jax.ShapeDtypeStruct((1, C), jnp.float32)),
        grid_spec=pltpu.PrefetchScalarGridSpec(
            num_scalar_prefetch=0,
            grid=(1,),
            in_specs=[pl.BlockSpec((M, K), lambda i: (0, 0)),
                      pl.BlockSpec((K, C), lambda i: (0, 0))],
            out_specs=(pl.BlockSpec((M, C), lambda i: (0, 0)),
                       pl.BlockSpec((1, C), lambda i: (0, 0)),
                       pl.BlockSpec((1, C), lambda i: (0, 0)))),
        compiler_params=pltpu.CompilerParams(
            dimension_semantics=("arbitrary",),
            vmem_limit_bytes=_VMEM_LIMIT),
    )(a, b)


def deconv_subpixel(xh, wcat, H, W, CO, *, epilogue, out_dtype):
    """Fused sub-pixel ConvTranspose2d(4, 2, 1), channels-last.

    xh:   (N, (H+2)*W, 3*CI) bf16 -- zero-padded input with the 3 horizontal
          taps folded into the channel axis (3x XLA copy, not a 16x im2col).
    wcat: (3, 3*CI, 4*CO) bf16 -- per vertical source offset s, the weights of
          all 4 output parities packed along the output columns.
    y:    (N, H*W, 4*CO), channels ordered (parity p = 2*rh + rw, co), i.e.
          lane-packed so stores are lane-dense whenever 4*CO >= 128.
    epilogue "bn_stats" also returns per-image column sum / sumsq (f32, from
    the MXU accumulator); epilogue "tanh" fuses tanh (EUP slot).
    """
    N, RP, K3 = xh.shape
    HW = H * W
    C4 = 4 * CO
    assert RP == (H + 2) * W and wcat.shape == (3, K3, C4)

    # whole-image blocks; batch images per grid step while VMEM allows,
    # keeping >= 2 grid steps so megacore has independent work.
    per_img = 2 * ((RP * K3 + HW * C4) * 2 + 2 * C4 * 4)
    w_bytes = 2 * wcat.size * 2
    budget = max(_BLOCK_BUDGET - w_bytes, per_img)
    bn = 1
    for cand in (8, 4, 2):
        if N % cand == 0 and N // cand >= 2 and cand * per_img <= budget:
            bn = cand
            break

    def kernel(xh_ref, w_ref, *out_refs):
        for b in range(bn):
            acc = jnp.dot(xh_ref[b, pl.ds(0, HW), :], w_ref[0],
                          preferred_element_type=jnp.float32)
            for s in (1, 2):
                acc = acc + jnp.dot(xh_ref[b, pl.ds(s * W, HW), :], w_ref[s],
                                    preferred_element_type=jnp.float32)
            if epilogue == "bn_stats":
                y_ref, ssum_ref, ssq_ref = out_refs
                y_ref[b] = acc.astype(y_ref.dtype)
                ssum_ref[b] = jnp.sum(acc, axis=0, keepdims=True)
                ssq_ref[b] = jnp.sum(acc * acc, axis=0, keepdims=True)
            else:                                             # "tanh"
                (y_ref,) = out_refs
                y_ref[b] = jnp.tanh(acc).astype(y_ref.dtype)

    xh_spec = pl.BlockSpec((bn, RP, K3), lambda i: (i, 0, 0))
    w_spec = pl.BlockSpec((3, K3, C4), lambda i: (0, 0, 0))
    y_spec = pl.BlockSpec((bn, HW, C4), lambda i: (i, 0, 0))
    s_spec = pl.BlockSpec((bn, 1, C4), lambda i: (i, 0, 0))

    if epilogue == "bn_stats":
        out_shape = (jax.ShapeDtypeStruct((N, HW, C4), out_dtype),
                     jax.ShapeDtypeStruct((N, 1, C4), jnp.float32),
                     jax.ShapeDtypeStruct((N, 1, C4), jnp.float32))
        out_specs = (y_spec, s_spec, s_spec)
    elif epilogue == "tanh":
        out_shape = jax.ShapeDtypeStruct((N, HW, C4), out_dtype)
        out_specs = y_spec
    else:
        raise ValueError(epilogue)

    return pl.pallas_call(
        kernel,
        out_shape=out_shape,
        grid_spec=pltpu.PrefetchScalarGridSpec(
            num_scalar_prefetch=0,
            grid=(N // bn,),
            in_specs=[xh_spec, w_spec],
            out_specs=out_specs),
        compiler_params=pltpu.CompilerParams(
            dimension_semantics=("parallel",),
            vmem_limit_bytes=_VMEM_LIMIT),
    )(xh, wcat)


def affine_relu(x2d, scale, shift, out_dtype=jnp.bfloat16):
    """relu(x * scale + shift) per channel (BatchNorm apply), row-tiled.
    If the channel count is < 128 lanes, consecutive rows are folded into the
    lane axis (scale/shift tiled to match) so stores stay lane-dense."""
    R0, C0 = x2d.shape
    k = 1
    while C0 * k < 128 and R0 % (2 * k) == 0:
        k *= 2
    x2d = x2d.reshape(R0 // k, k * C0)
    scale = jnp.tile(scale.astype(jnp.float32), k).reshape(1, k * C0)
    shift = jnp.tile(shift.astype(jnp.float32), k).reshape(1, k * C0)
    R, C = x2d.shape

    tr, Rp = _pick_rows(R, 8 * C, _BLOCK_BUDGET)
    xin = x2d if Rp == R else jnp.pad(x2d, ((0, Rp - R), (0, 0)))
    out = pl.pallas_call(
        _affine_relu_kernel,
        out_shape=jax.ShapeDtypeStruct((Rp, C), out_dtype),
        grid_spec=pltpu.PrefetchScalarGridSpec(
            num_scalar_prefetch=0,
            grid=(Rp // tr,),
            in_specs=[pl.BlockSpec((tr, C), lambda r: (r, 0)),
                      pl.BlockSpec((1, C), lambda r: (0, 0)),
                      pl.BlockSpec((1, C), lambda r: (0, 0))],
            out_specs=pl.BlockSpec((tr, C), lambda r: (r, 0))),
        compiler_params=pltpu.CompilerParams(
            dimension_semantics=("parallel",),
            vmem_limit_bytes=_VMEM_LIMIT),
    )(xin, scale, shift)
    if Rp != R:
        out = out[:R]
    return out.reshape(R0, C0)


# --------------------------- plain-JAX glue (layout) ------------------------

def _build_xh(x, cdt=jnp.bfloat16):
    """(N, H, W, CI) NHWC -> (N, (H+2)*W, 3*CI): spatial zero-pad of 1 plus the
    3 horizontal taps folded into channels (cheap 3x copy done by XLA)."""
    N, H, W, CI = x.shape
    xp = jnp.pad(x, ((0, 0), (1, 1), (1, 1), (0, 0)))
    xh = jnp.concatenate(
        [xp[:, :, 0:W, :], xp[:, :, 1:W + 1, :], xp[:, :, 2:W + 2, :]], axis=-1)
    return xh.reshape(N, (H + 2) * W, 3 * CI).astype(cdt)


def _build_wcat(w):
    """ConvTranspose2d weight (CI, CO, 4, 4) -> (3, 3*CI, 4*CO).

    Sub-pixel decomposition of stride-2 / k=4 / pad=1: output (2h+rh, 2w+rw)
    gathers padded-input taps (rh+jh, rw+jw), jh/jw in {0,1}, with kernel
    indices (3-rh-2*jh, 3-rw-2*jw).  s = rh+jh is the vertical source offset;
    wcat[s] packs all 4 parities along the output columns (zero blocks where a
    parity has no tap at that offset / column).
    """
    CI, CO = w.shape[0], w.shape[1]
    zero = jnp.zeros((CI, CO), w.dtype)
    per_s = []
    for s in range(3):
        cols = []
        for rh in range(2):
            for rw in range(2):
                jh = s - rh
                if jh in (0, 1):
                    rows = []
                    for jwp in range(3):
                        jw = jwp - rw
                        if jw in (0, 1):
                            rows.append(w[:, :, 3 - rh - 2 * jh, 3 - rw - 2 * jw])
                        else:
                            rows.append(zero)
                    cols.append(jnp.concatenate(rows, axis=0))     # (3CI, CO)
                else:
                    cols.append(jnp.zeros((3 * CI, CO), w.dtype))
        per_s.append(jnp.concatenate(cols, axis=1))                 # (3CI, 4CO)
    return jnp.stack(per_s, axis=0)                                 # (3, 3CI, 4CO)


def _uninterleave(y, H, W, CO):
    """(N, H*W, 4*CO) parity-packed -> (N, 2H, 2W, CO) NHWC.  XLA transpose;
    fuses into the next layer's _build_xh copies."""
    N = y.shape[0]
    t = y.reshape(N, H, W, 2, 2, CO).transpose(0, 1, 3, 2, 4, 5)
    return t.reshape(N, 2 * H, 2 * W, CO)


def _bn_scale_shift(ssum, ssq, count, gamma, beta, eps=1e-5):
    """Training-mode BatchNorm (biased variance), like nn.BatchNorm2d forward."""
    mean = ssum / count
    var = jnp.maximum(ssq / count - mean * mean, 0.0)
    scale = gamma * jax.lax.rsqrt(var + eps)
    shift = beta - mean * scale
    return scale, shift


# --------------------------------- Generator --------------------------------

def init_generator_params(key, nc, nz, ngf):
    chans = [nz, ngf * 8, ngf * 4, ngf * 2, ngf, nc]
    convs, gammas, betas = [], [], []
    for i in range(5):
        key, k1, k2 = jax.random.split(key, 3)
        ci, co = chans[i], chans[i + 1]
        # ConvTranspose2d weight shape: (in_channels, out_channels, 4, 4)
        convs.append(0.02 * jax.random.normal(k1, (ci, co, 4, 4), jnp.float32))
        if i < 4:  # BatchNorm on all but the last layer
            gammas.append(1.0 + 0.02 * jax.random.normal(k2, (co,), jnp.float32))
            betas.append(jnp.zeros((co,), jnp.float32))
    return {"convs": convs, "bn_gamma": gammas, "bn_beta": betas}


def generator_forward(z, params):
    """z: (N, nz, 1, 1) f32 -> (N, nc, 64, 64) f32 (NCHW, like PyTorch)."""
    convs = params["convs"]
    gammas, betas = params["bn_gamma"], params["bn_beta"]
    cdt = jnp.bfloat16
    N, nz = z.shape[0], z.shape[1]

    # layer 0: ConvTranspose2d(nz, ngf*8, 4, 1, 0) on a 1x1 input == outer
    # product; columns ordered (kh, kw, co) so the result reshapes to NHWC.
    w0 = convs[0]
    C0 = w0.shape[1]
    a0 = z.reshape(N, nz).astype(cdt)
    b0 = w0.transpose(0, 2, 3, 1).reshape(nz, 16 * C0).astype(cdt)
    y0, ssum, ssq = gemm_bn_stats(a0, b0)
    scale, shift = _bn_scale_shift(ssum.reshape(16, C0).sum(0),
                                   ssq.reshape(16, C0).sum(0),
                                   float(16 * N), gammas[0], betas[0])
    x = affine_relu(y0.reshape(N * 16, C0), scale, shift).reshape(N, 4, 4, C0)

    # layers 1-3: ConvTranspose2d(4, 2, 1) + BatchNorm + ReLU
    H = W = 4
    for i in range(1, 4):
        wi = convs[i]
        CO = wi.shape[1]
        xh = _build_xh(x, cdt)
        wcat = _build_wcat(wi).astype(cdt)
        y, ssum, ssq = deconv_subpixel(xh, wcat, H, W, CO,
                                       epilogue="bn_stats", out_dtype=cdt)
        scale, shift = _bn_scale_shift(ssum.reshape(N, 4, CO).sum((0, 1)),
                                       ssq.reshape(N, 4, CO).sum((0, 1)),
                                       float(4 * N * H * W),
                                       gammas[i], betas[i])
        ya = affine_relu(y.reshape(N * H * W, 4 * CO),
                         jnp.tile(scale, 4), jnp.tile(shift, 4))
        x = _uninterleave(ya.reshape(N, H * W, 4 * CO), H, W, CO)
        H, W = 2 * H, 2 * W

    # layer 4: ConvTranspose2d(4, 2, 1) + Tanh (tanh fused in the epilogue)
    w4 = convs[4]
    CO = w4.shape[1]
    xh = _build_xh(x, cdt)
    wcat = _build_wcat(w4).astype(cdt)
    y = deconv_subpixel(xh, wcat, H, W, CO, epilogue="tanh",
                        out_dtype=jnp.float32)
    out = _uninterleave(y, H, W, CO)                    # (N, 64, 64, nc)
    return out.transpose(0, 3, 1, 2)                    # NCHW


# ------------------------------ numpy reference ------------------------------

def _ref_conv_transpose(x, w, stride, pad):
    """Definitional ConvTranspose2d scatter (NHWC, float64, bias-free)."""
    N, H, W, CI = x.shape
    CO = w.shape[1]
    OHf, OWf = (H - 1) * stride + 4, (W - 1) * stride + 4
    proj = np.einsum("nhwc,cokl->nhwokl", x, w)
    yf = np.zeros((N, OHf, OWf, CO), np.float64)
    for kh in range(4):
        for kw in range(4):
            yf[:, kh:kh + (H - 1) * stride + 1:stride,
               kw:kw + (W - 1) * stride + 1:stride, :] += proj[..., kh, kw]
    return yf[:, pad:OHf - pad, pad:OWf - pad, :]


def _reference_forward(z, params, eps=1e-5):
    x = np.asarray(z, np.float64).reshape(z.shape[0], -1)[:, None, None, :]
    convs = [np.asarray(w, np.float64) for w in params["convs"]]
    gammas = [np.asarray(g, np.float64) for g in params["bn_gamma"]]
    betas = [np.asarray(b, np.float64) for b in params["bn_beta"]]
    strides, pads = [1, 2, 2, 2, 2], [0, 1, 1, 1, 1]
    for i in range(5):
        x = _ref_conv_transpose(x, convs[i], strides[i], pads[i])
        if i < 4:
            mean = x.mean(axis=(0, 1, 2))
            var = x.var(axis=(0, 1, 2))                 # biased, like BN fwd
            x = gammas[i] * (x - mean) / np.sqrt(var + eps) + betas[i]
            x = np.maximum(x, 0.0)
        else:
            x = np.tanh(x)
    return x.transpose(0, 3, 1, 2)


if __name__ == "__main__":
    key = jax.random.PRNGKey(0)
    nc, nz, ngf, batch = 3, 16, 8, 2          # small, shape-consistent config
    kp, kz = jax.random.split(key)
    params = init_generator_params(kp, nc, nz, ngf)
    z = jax.random.normal(kz, (batch, nz, 1, 1), jnp.float32)

    fwd = jax.jit(generator_forward)
    out = jax.block_until_ready(fwd(z, params))

    assert out.shape == (batch, nc, 64, 64), out.shape
    out_np = np.asarray(out, np.float64)
    assert np.all(np.isfinite(out_np))
    assert np.all(np.abs(out_np) <= 1.0 + 1e-6)         # tanh range

    ref = _reference_forward(z, params)
    err = float(np.max(np.abs(out_np - ref)))
    assert err < 1e-1, f"max |kernel - reference| = {err}"
    print("KERNEL_OK")
</pallas_src>

<mosaic_0001>
module attributes {stable_mosaic.version = 11 : i64} {
  func.func @_gemm_stats_kernel(%arg0: i32, %arg1: memref<2x16xbf16, #tpu.memory_space<vmem>>, %arg2: memref<16x1024xbf16, #tpu.memory_space<vmem>>, %arg3: memref<2x1024xbf16, #tpu.memory_space<vmem>>, %arg4: memref<1x1024xf32, #tpu.memory_space<vmem>>, %arg5: memref<1x1024xf32, #tpu.memory_space<vmem>>) attributes {dimension_semantics = [#tpu.dimension_semantics<arbitrary>], iteration_bounds = array<i64: 1>, scalar_prefetch = 0 : i64, scratch_operands = 0 : i64, tpu.core_type = #tpu.core_type<tc>, window_params = [{pipeline_mode = #tpu.pipeline_mode<synchronous>, transform_indices = @transform_0, window_bounds = array<i64: 2, 16>}, {pipeline_mode = #tpu.pipeline_mode<synchronous>, transform_indices = @transform_1, window_bounds = array<i64: 16, 1024>}, {pipeline_mode = #tpu.pipeline_mode<synchronous>, transform_indices = @transform_2, window_bounds = array<i64: 2, 1024>}, {pipeline_mode = #tpu.pipeline_mode<synchronous>, transform_indices = @transform_3, window_bounds = array<i64: 1, 1024>}, {pipeline_mode = #tpu.pipeline_mode<synchronous>, transform_indices = @transform_4, window_bounds = array<i64: 1, 1024>}]} {
    %c0 = arith.constant 0 : index
    %c0_0 = arith.constant 0 : index
    %0 = vector.load %arg1[%c0, %c0_0] : memref<2x16xbf16, #tpu.memory_space<vmem>>, vector<2x16xbf16>
    %c0_1 = arith.constant 0 : index
    %c0_2 = arith.constant 0 : index
    %1 = vector.load %arg2[%c0_1, %c0_2] : memref<16x1024xbf16, #tpu.memory_space<vmem>>, vector<16x1024xbf16>
    %cst = arith.constant dense<0.000000e+00> : vector<2x1024xf32>
    %2 = tpu.matmul %0, %1, %cst {dimension_numbers = #tpu.dot_dimension_numbers<[1], [0], [0], [1], [0, 0, 1, 1], [], []>} : vector<2x16xbf16>, vector<16x1024xbf16>, vector<2x1024xf32> -> vector<2x1024xf32>
    %3 = arith.truncf %2 : vector<2x1024xf32> to vector<2x1024xbf16>
    %c0_3 = arith.constant 0 : index
    %c0_4 = arith.constant 0 : index
    %4 = vector.load %arg3[%c0_3, %c0_4] : memref<2x1024xbf16, #tpu.memory_space<vmem>>, vector<2x1024xbf16>
    tpu.vector_store %arg3[%c0_3, %c0_4], %3 {strides = array<i32>} : memref<2x1024xbf16, #tpu.memory_space<vmem>>, vector<2x1024xbf16>,
    %cst_5 = arith.constant dense<0.000000e+00> : vector<1024xf32>
    %5 = vector.multi_reduction <add>, %2, %cst_5 [0] : vector<2x1024xf32> to vector<1024xf32>
    %6 = vector.shape_cast %5 : vector<1024xf32> to vector<1x1024xf32>
    %c0_6 = arith.constant 0 : index
    %c0_7 = arith.constant 0 : index
    %7 = vector.load %arg4[%c0_6, %c0_7] : memref<1x1024xf32, #tpu.memory_space<vmem>>, vector<1x1024xf32>
    tpu.vector_store %arg4[%c0_6, %c0_7], %6 {strides = array<i32>} : memref<1x1024xf32, #tpu.memory_space<vmem>>, vector<1x1024xf32>,
    %8 = arith.mulf %2, %2 : vector<2x1024xf32>
    %cst_8 = arith.constant dense<0.000000e+00> : vector<1024xf32>
    %9 = vector.multi_reduction <add>, %8, %cst_8 [0] : vector<2x1024xf32> to vector<1024xf32>
    %10 = vector.shape_cast %9 : vector<1024xf32> to vector<1x1024xf32>
    %c0_9 = arith.constant 0 : index
    %c0_10 = arith.constant 0 : index
    %11 = vector.load %arg5[%c0_9, %c0_10] : memref<1x1024xf32, #tpu.memory_space<vmem>>, vector<1x1024xf32>
    tpu.vector_store %arg5[%c0_9, %c0_10], %10 {strides = array<i32>} : memref<1x1024xf32, #tpu.memory_space<vmem>>, vector<1x1024xf32>,
    return
  }
  func.func @transform_0(%arg0: i32) -> (i32, i32) {
    %c0_i32 = arith.constant 0 : i32
    %c0_i32_0 = arith.constant 0 : i32
    %c0_i32_1 = arith.constant 0 : i32
    return %c0_i32, %c0_i32_0 : i32, i32
  }
  func.func @transform_1(%arg0: i32) -> (i32, i32) {
    %c0_i32 = arith.constant 0 : i32
    %c0_i32_0 = arith.constant 0 : i32
    %c0_i32_1 = arith.constant 0 : i32
    return %c0_i32, %c0_i32_0 : i32, i32
  }
  func.func @transform_2(%arg0: i32) -> (i32, i32) {
    %c0_i32 = arith.constant 0 : i32
    %c0_i32_0 = arith.constant 0 : i32
    %c0_i32_1 = arith.constant 0 : i32
    return %c0_i32, %c0_i32_0 : i32, i32
  }
  func.func @transform_3(%arg0: i32) -> (i32, i32) {
    %c0_i32 = arith.constant 0 : i32
    %c0_i32_0 = arith.constant 0 : i32
    %c0_i32_1 = arith.constant 0 : i32
    return %c0_i32, %c0_i32_0 : i32, i32
  }
  func.func @transform_4(%arg0: i32) -> (i32, i32) {
    %c0_i32 = arith.constant 0 : i32
    %c0_i32_0 = arith.constant 0 : i32
    %c0_i32_1 = arith.constant 0 : i32
    return %c0_i32, %c0_i32_0 : i32, i32
  }
}

module attributes {stable_mosaic.version = 11 : i64} {
  func.func @_affine_relu_kernel(%arg0: i32, %arg1: memref<16x128xbf16, #tpu.memory_space<vmem>>, %arg2: memref<1x128xf32, #tpu.memory_space<vmem>>, %arg3: memref<1x128xf32, #tpu.memory_space<vmem>>, %arg4: memref<16x128xbf16, #tpu.memory_space<vmem>>) attributes {dimension_semantics = [#tpu.dimension_semantics<parallel>], iteration_bounds = array<i64: 1>, scalar_prefetch = 0 : i64, scratch_operands = 0 : i64, tpu.core_type = #tpu.core_type<tc>, window_params = [{transform_indices = @transform_0, window_bounds = array<i64: 16, 128>}, {pipeline_mode = #tpu.pipeline_mode<synchronous>, transform_indices = @transform_1, window_bounds = array<i64: 1, 128>}, {pipeline_mode = #tpu.pipeline_mode<synchronous>, transform_indices = @transform_2, window_bounds = array<i64: 1, 128>}, {transform_indices = @transform_3, window_bounds = array<i64: 16, 128>}]} {
    %c0 = arith.constant 0 : index
    %c0_0 = arith.constant 0 : index
    %0 = vector.load %arg1[%c0, %c0_0] : memref<16x128xbf16, #tpu.memory_space<vmem>>, vector<16x128xbf16>
    %1 = arith.extf %0 : vector<16x128xbf16> to vector<16x128xf32>
    %c0_1 = arith.constant 0 : index
    %c0_2 = arith.constant 0 : index
    %2 = vector.load %arg2[%c0_1, %c0_2] : memref<1x128xf32, #tpu.memory_space<vmem>>, vector<1x128xf32>
    %3 = vector.broadcast %2 : vector<1x128xf32> to vector<16x128xf32>
    %4 = arith.mulf %1, %3 : vector<16x128xf32>
    %c0_3 = arith.constant 0 : index
    %c0_4 = arith.constant 0 : index
    %5 = vector.load %arg3[%c0_3, %c0_4] : memref<1x128xf32, #tpu.memory_space<vmem>>, vector<1x128xf32>
    %6 = vector.broadcast %5 : vector<1x128xf32> to vector<16x128xf32>
    %7 = arith.addf %4, %6 : vector<16x128xf32>
    %cst = arith.constant 0.000000e+00 : f32
    %8 = vector.broadcast %cst : f32 to vector<16x128xf32>
    %9 = arith.maximumf %7, %8 : vector<16x128xf32>
    %10 = arith.truncf %9 : vector<16x128xf32> to vector<16x128xbf16>
    %c0_5 = arith.constant 0 : index
    %c0_6 = arith.constant 0 : index
    %11 = vector.load %arg4[%c0_5, %c0_6] : memref<16x128xbf16, #tpu.memory_space<vmem>>, vector<16x128xbf16>
    tpu.vector_store %arg4[%c0_5, %c0_6], %10 {strides = array<i32>} : memref<16x128xbf16, #tpu.memory_space<vmem>>, vector<16x128xbf16>,
    return
  }
  func.func @transform_0(%arg0: i32) -> (i32, i32) {
    %c0_i32 = arith.constant 0 : i32
    %c0_i32_0 = arith.constant 0 : i32
    return %arg0, %c0_i32 : i32, i32
  }
  func.func @transform_1(%arg0: i32) -> (i32, i32) {
    %c0_i32 = arith.constant 0 : i32
    %c0_i32_0 = arith.constant 0 : i32
    %c0_i32_1 = arith.constant 0 : i32
    return %c0_i32, %c0_i32_0 : i32, i32
  }
  func.func @transform_2(%arg0: i32) -> (i32, i32) {
    %c0_i32 = arith.constant 0 : i32
    %c0_i32_0 = arith.constant 0 : i32
    %c0_i32_1 = arith.constant 0 : i32
    return %c0_i32, %c0_i32_0 : i32, i32
  }
  func.func @transform_3(%arg0: i32) -> (i32, i32) {
    %c0_i32 = arith.constant 0 : i32
    %c0_i32_0 = arith.constant 0 : i32
    return %arg0, %c0_i32 : i32, i32
  }
}

module attributes {stable_mosaic.version = 11 : i64} {
  func.func @kernel(%arg0: i32, %arg1: memref<1x24x192xbf16, #tpu.memory_space<vmem>>, %arg2: memref<3x192x128xbf16, #tpu.memory_space<vmem>>, %arg3: memref<1x16x128xbf16, #tpu.memory_space<vmem>>, %arg4: memref<1x1x128xf32, #tpu.memory_space<vmem>>, %arg5: memref<1x1x128xf32, #tpu.memory_space<vmem>>) attributes {dimension_semantics = [#tpu.dimension_semantics<parallel>], iteration_bounds = array<i64: 2>, scalar_prefetch = 0 : i64, scratch_operands = 0 : i64, tpu.core_type = #tpu.core_type<tc>, window_params = [{transform_indices = @transform_0, window_bounds = array<i64: 1, 24, 192>}, {pipeline_mode = #tpu.pipeline_mode<synchronous>, transform_indices = @transform_1, window_bounds = array<i64: 3, 192, 128>}, {transform_indices = @transform_2, window_bounds = array<i64: 1, 16, 128>}, {transform_indices = @transform_3, window_bounds = array<i64: 1, 1, 128>}, {transform_indices = @transform_4, window_bounds = array<i64: 1, 1, 128>}]} {
    %c0 = arith.constant 0 : index
    %c0_0 = arith.constant 0 : index
    %c0_1 = arith.constant 0 : index
    %0 = vector.load %arg1[%c0, %c0_0, %c0_1] : memref<1x24x192xbf16, #tpu.memory_space<vmem>>, vector<1x16x192xbf16>
    %1 = vector.shape_cast %0 : vector<1x16x192xbf16> to vector<16x192xbf16>
    %c0_2 = arith.constant 0 : index
    %c0_3 = arith.constant 0 : index
    %c0_4 = arith.constant 0 : index
    %2 = vector.load %arg2[%c0_2, %c0_3, %c0_4] : memref<3x192x128xbf16, #tpu.memory_space<vmem>>, vector<1x192x128xbf16>
    %3 = vector.shape_cast %2 : vector<1x192x128xbf16> to vector<192x128xbf16>
    %cst = arith.constant dense<0.000000e+00> : vector<16x128xf32>
    %4 = tpu.matmul %1, %3, %cst {dimension_numbers = #tpu.dot_dimension_numbers<[1], [0], [0], [1], [0, 0, 1, 1], [], []>} : vector<16x192xbf16>, vector<192x128xbf16>, vector<16x128xf32> -> vector<16x128xf32>
    %c0_5 = arith.constant 0 : index
    %c4 = arith.constant 4 : index
    %c0_6 = arith.constant 0 : index
    %5 = vector.load %arg1[%c0_5, %c4, %c0_6] : memref<1x24x192xbf16, #tpu.memory_space<vmem>>, vector<1x16x192xbf16>
    %6 = vector.shape_cast %5 : vector<1x16x192xbf16> to vector<16x192xbf16>
    %c1 = arith.constant 1 : index
    %c0_7 = arith.constant 0 : index
    %c0_8 = arith.constant 0 : index
    %7 = vector.load %arg2[%c1, %c0_7, %c0_8] : memref<3x192x128xbf16, #tpu.memory_space<vmem>>, vector<1x192x128xbf16>
    %8 = vector.shape_cast %7 : vector<1x192x128xbf16> to vector<192x128xbf16>
    %cst_9 = arith.constant dense<0.000000e+00> : vector<16x128xf32>
    %9 = tpu.matmul %6, %8, %cst_9 {dimension_numbers = #tpu.dot_dimension_numbers<[1], [0], [0], [1], [0, 0, 1, 1], [], []>} : vector<16x192xbf16>, vector<192x128xbf16>, vector<16x128xf32> -> vector<16x128xf32>
    %10 = arith.addf %4, %9 : vector<16x128xf32>
    %c0_10 = arith.constant 0 : index
    %c8 = arith.constant 8 : index
    %c0_11 = arith.constant 0 : index
    %11 = vector.load %arg1[%c0_10, %c8, %c0_11] : memref<1x24x192xbf16, #tpu.memory_space<vmem>>, vector<1x16x192xbf16>
    %12 = vector.shape_cast %11 : vector<1x16x192xbf16> to vector<16x192xbf16>
    %c2 = arith.constant 2 : index
    %c0_12 = arith.constant 0 : index
    %c0_13 = arith.constant 0 : index
    %13 = vector.load %arg2[%c2, %c0_12, %c0_13] : memref<3x192x128xbf16, #tpu.memory_space<vmem>>, vector<1x192x128xbf16>
    %14 = vector.shape_cast %13 : vector<1x192x128xbf16> to vector<192x128xbf16>
    %cst_14 = arith.constant dense<0.000000e+00> : vector<16x128xf32>
    %15 = tpu.matmul %12, %14, %cst_14 {dimension_numbers = #tpu.dot_dimension_numbers<[1], [0], [0], [1], [0, 0, 1, 1], [], []>} : vector<16x192xbf16>, vector<192x128xbf16>, vector<16x128xf32> -> vector<16x128xf32>
    %16 = arith.addf %10, %15 : vector<16x128xf32>
    %17 = arith.truncf %16 : vector<16x128xf32> to vector<16x128xbf16>
    %c0_15 = arith.constant 0 : index
    %c0_16 = arith.constant 0 : index
    %c0_17 = arith.constant 0 : index
    %18 = vector.load %arg3[%c0_15, %c0_16, %c0_17] : memref<1x16x128xbf16, #tpu.memory_space<vmem>>, vector<1x16x128xbf16>
    %19 = vector.shape_cast %18 : vector<1x16x128xbf16> to vector<16x128xbf16>
    %20 = vector.shape_cast %17 : vector<16x128xbf16> to vector<1x16x128xbf16>
    tpu.vector_store %arg3[%c0_15, %c0_16, %c0_17], %20 {strides = array<i32>} : memref<1x16x128xbf16, #tpu.memory_space<vmem>>, vector<1x16x128xbf16>,
    %cst_18 = arith.constant dense<0.000000e+00> : vector<128xf32>
    %21 = vector.multi_reduction <add>, %16, %cst_18 [0] : vector<16x128xf32> to vector<128xf32>
    %22 = vector.shape_cast %21 : vector<128xf32> to vector<1x128xf32>
    %c0_19 = arith.constant 0 : index
    %c0_20 = arith.constant 0 : index
    %c0_21 = arith.constant 0 : index
    %23 = vector.load %arg4[%c0_19, %c0_20, %c0_21] : memref<1x1x128xf32, #tpu.memory_space<vmem>>, vector<1x1x128xf32>
    %24 = vector.shape_cast %23 : vector<1x1x128xf32> to vector<1x128xf32>
    %25 = vector.shape_cast %22 : vector<1x128xf32> to vector<1x1x128xf32>
    tpu.vector_store %arg4[%c0_19, %c0_20, %c0_21], %25 {strides = array<i32>} : memref<1x1x128xf32, #tpu.memory_space<vmem>>, vector<1x1x128xf32>,
    %26 = arith.mulf %16, %16 : vector<16x128xf32>
    %cst_22 = arith.constant dense<0.000000e+00> : vector<128xf32>
    %27 = vector.multi_reduction <add>, %26, %cst_22 [0] : vector<16x128xf32> to vector<128xf32>
    %28 = vector.shape_cast %27 : vector<128xf32> to vector<1x128xf32>
    %c0_23 = arith.constant 0 : index
    %c0_24 = arith.constant 0 : index
    %c0_25 = arith.constant 0 : index
    %29 = vector.load %arg5[%c0_23, %c0_24, %c0_25] : memref<1x1x128xf32, #tpu.memory_space<vmem>>, vector<1x1x128xf32>
    %30 = vector.shape_cast %29 : vector<1x1x128xf32> to vector<1x128xf32>
    %31 = vector.shape_cast %28 : vector<1x128xf32> to vector<1x1x128xf32>
    tpu.vector_store %arg5[%c0_23, %c0_24, %c0_25], %31 {strides = array<i32>} : memref<1x1x128xf32, #tpu.memory_space<vmem>>, vector<1x1x128xf32>,
    return
  }
  func.func @transform_0(%arg0: i32) -> (i32, i32, i32) {
    %c0_i32 = arith.constant 0 : i32
    %c0_i32_0 = arith.constant 0 : i32
    %c0_i32_1 = arith.constant 0 : i32
    return %arg0, %c0_i32, %c0_i32_0 : i32, i32, i32
  }
  func.func @transform_1(%arg0: i32) -> (i32, i32, i32) {
    %c0_i32 = arith.constant 0 : i32
    %c0_i32_0 = arith.constant 0 : i32
    %c0_i32_1 = arith.constant 0 : i32
    %c0_i32_2 = arith.constant 0 : i32
    return %c0_i32, %c0_i32_0, %c0_i32_1 : i32, i32, i32
  }
  func.func @transform_2(%arg0: i32) -> (i32, i32, i32) {
    %c0_i32 = arith.constant 0 : i32
    %c0_i32_0 = arith.constant 0 : i32
    %c0_i32_1 = arith.constant 0 : i32
    return %arg0, %c0_i32, %c0_i32_0 : i32, i32, i32
  }
  func.func @transform_3(%arg0: i32) -> (i32, i32, i32) {
    %c0_i32 = arith.constant 0 : i32
    %c0_i32_0 = arith.constant 0 : i32
    %c0_i32_1 = arith.constant 0 : i32
    return %arg0, %c0_i32, %c0_i32_0 : i32, i32, i32
  }
  func.func @transform_4(%arg0: i32) -> (i32, i32, i32) {
    %c0_i32 = arith.constant 0 : i32
    %c0_i32_0 = arith.constant 0 : i32
    %c0_i32_1 = arith.constant 0 : i32
    return %arg0, %c0_i32, %c0_i32_0 : i32, i32, i32
  }
}

module attributes {stable_mosaic.version = 11 : i64} {
  func.func @_affine_relu_kernel(%arg0: i32, %arg1: memref<32x128xbf16, #tpu.memory_space<vmem>>, %arg2: memref<1x128xf32, #tpu.memory_space<vmem>>, %arg3: memref<1x128xf32, #tpu.memory_space<vmem>>, %arg4: memref<32x128xbf16, #tpu.memory_space<vmem>>) attributes {dimension_semantics = [#tpu.dimension_semantics<parallel>], iteration_bounds = array<i64: 1>, scalar_prefetch = 0 : i64, scratch_operands = 0 : i64, tpu.core_type = #tpu.core_type<tc>, window_params = [{transform_indices = @transform_0, window_bounds = array<i64: 32, 128>}, {pipeline_mode = #tpu.pipeline_mode<synchronous>, transform_indices = @transform_1, window_bounds = array<i64: 1, 128>}, {pipeline_mode = #tpu.pipeline_mode<synchronous>, transform_indices = @transform_2, window_bounds = array<i64: 1, 128>}, {transform_indices = @transform_3, window_bounds = array<i64: 32, 128>}]} {
    %c0 = arith.constant 0 : index
    %c0_0 = arith.constant 0 : index
    %0 = vector.load %arg1[%c0, %c0_0] : memref<32x128xbf16, #tpu.memory_space<vmem>>, vector<32x128xbf16>
    %1 = arith.extf %0 : vector<32x128xbf16> to vector<32x128xf32>
    %c0_1 = arith.constant 0 : index
    %c0_2 = arith.constant 0 : index
    %2 = vector.load %arg2[%c0_1, %c0_2] : memref<1x128xf32, #tpu.memory_space<vmem>>, vector<1x128xf32>
    %3 = vector.broadcast %2 : vector<1x128xf32> to vector<32x128xf32>
    %4 = arith.mulf %1, %3 : vector<32x128xf32>
    %c0_3 = arith.constant 0 : index
    %c0_4 = arith.constant 0 : index
    %5 = vector.load %arg3[%c0_3, %c0_4] : memref<1x128xf32, #tpu.memory_space<vmem>>, vector<1x128xf32>
    %6 = vector.broadcast %5 : vector<1x128xf32> to vector<32x128xf32>
    %7 = arith.addf %4, %6 : vector<32x128xf32>
    %cst = arith.constant 0.000000e+00 : f32
    %8 = vector.broadcast %cst : f32 to vector<32x128xf32>
    %9 = arith.maximumf %7, %8 : vector<32x128xf32>
    %10 = arith.truncf %9 : vector<32x128xf32> to vector<32x128xbf16>
    %c0_5 = arith.constant 0 : index
    %c0_6 = arith.constant 0 : index
    %11 = vector.load %arg4[%c0_5, %c0_6] : memref<32x128xbf16, #tpu.memory_space<vmem>>, vector<32x128xbf16>
    tpu.vector_store %arg4[%c0_5, %c0_6], %10 {strides = array<i32>} : memref<32x128xbf16, #tpu.memory_space<vmem>>, vector<32x128xbf16>,
    return
  }
  func.func @transform_0(%arg0: i32) -> (i32, i32) {
    %c0_i32 = arith.constant 0 : i32
    %c0_i32_0 = arith.constant 0 : i32
    return %arg0, %c0_i32 : i32, i32
  }
  func.func @transform_1(%arg0: i32) -> (i32, i32) {
    %c0_i32 = arith.constant 0 : i32
    %c0_i32_0 = arith.constant 0 : i32
    %c0_i32_1 = arith.constant 0 : i32
    return %c0_i32, %c0_i32_0 : i32, i32
  }
  func.func @transform_2(%arg0: i32) -> (i32, i32) {
    %c0_i32 = arith.constant 0 : i32
    %c0_i32_0 = arith.constant 0 : i32
    %c0_i32_1 = arith.constant 0 : i32
    return %c0_i32, %c0_i32_0 : i32, i32
  }
  func.func @transform_3(%arg0: i32) -> (i32, i32) {
    %c0_i32 = arith.constant 0 : i32
    %c0_i32_0 = arith.constant 0 : i32
    return %arg0, %c0_i32 : i32, i32
  }
}

module attributes {stable_mosaic.version = 11 : i64} {
  func.func @kernel(%arg0: i32, %arg1: memref<1x80x96xbf16, #tpu.memory_space<vmem>>, %arg2: memref<3x96x64xbf16, #tpu.memory_space<vmem>>, %arg3: memref<1x64x64xbf16, #tpu.memory_space<vmem>>, %arg4: memref<1x1x64xf32, #tpu.memory_space<vmem>>, %arg5: memref<1x1x64xf32, #tpu.memory_space<vmem>>) attributes {dimension_semantics = [#tpu.dimension_semantics<parallel>], iteration_bounds = array<i64: 2>, scalar_prefetch = 0 : i64, scratch_operands = 0 : i64, tpu.core_type = #tpu.core_type<tc>, window_params = [{transform_indices = @transform_0, window_bounds = array<i64: 1, 80, 96>}, {pipeline_mode = #tpu.pipeline_mode<synchronous>, transform_indices = @transform_1, window_bounds = array<i64: 3, 96, 64>}, {transform_indices = @transform_2, window_bounds = array<i64: 1, 64, 64>}, {transform_indices = @transform_3, window_bounds = array<i64: 1, 1, 64>}, {transform_indices = @transform_4, window_bounds = array<i64: 1, 1, 64>}]} {
    %c0 = arith.constant 0 : index
    %c0_0 = arith.constant 0 : index
    %c0_1 = arith.constant 0 : index
    %0 = vector.load %arg1[%c0, %c0_0, %c0_1] : memref<1x80x96xbf16, #tpu.memory_space<vmem>>, vector<1x64x96xbf16>
    %1 = vector.shape_cast %0 : vector<1x64x96xbf16> to vector<64x96xbf16>
    %c0_2 = arith.constant 0 : index
    %c0_3 = arith.constant 0 : index
    %c0_4 = arith.constant 0 : index
    %2 = vector.load %arg2[%c0_2, %c0_3, %c0_4] : memref<3x96x64xbf16, #tpu.memory_space<vmem>>, vector<1x96x64xbf16>
    %3 = vector.shape_cast %2 : vector<1x96x64xbf16> to vector<96x64xbf16>
    %cst = arith.constant dense<0.000000e+00> : vector<64x64xf32>
    %4 = tpu.matmul %1, %3, %cst {dimension_numbers = #tpu.dot_dimension_numbers<[1], [0], [0], [1], [0, 0, 1, 1], [], []>} : vector<64x96xbf16>, vector<96x64xbf16>, vector<64x64xf32> -> vector<64x64xf32>
    %c0_5 = arith.constant 0 : index
    %c8 = arith.constant 8 : index
    %c0_6 = arith.constant 0 : index
    %5 = vector.load %arg1[%c0_5, %c8, %c0_6] : memref<1x80x96xbf16, #tpu.memory_space<vmem>>, vector<1x64x96xbf16>
    %6 = vector.shape_cast %5 : vector<1x64x96xbf16> to vector<64x96xbf16>
    %c1 = arith.constant 1 : index
    %c0_7 = arith.constant 0 : index
    %c0_8 = arith.constant 0 : index
    %7 = vector.load %arg2[%c1, %c0_7, %c0_8] : memref<3x96x64xbf16, #tpu.memory_space<vmem>>, vector<1x96x64xbf16>
    %8 = vector.shape_cast %7 : vector<1x96x64xbf16> to vector<96x64xbf16>
    %cst_9 = arith.constant dense<0.000000e+00> : vector<64x64xf32>
    %9 = tpu.matmul %6, %8, %cst_9 {dimension_numbers = #tpu.dot_dimension_numbers<[1], [0], [0], [1], [0, 0, 1, 1], [], []>} : vector<64x96xbf16>, vector<96x64xbf16>, vector<64x64xf32> -> vector<64x64xf32>
    %10 = arith.addf %4, %9 : vector<64x64xf32>
    %c0_10 = arith.constant 0 : index
    %c16 = arith.constant 16 : index
    %c0_11 = arith.constant 0 : index
    %11 = vector.load %arg1[%c0_10, %c16, %c0_11] : memref<1x80x96xbf16, #tpu.memory_space<vmem>>, vector<1x64x96xbf16>
    %12 = vector.shape_cast %11 : vector<1x64x96xbf16> to vector<64x96xbf16>
    %c2 = arith.constant 2 : index
    %c0_12 = arith.constant 0 : index
    %c0_13 = arith.constant 0 : index
    %13 = vector.load %arg2[%c2, %c0_12, %c0_13] : memref<3x96x64xbf16, #tpu.memory_space<vmem>>, vector<1x96x64xbf16>
    %14 = vector.shape_cast %13 : vector<1x96x64xbf16> to vector<96x64xbf16>
    %cst_14 = arith.constant dense<0.000000e+00> : vector<64x64xf32>
    %15 = tpu.matmul %12, %14, %cst_14 {dimension_numbers = #tpu.dot_dimension_numbers<[1], [0], [0], [1], [0, 0, 1, 1], [], []>} : vector<64x96xbf16>, vector<96x64xbf16>, vector<64x64xf32> -> vector<64x64xf32>
    %16 = arith.addf %10, %15 : vector<64x64xf32>
    %17 = arith.truncf %16 : vector<64x64xf32> to vector<64x64xbf16>
    %c0_15 = arith.constant 0 : index
    %c0_16 = arith.constant 0 : index
    %c0_17 = arith.constant 0 : index
    %18 = vector.load %arg3[%c0_15, %c0_16, %c0_17] : memref<1x64x64xbf16, #tpu.memory_space<vmem>>, vector<1x64x64xbf16>
    %19 = vector.shape_cast %18 : vector<1x64x64xbf16> to vector<64x64xbf16>
    %20 = vector.shape_cast %17 : vector<64x64xbf16> to vector<1x64x64xbf16>
    tpu.vector_store %arg3[%c0_15, %c0_16, %c0_17], %20 {strides = array<i32>} : memref<1x64x64xbf16, #tpu.memory_space<vmem>>, vector<1x64x64xbf16>,
    %cst_18 = arith.constant dense<0.000000e+00> : vector<64xf32>
    %21 = vector.multi_reduction <add>, %16, %cst_18 [0] : vector<64x64xf32> to vector<64xf32>
    %22 = vector.shape_cast %21 : vector<64xf32> to vector<1x64xf32>
    %c0_19 = arith.constant 0 : index
    %c0_20 = arith.constant 0 : index
    %c0_21 = arith.constant 0 : index
    %23 = vector.load %arg4[%c0_19, %c0_20, %c0_21] : memref<1x1x64xf32, #tpu.memory_space<vmem>>, vector<1x1x64xf32>
    %24 = vector.shape_cast %23 : vector<1x1x64xf32> to vector<1x64xf32>
    %25 = vector.shape_cast %22 : vector<1x64xf32> to vector<1x1x64xf32>
    tpu.vector_store %arg4[%c0_19, %c0_20, %c0_21], %25 {strides = array<i32>} : memref<1x1x64xf32, #tpu.memory_space<vmem>>, vector<1x1x64xf32>,
    %26 = arith.mulf %16, %16 : vector<64x64xf32>
    %cst_22 = arith.constant dense<0.000000e+00> : vector<64xf32>
    %27 = vector.multi_reduction <add>, %26, %cst_22 [0] : vector<64x64xf32> to vector<64xf32>
    %28 = vector.shape_cast %27 : vector<64xf32> to vector<1x64xf32>
    %c0_23 = arith.constant 0 : index
    %c0_24 = arith.constant 0 : index
    %c0_25 = arith.constant 0 : index
    %29 = vector.load %arg5[%c0_23, %c0_24, %c0_25] : memref<1x1x64xf32, #tpu.memory_space<vmem>>, vector<1x1x64xf32>
    %30 = vector.shape_cast %29 : vector<1x1x64xf32> to vector<1x64xf32>
    %31 = vector.shape_cast %28 : vector<1x64xf32> to vector<1x1x64xf32>
    tpu.vector_store %arg5[%c0_23, %c0_24, %c0_25], %31 {strides = array<i32>} : memref<1x1x64xf32, #tpu.memory_space<vmem>>, vector<1x1x64xf32>,
    return
  }
  func.func @transform_0(%arg0: i32) -> (i32, i32, i32) {
    %c0_i32 = arith.constant 0 : i32
    %c0_i32_0 = arith.constant 0 : i32
    %c0_i32_1 = arith.constant 0 : i32
    return %arg0, %c0_i32, %c0_i32_0 : i32, i32, i32
  }
  func.func @transform_1(%arg0: i32) -> (i32, i32, i32) {
    %c0_i32 = arith.constant 0 : i32
    %c0_i32_0 = arith.constant 0 : i32
    %c0_i32_1 = arith.constant 0 : i32
    %c0_i32_2 = arith.constant 0 : i32
    return %c0_i32, %c0_i32_0, %c0_i32_1 : i32, i32, i32
  }
  func.func @transform_2(%arg0: i32) -> (i32, i32, i32) {
    %c0_i32 = arith.constant 0 : i32
    %c0_i32_0 = arith.constant 0 : i32
    %c0_i32_1 = arith.constant 0 : i32
    return %arg0, %c0_i32, %c0_i32_0 : i32, i32, i32
  }
  func.func @transform_3(%arg0: i32) -> (i32, i32, i32) {
    %c0_i32 = arith.constant 0 : i32
    %c0_i32_0 = arith.constant 0 : i32
    %c0_i32_1 = arith.constant 0 : i32
    return %arg0, %c0_i32, %c0_i32_0 : i32, i32, i32
  }
  func.func @transform_4(%arg0: i32) -> (i32, i32, i32) {
    %c0_i32 = arith.constant 0 : i32
    %c0_i32_0 = arith.constant 0 : i32
    %c0_i32_1 = arith.constant 0 : i32
    return %arg0, %c0_i32, %c0_i32_0 : i32, i32, i32
  }
}

module attributes {stable_mosaic.version = 11 : i64} {
  func.func @_affine_relu_kernel(%arg0: i32, %arg1: memref<64x128xbf16, #tpu.memory_space<vmem>>, %arg2: memref<1x128xf32, #tpu.memory_space<vmem>>, %arg3: memref<1x128xf32, #tpu.memory_space<vmem>>, %arg4: memref<64x128xbf16, #tpu.memory_space<vmem>>) attributes {dimension_semantics = [#tpu.dimension_semantics<parallel>], iteration_bounds = array<i64: 1>, scalar_prefetch = 0 : i64, scratch_operands = 0 : i64, tpu.core_type = #tpu.core_type<tc>, window_params = [{transform_indices = @transform_0, window_bounds = array<i64: 64, 128>}, {pipeline_mode = #tpu.pipeline_mode<synchronous>, transform_indices = @transform_1, window_bounds = array<i64: 1, 128>}, {pipeline_mode = #tpu.pipeline_mode<synchronous>, transform_indices = @transform_2, window_bounds = array<i64: 1, 128>}, {transform_indices = @transform_3, window_bounds = array<i64: 64, 128>}]} {
    %c0 = arith.constant 0 : index
    %c0_0 = arith.constant 0 : index
    %0 = vector.load %arg1[%c0, %c0_0] : memref<64x128xbf16, #tpu.memory_space<vmem>>, vector<64x128xbf16>
    %1 = arith.extf %0 : vector<64x128xbf16> to vector<64x128xf32>
    %c0_1 = arith.constant 0 : index
    %c0_2 = arith.constant 0 : index
    %2 = vector.load %arg2[%c0_1, %c0_2] : memref<1x128xf32, #tpu.memory_space<vmem>>, vector<1x128xf32>
    %3 = vector.broadcast %2 : vector<1x128xf32> to vector<64x128xf32>
    %4 = arith.mulf %1, %3 : vector<64x128xf32>
    %c0_3 = arith.constant 0 : index
    %c0_4 = arith.constant 0 : index
    %5 = vector.load %arg3[%c0_3, %c0_4] : memref<1x128xf32, #tpu.memory_space<vmem>>, vector<1x128xf32>
    %6 = vector.broadcast %5 : vector<1x128xf32> to vector<64x128xf32>
    %7 = arith.addf %4, %6 : vector<64x128xf32>
    %cst = arith.constant 0.000000e+00 : f32
    %8 = vector.broadcast %cst : f32 to vector<64x128xf32>
    %9 = arith.maximumf %7, %8 : vector<64x128xf32>
    %10 = arith.truncf %9 : vector<64x128xf32> to vector<64x128xbf16>
    %c0_5 = arith.constant 0 : index
    %c0_6 = arith.constant 0 : index
    %11 = vector.load %arg4[%c0_5, %c0_6] : memref<64x128xbf16, #tpu.memory_space<vmem>>, vector<64x128xbf16>
    tpu.vector_store %arg4[%c0_5, %c0_6], %10 {strides = array<i32>} : memref<64x128xbf16, #tpu.memory_space<vmem>>, vector<64x128xbf16>,
    return
  }
  func.func @transform_0(%arg0: i32) -> (i32, i32) {
    %c0_i32 = arith.constant 0 : i32
    %c0_i32_0 = arith.constant 0 : i32
    return %arg0, %c0_i32 : i32, i32
  }
  func.func @transform_1(%arg0: i32) -> (i32, i32) {
    %c0_i32 = arith.constant 0 : i32
    %c0_i32_0 = arith.constant 0 : i32
    %c0_i32_1 = arith.constant 0 : i32
    return %c0_i32, %c0_i32_0 : i32, i32
  }
  func.func @transform_2(%arg0: i32) -> (i32, i32) {
    %c0_i32 = arith.constant 0 : i32
    %c0_i32_0 = arith.constant 0 : i32
    %c0_i32_1 = arith.constant 0 : i32
    return %c0_i32, %c0_i32_0 : i32, i32
  }
  func.func @transform_3(%arg0: i32) -> (i32, i32) {
    %c0_i32 = arith.constant 0 : i32
    %c0_i32_0 = arith.constant 0 : i32
    return %arg0, %c0_i32 : i32, i32
  }
}

module attributes {stable_mosaic.version = 11 : i64} {
  func.func @kernel(%arg0: i32, %arg1: memref<1x288x48xbf16, #tpu.memory_space<vmem>>, %arg2: memref<3x48x32xbf16, #tpu.memory_space<vmem>>, %arg3: memref<1x256x32xbf16, #tpu.memory_space<vmem>>, %arg4: memref<1x1x32xf32, #tpu.memory_space<vmem>>, %arg5: memref<1x1x32xf32, #tpu.memory_space<vmem>>) attributes {dimension_semantics = [#tpu.dimension_semantics<parallel>], iteration_bounds = array<i64: 2>, scalar_prefetch = 0 : i64, scratch_operands = 0 : i64, tpu.core_type = #tpu.core_type<tc>, window_params = [{transform_indices = @transform_0, window_bounds = array<i64: 1, 288, 48>}, {pipeline_mode = #tpu.pipeline_mode<synchronous>, transform_indices = @transform_1, window_bounds = array<i64: 3, 48, 32>}, {transform_indices = @transform_2, window_bounds = array<i64: 1, 256, 32>}, {transform_indices = @transform_3, window_bounds = array<i64: 1, 1, 32>}, {transform_indices = @transform_4, window_bounds = array<i64: 1, 1, 32>}]} {
    %c0 = arith.constant 0 : index
    %c0_0 = arith.constant 0 : index
    %c0_1 = arith.constant 0 : index
    %0 = vector.load %arg1[%c0, %c0_0, %c0_1] : memref<1x288x48xbf16, #tpu.memory_space<vmem>>, vector<1x256x48xbf16>
    %1 = vector.shape_cast %0 : vector<1x256x48xbf16> to vector<256x48xbf16>
    %c0_2 = arith.constant 0 : index
    %c0_3 = arith.constant 0 : index
    %c0_4 = arith.constant 0 : index
    %2 = vector.load %arg2[%c0_2, %c0_3, %c0_4] : memref<3x48x32xbf16, #tpu.memory_space<vmem>>, vector<1x48x32xbf16>
    %3 = vector.shape_cast %2 : vector<1x48x32xbf16> to vector<48x32xbf16>
    %cst = arith.constant dense<0.000000e+00> : vector<256x32xf32>
    %4 = tpu.matmul %1, %3, %cst {dimension_numbers = #tpu.dot_dimension_numbers<[1], [0], [0], [1], [0, 0, 1, 1], [], []>} : vector<256x48xbf16>, vector<48x32xbf16>, vector<256x32xf32> -> vector<256x32xf32>
    %c0_5 = arith.constant 0 : index
    %c16 = arith.constant 16 : index
    %c0_6 = arith.constant 0 : index
    %5 = vector.load %arg1[%c0_5, %c16, %c0_6] : memref<1x288x48xbf16, #tpu.memory_space<vmem>>, vector<1x256x48xbf16>
    %6 = vector.shape_cast %5 : vector<1x256x48xbf16> to vector<256x48xbf16>
    %c1 = arith.constant 1 : index
    %c0_7 = arith.constant 0 : index
    %c0_8 = arith.constant 0 : index
    %7 = vector.load %arg2[%c1, %c0_7, %c0_8] : memref<3x48x32xbf16, #tpu.memory_space<vmem>>, vector<1x48x32xbf16>
    %8 = vector.shape_cast %7 : vector<1x48x32xbf16> to vector<48x32xbf16>
    %cst_9 = arith.constant dense<0.000000e+00> : vector<256x32xf32>
    %9 = tpu.matmul %6, %8, %cst_9 {dimension_numbers = #tpu.dot_dimension_numbers<[1], [0], [0], [1], [0, 0, 1, 1], [], []>} : vector<256x48xbf16>, vector<48x32xbf16>, vector<256x32xf32> -> vector<256x32xf32>
    %10 = arith.addf %4, %9 : vector<256x32xf32>
    %c0_10 = arith.constant 0 : index
    %c32 = arith.constant 32 : index
    %c0_11 = arith.constant 0 : index
    %11 = vector.load %arg1[%c0_10, %c32, %c0_11] : memref<1x288x48xbf16, #tpu.memory_space<vmem>>, vector<1x256x48xbf16>
    %12 = vector.shape_cast %11 : vector<1x256x48xbf16> to vector<256x48xbf16>
    %c2 = arith.constant 2 : index
    %c0_12 = arith.constant 0 : index
    %c0_13 = arith.constant 0 : index
    %13 = vector.load %arg2[%c2, %c0_12, %c0_13] : memref<3x48x32xbf16, #tpu.memory_space<vmem>>, vector<1x48x32xbf16>
    %14 = vector.shape_cast %13 : vector<1x48x32xbf16> to vector<48x32xbf16>
    %cst_14 = arith.constant dense<0.000000e+00> : vector<256x32xf32>
    %15 = tpu.matmul %12, %14, %cst_14 {dimension_numbers = #tpu.dot_dimension_numbers<[1], [0], [0], [1], [0, 0, 1, 1], [], []>} : vector<256x48xbf16>, vector<48x32xbf16>, vector<256x32xf32> -> vector<256x32xf32>
    %16 = arith.addf %10, %15 : vector<256x32xf32>
    %17 = arith.truncf %16 : vector<256x32xf32> to vector<256x32xbf16>
    %c0_15 = arith.constant 0 : index
    %c0_16 = arith.constant 0 : index
    %c0_17 = arith.constant 0 : index
    %18 = vector.load %arg3[%c0_15, %c0_16, %c0_17] : memref<1x256x32xbf16, #tpu.memory_space<vmem>>, vector<1x256x32xbf16>
    %19 = vector.shape_cast %18 : vector<1x256x32xbf16> to vector<256x32xbf16>
    %20 = vector.shape_cast %17 : vector<256x32xbf16> to vector<1x256x32xbf16>
    tpu.vector_store %arg3[%c0_15, %c0_16, %c0_17], %20 {strides = array<i32>} : memref<1x256x32xbf16, #tpu.memory_space<vmem>>, vector<1x256x32xbf16>,
    %cst_18 = arith.constant dense<0.000000e+00> : vector<32xf32>
    %21 = vector.multi_reduction <add>, %16, %cst_18 [0] : vector<256x32xf32> to vector<32xf32>
    %22 = vector.shape_cast %21 : vector<32xf32> to vector<1x32xf32>
    %c0_19 = arith.constant 0 : index
    %c0_20 = arith.constant 0 : index
    %c0_21 = arith.constant 0 : index
    %23 = vector.load %arg4[%c0_19, %c0_20, %c0_21] : memref<1x1x32xf32, #tpu.memory_space<vmem>>, vector<1x1x32xf32>
    %24 = vector.shape_cast %23 : vector<1x1x32xf32> to vector<1x32xf32>
    %25 = vector.shape_cast %22 : vector<1x32xf32> to vector<1x1x32xf32>
    tpu.vector_store %arg4[%c0_19, %c0_20, %c0_21], %25 {strides = array<i32>} : memref<1x1x32xf32, #tpu.memory_space<vmem>>, vector<1x1x32xf32>,
    %26 = arith.mulf %16, %16 : vector<256x32xf32>
    %cst_22 = arith.constant dense<0.000000e+00> : vector<32xf32>
    %27 = vector.multi_reduction <add>, %26, %cst_22 [0] : vector<256x32xf32> to vector<32xf32>
    %28 = vector.shape_cast %27 : vector<32xf32> to vector<1x32xf32>
    %c0_23 = arith.constant 0 : index
    %c0_24 = arith.constant 0 : index
    %c0_25 = arith.constant 0 : index
    %29 = vector.load %arg5[%c0_23, %c0_24, %c0_25] : memref<1x1x32xf32, #tpu.memory_space<vmem>>, vector<1x1x32xf32>
    %30 = vector.shape_cast %29 : vector<1x1x32xf32> to vector<1x32xf32>
    %31 = vector.shape_cast %28 : vector<1x32xf32> to vector<1x1x32xf32>
    tpu.vector_store %arg5[%c0_23, %c0_24, %c0_25], %31 {strides = array<i32>} : memref<1x1x32xf32, #tpu.memory_space<vmem>>, vector<1x1x32xf32>,
    return
  }
  func.func @transform_0(%arg0: i32) -> (i32, i32, i32) {
    %c0_i32 = arith.constant 0 : i32
    %c0_i32_0 = arith.constant 0 : i32
    %c0_i32_1 = arith.constant 0 : i32
    return %arg0, %c0_i32, %c0_i32_0 : i32, i32, i32
  }
  func.func @transform_1(%arg0: i32) -> (i32, i32, i32) {
    %c0_i32 = arith.constant 0 : i32
    %c0_i32_0 = arith.constant 0 : i32
    %c0_i32_1 = arith.constant 0 : i32
    %c0_i32_2 = arith.constant 0 : i32
    return %c0_i32, %c0_i32_0, %c0_i32_1 : i32, i32, i32
  }
  func.func @transform_2(%arg0: i32) -> (i32, i32, i32) {
    %c0_i32 = arith.constant 0 : i32
    %c0_i32_0 = arith.constant 0 : i32
    %c0_i32_1 = arith.constant 0 : i32
    return %arg0, %c0_i32, %c0_i32_0 : i32, i32, i32
  }
  func.func @transform_3(%arg0: i32) -> (i32, i32, i32) {
    %c0_i32 = arith.constant 0 : i32
    %c0_i32_0 = arith.constant 0 : i32
    %c0_i32_1 = arith.constant 0 : i32
    return %arg0, %c0_i32, %c0_i32_0 : i32, i32, i32
  }
  func.func @transform_4(%arg0: i32) -> (i32, i32, i32) {
    %c0_i32 = arith.constant 0 : i32
    %c0_i32_0 = arith.constant 0 : i32
    %c0_i32_1 = arith.constant 0 : i32
    return %arg0, %c0_i32, %c0_i32_0 : i32, i32, i32
  }
}

module attributes {stable_mosaic.version = 11 : i64} {
  func.func @_affine_relu_kernel(%arg0: i32, %arg1: memref<128x128xbf16, #tpu.memory_space<vmem>>, %arg2: memref<1x128xf32, #tpu.memory_space<vmem>>, %arg3: memref<1x128xf32, #tpu.memory_space<vmem>>, %arg4: memref<128x128xbf16, #tpu.memory_space<vmem>>) attributes {dimension_semantics = [#tpu.dimension_semantics<parallel>], iteration_bounds = array<i64: 1>, scalar_prefetch = 0 : i64, scratch_operands = 0 : i64, tpu.core_type = #tpu.core_type<tc>, window_params = [{transform_indices = @transform_0, window_bounds = array<i64: 128, 128>}, {pipeline_mode = #tpu.pipeline_mode<synchronous>, transform_indices = @transform_1, window_bounds = array<i64: 1, 128>}, {pipeline_mode = #tpu.pipeline_mode<synchronous>, transform_indices = @transform_2, window_bounds = array<i64: 1, 128>}, {transform_indices = @transform_3, window_bounds = array<i64: 128, 128>}]} {
    %c0 = arith.constant 0 : index
    %c0_0 = arith.constant 0 : index
    %0 = vector.load %arg1[%c0, %c0_0] : memref<128x128xbf16, #tpu.memory_space<vmem>>, vector<128x128xbf16>
    %1 = arith.extf %0 : vector<128x128xbf16> to vector<128x128xf32>
    %c0_1 = arith.constant 0 : index
    %c0_2 = arith.constant 0 : index
    %2 = vector.load %arg2[%c0_1, %c0_2] : memref<1x128xf32, #tpu.memory_space<vmem>>, vector<1x128xf32>
    %3 = vector.broadcast %2 : vector<1x128xf32> to vector<128x128xf32>
    %4 = arith.mulf %1, %3 : vector<128x128xf32>
    %c0_3 = arith.constant 0 : index
    %c0_4 = arith.constant 0 : index
    %5 = vector.load %arg3[%c0_3, %c0_4] : memref<1x128xf32, #tpu.memory_space<vmem>>, vector<1x128xf32>
    %6 = vector.broadcast %5 : vector<1x128xf32> to vector<128x128xf32>
    %7 = arith.addf %4, %6 : vector<128x128xf32>
    %cst = arith.constant 0.000000e+00 : f32
    %8 = vector.broadcast %cst : f32 to vector<128x128xf32>
    %9 = arith.maximumf %7, %8 : vector<128x128xf32>
    %10 = arith.truncf %9 : vector<128x128xf32> to vector<128x128xbf16>
    %c0_5 = arith.constant 0 : index
    %c0_6 = arith.constant 0 : index
    %11 = vector.load %arg4[%c0_5, %c0_6] : memref<128x128xbf16, #tpu.memory_space<vmem>>, vector<128x128xbf16>
    tpu.vector_store %arg4[%c0_5, %c0_6], %10 {strides = array<i32>} : memref<128x128xbf16, #tpu.memory_space<vmem>>, vector<128x128xbf16>,
    return
  }
  func.func @transform_0(%arg0: i32) -> (i32, i32) {
    %c0_i32 = arith.constant 0 : i32
    %c0_i32_0 = arith.constant 0 : i32
    return %arg0, %c0_i32 : i32, i32
  }
  func.func @transform_1(%arg0: i32) -> (i32, i32) {
    %c0_i32 = arith.constant 0 : i32
    %c0_i32_0 = arith.constant 0 : i32
    %c0_i32_1 = arith.constant 0 : i32
    return %c0_i32, %c0_i32_0 : i32, i32
  }
  func.func @transform_2(%arg0: i32) -> (i32, i32) {
    %c0_i32 = arith.constant 0 : i32
    %c0_i32_0 = arith.constant 0 : i32
    %c0_i32_1 = arith.constant 0 : i32
    return %c0_i32, %c0_i32_0 : i32, i32
  }
  func.func @transform_3(%arg0: i32) -> (i32, i32) {
    %c0_i32 = arith.constant 0 : i32
    %c0_i32_0 = arith.constant 0 : i32
    return %arg0, %c0_i32 : i32, i32
  }
}

module attributes {stable_mosaic.version = 11 : i64} {
  func.func @kernel(%arg0: i32, %arg1: memref<1x1088x24xbf16, #tpu.memory_space<vmem>>, %arg2: memref<3x24x12xbf16, #tpu.memory_space<vmem>>, %arg3: memref<1x1024x12xf32, #tpu.memory_space<vmem>>) attributes {dimension_semantics = [#tpu.dimension_semantics<parallel>], iteration_bounds = array<i64: 2>, scalar_prefetch = 0 : i64, scratch_operands = 0 : i64, tpu.core_type = #tpu.core_type<tc>, window_params = [{transform_indices = @transform_0, window_bounds = array<i64: 1, 1088, 24>}, {pipeline_mode = #tpu.pipeline_mode<synchronous>, transform_indices = @transform_1, window_bounds = array<i64: 3, 24, 12>}, {transform_indices = @transform_2, window_bounds = array<i64: 1, 1024, 12>}]} {
    %c0 = arith.constant 0 : index
    %c0_0 = arith.constant 0 : index
    %c0_1 = arith.constant 0 : index
    %0 = vector.load %arg1[%c0, %c0_0, %c0_1] : memref<1x1088x24xbf16, #tpu.memory_space<vmem>>, vector<1x1024x24xbf16>
    %1 = vector.shape_cast %0 : vector<1x1024x24xbf16> to vector<1024x24xbf16>
    %c0_2 = arith.constant 0 : index
    %c0_3 = arith.constant 0 : index
    %c0_4 = arith.constant 0 : index
    %2 = vector.load %arg2[%c0_2, %c0_3, %c0_4] : memref<3x24x12xbf16, #tpu.memory_space<vmem>>, vector<1x24x12xbf16>
    %3 = vector.shape_cast %2 : vector<1x24x12xbf16> to vector<24x12xbf16>
    %cst = arith.constant dense<0.000000e+00> : vector<1024x12xf32>
    %4 = tpu.matmul %1, %3, %cst {dimension_numbers = #tpu.dot_dimension_numbers<[1], [0], [0], [1], [0, 0, 1, 1], [], []>} : vector<1024x24xbf16>, vector<24x12xbf16>, vector<1024x12xf32> -> vector<1024x12xf32>
    %c0_5 = arith.constant 0 : index
    %c32 = arith.constant 32 : index
    %c0_6 = arith.constant 0 : index
    %5 = vector.load %arg1[%c0_5, %c32, %c0_6] : memref<1x1088x24xbf16, #tpu.memory_space<vmem>>, vector<1x1024x24xbf16>
    %6 = vector.shape_cast %5 : vector<1x1024x24xbf16> to vector<1024x24xbf16>
    %c1 = arith.constant 1 : index
    %c0_7 = arith.constant 0 : index
    %c0_8 = arith.constant 0 : index
    %7 = vector.load %arg2[%c1, %c0_7, %c0_8] : memref<3x24x12xbf16, #tpu.memory_space<vmem>>, vector<1x24x12xbf16>
    %8 = vector.shape_cast %7 : vector<1x24x12xbf16> to vector<24x12xbf16>
    %cst_9 = arith.constant dense<0.000000e+00> : vector<1024x12xf32>
    %9 = tpu.matmul %6, %8, %cst_9 {dimension_numbers = #tpu.dot_dimension_numbers<[1], [0], [0], [1], [0, 0, 1, 1], [], []>} : vector<1024x24xbf16>, vector<24x12xbf16>, vector<1024x12xf32> -> vector<1024x12xf32>
    %10 = arith.addf %4, %9 : vector<1024x12xf32>
    %c0_10 = arith.constant 0 : index
    %c64 = arith.constant 64 : index
    %c0_11 = arith.constant 0 : index
    %11 = vector.load %arg1[%c0_10, %c64, %c0_11] : memref<1x1088x24xbf16, #tpu.memory_space<vmem>>, vector<1x1024x24xbf16>
    %12 = vector.shape_cast %11 : vector<1x1024x24xbf16> to vector<1024x24xbf16>
    %c2 = arith.constant 2 : index
    %c0_12 = arith.constant 0 : index
    %c0_13 = arith.constant 0 : index
    %13 = vector.load %arg2[%c2, %c0_12, %c0_13] : memref<3x24x12xbf16, #tpu.memory_space<vmem>>, vector<1x24x12xbf16>
    %14 = vector.shape_cast %13 : vector<1x24x12xbf16> to vector<24x12xbf16>
    %cst_14 = arith.constant dense<0.000000e+00> : vector<1024x12xf32>
    %15 = tpu.matmul %12, %14, %cst_14 {dimension_numbers = #tpu.dot_dimension_numbers<[1], [0], [0], [1], [0, 0, 1, 1], [], []>} : vector<1024x24xbf16>, vector<24x12xbf16>, vector<1024x12xf32> -> vector<1024x12xf32>
    %16 = arith.addf %10, %15 : vector<1024x12xf32>
    %17 = math.tanh %16 : vector<1024x12xf32>
    %c0_15 = arith.constant 0 : index
    %c0_16 = arith.constant 0 : index
    %c0_17 = arith.constant 0 : index
    %18 = vector.load %arg3[%c0_15, %c0_16, %c0_17] : memref<1x1024x12xf32, #tpu.memory_space<vmem>>, vector<1x1024x12xf32>
    %19 = vector.shape_cast %18 : vector<1x1024x12xf32> to vector<1024x12xf32>
    %20 = vector.shape_cast %17 : vector<1024x12xf32> to vector<1x1024x12xf32>
    tpu.vector_store %arg3[%c0_15, %c0_16, %c0_17], %20 {strides = array<i32>} : memref<1x1024x12xf32, #tpu.memory_space<vmem>>, vector<1x1024x12xf32>,
    return
  }
  func.func @transform_0(%arg0: i32) -> (i32, i32, i32) {
    %c0_i32 = arith.constant 0 : i32
    %c0_i32_0 = arith.constant 0 : i32
    %c0_i32_1 = arith.constant 0 : i32
    return %arg0, %c0_i32, %c0_i32_0 : i32, i32, i32
  }
  func.func @transform_1(%arg0: i32) -> (i32, i32, i32) {
    %c0_i32 = arith.constant 0 : i32
    %c0_i32_0 = arith.constant 0 : i32
    %c0_i32_1 = arith.constant 0 : i32
    %c0_i32_2 = arith.constant 0 : i32
    return %c0_i32, %c0_i32_0, %c0_i32_1 : i32, i32, i32
  }
  func.func @transform_2(%arg0: i32) -> (i32, i32, i32) {
    %c0_i32 = arith.constant 0 : i32
    %c0_i32_0 = arith.constant 0 : i32
    %c0_i32_1 = arith.constant 0 : i32
    return %arg0, %c0_i32, %c0_i32_0 : i32, i32, i32
  }
}

</mosaic_0001>

<bundles_post_ra>
// kernel: tile.64
= control target key start
LH: loop header
LB: loop body
LE: loop exit
PB: predicated region body
PF: predicated region fallthrough
CT: control target
= control target key end

     0   :  { %s22_s0 = inlined_call_operand.vmem [shape: f32[64], index: 0, kind: input, shape index: {}]   ;;  %s23_s1 = inlined_call_operand.vmem [shape: f32[2,64], index: 1, kind: output, shape index: {}]  }
   0x1   :  { %v4_v0 = vld [vmem:[%s22_s0] ss:$0 sm:$0xff] }
   0x2   :  { %5 = vst [vmem:[%s23_s1] sm:$0x3] %v4_v0 }

// kernel: tile.65
= control target key start
LH: loop header
LB: loop body
LE: loop exit
PB: predicated region body
PF: predicated region fallthrough
CT: control target
= control target key end

     0   :  { %vm8_vm0 = vcmask 523264   ;;  %vm14_vm1 = vcmask 1048064   ;;  %s42_s0 = inlined_call_operand.vmem [shape: f32[2,64], index: 0, kind: input, shape index: {}]   ;;  %s43_s1 = inlined_call_operand.vmem [shape: f32[1,128], index: 1, kind: output, shape index: {}]  }
   0x1   :  { %v5_v0 = vld [vmem:[%s42_s0] sm:$0x3]  ;;  %s25_s0 = smov 64  }
   0x2   :  { %6 = vst [vmem:[#allocation1] sm:$0x3] %v5_v0 }
   0x9   :  { %v11_v1 = vld [vmem:[#allocation1 + $0x1] sm:$0x1]   ;;  %v7_v2 = vld [vmem:[#allocation1] sm:$0x1]  }
   0xa   :  { %12 = vrot.lane.b32.xlu0 %v11_v1, %s25_s0  ;;  %9 = vst.msk [vmem:[#allocation0] sm:$0x1] %vm8_vm0, %v7_v2  }
  0x7c   :  { %v13_v3 = vpop.permute.xlu0 %12  }
  0x7d   :  { %15 = vst.msk [vmem:[#allocation0] sm:$0x1] %vm14_vm1, %v13_v3  }
  0x84   :  { %v20_v4 = vld [vmem:[#allocation0] sm:$0x1] }
  0x85   :  { %23 = vst [vmem:[%s43_s1] sm:$0x1] %v20_v4 }

// kernel: generator_forward.10
= control target key start
LH: loop header
LB: loop body
LE: loop exit
PB: predicated region body
PF: predicated region fallthrough
CT: control target
= control target key end

     0   :  { %s99_s0 = inlined_call_operand.vmem [shape: bf16[16,128], index: 0, kind: input, shape index: {}]   ;;  %s100_s1 = inlined_call_operand.vmem [shape: f32[1,128], index: 1, kind: input, shape index: {}]   ;;  %s101_s2 = inlined_call_operand.vmem [shape: f32[1,128], index: 2, kind: input, shape index: {}]   ;;  %s102_s3 = inlined_call_operand.vmem [shape: bf16[16,128], index: 3, kind: output, shape index: {}]  }
   0x1   :  { %v59_v0 = vld [vmem:[%s99_s0] sm:$0xff]  }
   0x2   :  { %v52_v1 = vld [vmem:[%s100_s1] ss:$0 sm:$0xff]  ;;  %v60_v2 = vunpack.c.l.bf16 %v59_v0  ;;  %v61_v3 = vunpack.c.h.bf16 %v59_v0 }
   0x3   :  { %v53_v4 = vld [vmem:[%s101_s2] ss:$0 sm:$0xff] }
   0x4   :  { %v25_v5 = vmul.f32 %v60_v2, %v52_v1  ;;  %v26_v6 = vmul.f32 %v61_v3, %v52_v1 }
   0x6   :  { %v34_v7 = vadd.f32 %v53_v4, %v25_v5  ;;  %v35_v8 = vadd.f32 %v53_v4, %v26_v6 }
   0x8   :  { %v36_v9 = vmax.f32 %v34_v7, 0.0  ;;  %v37_v10 = vmax.f32 %v35_v8, 0.0 }
   0xa   :  { %v65_v11 = vpack.c.bf16 %v37_v10, %v36_v9 }
   0xc   :  { %66 = vst [vmem:[%s102_s3] sm:$0xff] %v65_v11  }

// kernel: generator_forward.9
= control target key start
LH: loop header
LB: loop body
LE: loop exit
PB: predicated region body
PF: predicated region fallthrough
CT: control target
= control target key end

     0   :  { %v568_v3 = vmov 0   ;;  %vm64_vm0 = vcmask 130048   ;;  %vm299_vm1 = vcmask 1041408   ;;  %v569_v22 = vmov 1966171168   ;;  %s707_s1 = inlined_call_operand.vmem [shape: bf16[16,1024], index: 1, kind: input, shape index: {}]   ;;  %s708_s0 = inlined_call_operand.vmem [shape: bf16[2,16], index: 0, kind: input, shape index: {}]   ;;  %s709_s2 = inlined_call_operand.vmem [shape: bf16[2,1024], index: 2, kind: output, shape index: {0}]   ;;  %s710_s3 = inlined_call_operand.vmem [shape: f32[1,1024], index: 3, kind: output, shape index: {1}]   ;;  %s711_s4 = inlined_call_operand.vmem [shape: f32[1,1024], index: 4, kind: output, shape index: {2}]  }
   0x1   :  { %v16_v0 = vld [vmem:[%s707_s1] sm:$0xff]  ;;  %v17_v2 = vld [vmem:[%s707_s1 + $0x8] sm:$0xff]  ;;  %100 = vmatprep.mubr.bf16.mxu0 %v568_v3  ;;  %141 = vmatprep.mubr.bf16.mxu1 %v568_v3  ;;  %v18_v7 = vld [vmem:[%s707_s1 + $0x10] sm:$0xff]  ;;  %v253_v23 = vunpack.c.l.s4 %v569_v22  ;;  %v255_v28 = vlaneseq }
   0x2   :  { %v20_v1 = vld [vmem:[%s707_s1 + $0x20] sm:$0xff]  ;;  %v21_v5 = vld [vmem:[%s707_s1 + $0x28] sm:$0xff]  ;;  %v22_v10 = vld [vmem:[%s707_s1 + $0x30] sm:$0xff] }
   0x3   :  { %v551_v4 = vcombine.high %v16_v0, %v20_v1  ;;  %v550_v6 = vcombine.low %v16_v0, %v20_v1  ;;  %v553_v8 = vcombine.high %v17_v2, %v21_v5  ;;  %v552_v9 = vcombine.low %v17_v2, %v21_v5  ;;  %v19_v11 = vld [vmem:[%s707_s1 + $0x18] sm:$0xff]  ;;  %v15_v15 = vld [vmem:[%s708_s0] sm:$0x1] }
   0x4   :  { %v23_v12 = vld [vmem:[%s707_s1 + $0x38] sm:$0xff]  ;;  %v555_v13 = vcombine.high %v18_v7, %v22_v10  ;;  %v554_v16 = vcombine.low %v18_v7, %v22_v10  ;;  %v254_v41 = vunpack.c.0.s8 %v253_v23  ;;  %v256_v42 = vshrl.u32 %v255_v28, 7 }
   0x5   :  { %82 = vmatprep.subr.bf16.mxu0 %v551_v4  ;;  %v557_v14 = vcombine.high %v19_v11, %v23_v12  ;;  %123 = vmatprep.subr.bf16.mxu1 %v553_v8  ;;  %v556_v17 = vcombine.low %v19_v11, %v23_v12 }
   0x6   :  { %83 = vmatpush1.bf16.msra.mxu0 %v550_v6  ;;  %124 = vmatpush1.bf16.msra.mxu1 %v552_v9  ;;  %v633_v56 = vsub.s32 %v254_v41, %v256_v42 }
   0x7   :  { %164 = vmatprep.subr.bf16.mxu0 %v555_v13  ;;  %205 = vmatprep.subr.bf16.mxu1 %v557_v14 }
   0x9   :  { %558 = vmatmul.mubr.msk.bf16.vlgmr.msra.gmra.mxu0 %vm64_vm0, %v15_v15  ;;  %559 = vmatmul.mubr.msk.bf16.vlgmr.msra.gmra.mxu1 %vm64_vm0, %v15_v15 }
   0xa   :  { %165 = vmatpush1.bf16.msra.mxu0 %v554_v16  ;;  %206 = vmatpush1.bf16.msra.mxu1 %v556_v17 }
   0xb   :  { %182 = vmatprep.mubr.bf16.mxu0 %v568_v3  ;;  %223 = vmatprep.mubr.bf16.mxu1 %v568_v3 }
  0x11   :  { %560 = vmatmul.mubr.msk.bf16.vlgmr.msra.gmra.mxu0 %vm64_vm0, %v15_v15  ;;  %561 = vmatmul.mubr.msk.bf16.vlgmr.msra.gmra.mxu1 %vm64_vm0, %v15_v15 }
  0xc9   :  { %v102_v18 = vpop.f32.mrf.mxu0  ;;  %v143_v21 = vpop.f32.mrf.mxu1 }
  0xca   :  { %v300_v19 = vsel %vm299_vm1, %v102_v18, 0.0  ;;  %v415_v20 = vmul.f32 %v102_v18, %v102_v18  ;;  %v314_v25 = vsel %vm299_vm1, %v143_v21, 0.0  ;;  %v417_v26 = vmul.f32 %v143_v21, %v143_v21 }
  0xcb   :  { %v301_v24 = vrot.slane %v300_v19, 4  ;;  %v104_v27 = vpop.f32.mrf.mxu0  ;;  %v315_v30 = vrot.slane %v314_v25, 4  ;;  %v145_v32 = vpop.f32.mrf.mxu1 }
  0xcc   :  { %v423_v29 = vsel %vm299_vm1, %v415_v20, 0.0  ;;  %v307_v31 = vsel %vm299_vm1, %v104_v27, 0.0  ;;  %v437_v34 = vsel %vm299_vm1, %v417_v26, 0.0  ;;  %v416_v38 = vmul.f32 %v104_v27, %v104_v27 }
  0xcd   :  { %v302_v33 = vadd.f32 %v301_v24, %v300_v19  ;;  %v308_v35 = vrot.slane %v307_v31, 4  ;;  %v106_v36 = vpop.f32.mrf.mxu0  ;;  %v424_v37 = vrot.slane %v423_v29, 4  ;;  %v147_v39 = vpop.f32.mrf.mxu1  ;;  %v316_v40 = vadd.f32 %v315_v30, %v314_v25 }
  0xce   :  { %v438_v45 = vrot.slane %v437_v34, 4  ;;  %v321_v46 = vsel %vm299_vm1, %v145_v32, 0.0  ;;  %v430_v49 = vsel %vm299_vm1, %v416_v38, 0.0  ;;  %v562_v55 = vpack.c.bf16 %v104_v27, %v102_v18 }
  0xcf   :  { %v309_v43 = vadd.f32 %v308_v35, %v307_v31  ;;  %v107_v44 = vpop.f32.mrf.mxu0  ;;  %v148_v47 = vpop.f32.mrf.mxu1  ;;  %v303_v48 = vrot.slane %v302_v33, 2  ;;  %v425_v51 = vadd.f32 %v424_v37, %v423_v29  ;;  %v322_v52 = vrot.slane %v321_v46, 4 }
  0xd0   :  { %v317_v54 = vrot.slane %v316_v40, 2  ;;  %v439_v59 = vadd.f32 %v438_v45, %v437_v34  ;;  %v431_v60 = vrot.slane %v430_v49, 4  ;;  %v563_v63 = vpack.c.bf16 %v145_v32, %v143_v21 }
  0xd1   :  { %v629_v50 = vpop.f32.mrf.mxu0  ;;  %v631_v53 = vpop.f32.mrf.mxu1  ;;  %v310_v57 = vrot.slane %v309_v43, 2  ;;  %v304_v62 = vadd.f32 %v303_v48, %v302_v33  ;;  %v426_v1 = vrot.slane %v425_v51, 2  ;;  %v323_v2 = vadd.f32 %v322_v52, %v321_v46 }
  0xd2   :  { %v318_v4 = vadd.f32 %v317_v54, %v316_v40  ;;  %v258_v5 = vrot.slane %v562_v55, %v633_v56  ;;  %v418_v7 = vmul.f32 %v145_v32, %v145_v32  ;;  %v440_v9 = vrot.slane %v439_v59, 2 }
  0xd3   :  { %v635_v58 = vpop.f32.mrf.mxu0  ;;  %v637_v61 = vpop.f32.mrf.mxu1  ;;  %v311_v6 = vadd.f32 %v310_v57, %v309_v43  ;;  %v432_v10 = vadd.f32 %v431_v60, %v430_v49  ;;  %v328_v11 = vsel %vm299_vm1, %v629_v50, 0.0  ;;  %v419_v12 = vmul.f32 %v629_v50, %v629_v50 }
  0xd4   :  { %v305_v14 = vrot.slane %v304_v62, 1  ;;  %v265_v15 = vrot.slane %v563_v63, %v633_v56  ;;  %v444_v16 = vsel %vm299_vm1, %v418_v7, 0.0  ;;  %v329_v17 = vrot.slane %v328_v11, 4 }
  0xd5   :  { %v188_v0 = vpop.f32.mrf.mxu0  ;;  %v229_v3 = vpop.f32.mrf.mxu1  ;;  %v427_v18 = vadd.f32 %v426_v1, %v425_v51  ;;  %v324_v19 = vrot.slane %v323_v2, 2  ;;  %v445_v20 = vrot.slane %v444_v16, 4  ;;  %v451_v21 = vsel %vm299_vm1, %v419_v12, 0.0 }
  0xd6   :  { %v319_v22 = vrot.slane %v318_v4, 1  ;;  %v312_v23 = vrot.slane %v311_v6, 1  ;;  %v330_v24 = vadd.f32 %v329_v17, %v328_v11  ;;  %v342_v25 = vsel %vm299_vm1, %v631_v53, 0.0 }
  0xd7   :  { %v189_v8 = vpop.f32.mrf.mxu0  ;;  %v230_v13 = vpop.f32.mrf.mxu1  ;;  %v433_v26 = vrot.slane %v432_v10, 2  ;;  %v446_v27 = vadd.f32 %v445_v20, %v444_v16  ;;  %v452_v28 = vrot.slane %v451_v21, 4  ;;  %v421_v29 = vmul.f32 %v631_v53, %v631_v53 }
  0xd8   :  { %v651_v30 = vadd.f32 %v440_v9, %v439_v59  ;;  %v280_v31 = vcombine.low %v258_v5, %v265_v15  ;;  %v325_v32 = vadd.f32 %v324_v19, %v323_v2  ;;  %v343_v33 = vrot.slane %v342_v25, 4 }
  0xd9   :  { %v465_v34 = vsel %vm299_vm1, %v421_v29, 0.0  ;;  %v654_v35 = vadd.f32 %v305_v14, %v304_v62  ;;  %v428_v36 = vrot.slane %v427_v18, 1  ;;  %v656_v37 = vadd.f32 %v312_v23, %v311_v6 }
  0xda   :  { %v331_v38 = vrot.slane %v330_v24, 2  ;;  %v658_v39 = vadd.f32 %v319_v22, %v318_v4  ;;  %v434_v40 = vadd.f32 %v433_v26, %v432_v10  ;;  %v447_v41 = vrot.slane %v446_v27, 2 }
  0xdb   :  { %v453_v42 = vadd.f32 %v452_v28, %v451_v21  ;;  %v442_v43 = vrot.slane %v651_v30, 1  ;;  %v466_v44 = vrot.slane %v465_v34, 4  ;;  %v564_v45 = vpack.c.bf16 %v635_v58, %v629_v50 }
  0xdc   :  { %v335_v46 = vsel %vm299_vm1, %v635_v58, 0.0  ;;  %v288_v47 = vrot.slane %v280_v31, %v633_v56  ;;  %v326_v48 = vrot.slane %v325_v32, 1  ;;  %v344_v49 = vadd.f32 %v343_v33, %v342_v25 }
  0xdd   :  { %v336_v51 = vrot.slane %v335_v46, 4  ;;  %v666_v52 = vadd.f32 %v428_v36, %v427_v18  ;;  %v364_v54 = vcombine.low %v654_v35, %v656_v37  ;;  %v332_v55 = vadd.f32 %v331_v38, %v330_v24 }
  0xde   :  { %v420_v57 = vmul.f32 %v635_v58, %v635_v58  ;;  %v435_v59 = vrot.slane %v434_v40, 1  ;;  %v448_v60 = vadd.f32 %v447_v41, %v446_v27  ;;  %v454_v50 = vrot.slane %v453_v42, 2 }
  0xdf   :  { %v337_v62 = vadd.f32 %v336_v51, %v335_v46  ;;  %v467_v63 = vadd.f32 %v466_v44, %v465_v34  ;;  %v272_v0 = vrot.slane %v564_v45, %v633_v56  ;;  %v565_v2 = vpack.c.bf16 %v637_v61, %v631_v53 }
  0xe0   :  { %v458_v1 = vsel %vm299_vm1, %v420_v57, 0.0  ;;  %v327_v3 = vadd.f32 %v326_v48, %v325_v32  ;;  %v345_v4 = vrot.slane %v344_v49, 2  ;;  %v333_v7 = vrot.slane %v332_v55, 1 }
  0xe1   :  { %v338_v5 = vrot.slane %v337_v62, 2  ;;  %v459_v6 = vrot.slane %v458_v1, 4  ;;  %v279_v8 = vrot.slane %v565_v2, %v633_v56  ;;  %v349_v58 = vsel %vm299_vm1, %v637_v61, 0.0 }
  0xe2   :  { %v422_v9 = vmul.f32 %v637_v61, %v637_v61  ;;  %v455_v10 = vadd.f32 %v454_v50, %v453_v42  ;;  %v350_v13 = vrot.slane %v349_v58, 4  ;;  %v449_v14 = vrot.slane %v448_v60, 1 }
  0xe3   :  { %v339_v11 = vadd.f32 %v338_v5, %v337_v62  ;;  %v460_v12 = vadd.f32 %v459_v6, %v458_v1  ;;  %v468_v15 = vrot.slane %v467_v63, 2  ;;  %v281_v53 = vcombine.low %v272_v0, %v279_v8 }
  0xe4   :  { %v472_v16 = vsel %vm299_vm1, %v422_v9, 0.0  ;;  %v346_v17 = vadd.f32 %v345_v4, %v344_v49  ;;  %v351_v20 = vadd.f32 %v350_v13, %v349_v58  ;;  %v436_v21 = vadd.f32 %v435_v59, %v434_v40 }
  0xe5   :  { %v340_v18 = vrot.slane %v339_v11, 1  ;;  %v461_v19 = vrot.slane %v460_v12, 2  ;;  %v365_v22 = vcombine.low %v658_v39, %v327_v3  ;;  %v295_v23 = vrot.slane %v281_v53, %v633_v56 }
  0xe6   :  { %v473_v24 = vrot.slane %v472_v16, 4  ;;  %v456_v61 = vrot.slane %v455_v10, 1  ;;  %v352_v27 = vrot.slane %v351_v20, 2  ;;  %v450_v28 = vadd.f32 %v449_v14, %v448_v60 }
  0xe7   :  { %v341_v25 = vadd.f32 %v340_v18, %v339_v11  ;;  %v462_v26 = vadd.f32 %v461_v19, %v460_v12  ;;  %v469_v29 = vadd.f32 %v468_v15, %v467_v63  ;;  %v296_v31 = vcombine.low %v288_v47, %v295_v23 }
  0xe8   :  { %v474_v32 = vadd.f32 %v473_v24, %v472_v16  ;;  %v334_v33 = vadd.f32 %v333_v7, %v332_v55  ;;  %v347_v34 = vrot.slane %v346_v17, 1  ;;  %v353_v36 = vadd.f32 %v352_v27, %v351_v20 }
  0xe9   :  { %v463_v35 = vrot.slane %v462_v26, 1  ;;  %v443_v37 = vadd.f32 %v442_v43, %v651_v30  ;;  %298 = vst [vmem:[%s709_s2] sm:$0xff] %v296_v31  ;;  %v487_v39 = vcombine.low %v666_v52, %v436_v21  ;;  %v457_v45 = vadd.f32 %v456_v61, %v455_v10 }
  0xea   :  { %v475_v38 = vrot.slane %v474_v32, 2  ;;  %v366_v40 = vcombine.low %v334_v33, %v341_v25  ;;  %v354_v42 = vrot.slane %v353_v36, 1  ;;  %v470_v46 = vrot.slane %v469_v29, 1 }
  0xeb   :  { %v464_v41 = vadd.f32 %v463_v35, %v462_v26  ;;  %v488_v44 = vcombine.low %v443_v37, %v450_v28  ;;  %v374_v48 = vrot.slane %v364_v54, %v633_v56  ;;  %v381_v49 = vrot.slane %v365_v22, %v633_v56 }
  0xec   :  { %v476_v47 = vadd.f32 %v475_v38, %v474_v32  ;;  %v348_v51 = vadd.f32 %v347_v34, %v346_v17  ;;  %v355_v30 = vadd.f32 %v354_v42, %v353_v36  ;;  %v388_v57 = vrot.slane %v366_v40, %v633_v56 }
  0xed   :  { %v489_v43 = vcombine.low %v457_v45, %v464_v41  ;;  %v497_v52 = vrot.slane %v487_v39, %v633_v56  ;;  %v504_v60 = vrot.slane %v488_v44, %v633_v56  ;;  %v471_v50 = vadd.f32 %v470_v46, %v469_v29 }
  0xee   :  { %v477_v55 = vrot.slane %v476_v47, 1  ;;  %v367_v59 = vcombine.low %v348_v51, %v355_v30  ;;  %v396_v63 = vcombine.low %v374_v48, %v381_v49 }
  0xef   :  { %v511_v54 = vrot.slane %v489_v43, %v633_v56  ;;  %v519_v3 = vcombine.low %v497_v52, %v504_v60 }
  0xf0   :  { %v478_v62 = vadd.f32 %v477_v55, %v476_v47  ;;  %v395_v0 = vrot.slane %v367_v59, %v633_v56  ;;  %v404_v5 = vrot.slane %v396_v63, %v633_v56 }
  0xf1   :  { %v527_v58 = vrot.slane %v519_v3, %v633_v56 }
  0xf2   :  { %v490_v1 = vcombine.low %v471_v50, %v478_v62  ;;  %v397_v2 = vcombine.low %v388_v57, %v395_v0 }
  0xf4   :  { %v518_v4 = vrot.slane %v490_v1, %v633_v56  ;;  %v411_v6 = vrot.slane %v397_v2, %v633_v56 }
  0xf6   :  { %v520_v7 = vcombine.low %v511_v54, %v518_v4  ;;  %v412_v8 = vcombine.low %v404_v5, %v411_v6 }
  0xf8   :  { %v534_v9 = vrot.slane %v520_v7, %v633_v56  ;;  %414 = vst [vmem:[%s710_s3] sm:$0xff] %v412_v8 }
  0xfa   :  { %v535_v10 = vcombine.low %v527_v58, %v534_v9 }
  0xfc   :  { %537 = vst [vmem:[%s711_s4] sm:$0xff] %v535_v10 }

// kernel: tile.73
= control target key start
LH: loop header
LB: loop body
LE: loop exit
PB: predicated region body
PF: predicated region fallthrough
CT: control target
= control target key end

     0   :  { %s22_s0 = inlined_call_operand.vmem [shape: f32[32], index: 0, kind: input, shape index: {}]   ;;  %s23_s1 = inlined_call_operand.vmem [shape: f32[4,32], index: 1, kind: output, shape index: {}]  }
   0x1   :  { %v4_v0 = vld [vmem:[%s22_s0] ss:$0 sm:$0xff] }
   0x2   :  { %5 = vst [vmem:[%s23_s1] sm:$0xf] %v4_v0 }

// kernel: tile.75
= control target key start
LH: loop header
LB: loop body
LE: loop exit
PB: predicated region body
PF: predicated region fallthrough
CT: control target
= control target key end

     0   :  { %vm8_vm0 = vcmask 261120   ;;  %s40_s8 = smov 32   ;;  %s41_s9 = smov 64   ;;  %vm14_vm1 = vcmask 1048320   ;;  %vm20_vm2 = vcmask 785920   ;;  %vm26_vm3 = vcmask 523520   ;;  %s58_s0 = inlined_call_operand.vmem [shape: f32[4,32], index: 0, kind: input, shape index: {}]   ;;  %s59_s1 = inlined_call_operand.vmem [shape: f32[1,128], index: 1, kind: output, shape index: {}]  }
   0x1   :  { %v5_v0 = vld [vmem:[%s58_s0] sm:$0xf]  ;;  %s39_s0 = smov 96  }
   0x2   :  { %6 = vst [vmem:[#allocation1] sm:$0xf] %v5_v0 }
   0x9   :  { %v11_v1 = vld [vmem:[#allocation1 + $0x3] sm:$0x1]   ;;  %v23_v2 = vld [vmem:[#allocation1 + $0x1] sm:$0x1]   ;;  %v7_v3 = vld [vmem:[#allocation1] sm:$0x1]  }
   0xa   :  { %12 = vrot.lane.b32.xlu0 %v11_v1, %s39_s0  ;;  %24 = vrot.lane.b32.xlu1 %v23_v2, %s40_s8  ;;  %v17_v4 = vld [vmem:[#allocation1 + $0x2] sm:$0x1]   ;;  %9 = vst.msk [vmem:[#allocation0] sm:$0x1] %vm8_vm0, %v7_v3  }
   0xe   :  { %18 = vrot.lane.b32.xlu0 %v17_v4, %s41_s9 }
  0x7c   :  { %v13_v5 = vpop.permute.xlu0 %12   ;;  %v25_v6 = vpop.permute.xlu1 %24  }
  0x7d   :  { %15 = vst.msk [vmem:[#allocation0] sm:$0x1] %vm14_vm1, %v13_v5  }
  0x80   :  { %v19_v7 = vpop.permute.xlu0 %18  }
  0x81   :  { %21 = vst.msk [vmem:[#allocation0] sm:$0x1] %vm20_vm2, %v19_v7  }
  0x82   :  { %27 = vst.msk [vmem:[#allocation0] sm:$0x1] %vm26_vm3, %v25_v6  }
  0x89   :  { %v32_v8 = vld [vmem:[#allocation0] sm:$0x1] }
  0x8a   :  { %35 = vst [vmem:[%s59_s1] sm:$0x1] %v32_v8 }

// kernel: generator_forward.12
= control target key start
LH: loop header
LB: loop body
LE: loop exit
PB: predicated region body
PF: predicated region fallthrough
CT: control target
= control target key end

     0   :  { %s140_s0 = inlined_call_operand.vmem [shape: bf16[32,128], index: 0, kind: input, shape index: {}]   ;;  %s141_s1 = inlined_call_operand.vmem [shape: f32[1,128], index: 1, kind: input, shape index: {}]   ;;  %s142_s2 = inlined_call_operand.vmem [shape: f32[1,128], index: 2, kind: input, shape index: {}]   ;;  %s143_s3 = inlined_call_operand.vmem [shape: bf16[32,128], index: 3, kind: output, shape index: {}]  }
   0x1   :  { %v83_v0 = vld [vmem:[%s140_s0] sm:$0xff]   ;;  %v100_v4 = vld [vmem:[%s140_s0 + $0x8] sm:$0xff]  }
   0x2   :  { %v72_v1 = vld [vmem:[%s141_s1] ss:$0 sm:$0xff]  ;;  %v84_v2 = vunpack.c.l.bf16 %v83_v0  ;;  %v85_v3 = vunpack.c.h.bf16 %v83_v0  ;;  %v88_v6 = vunpack.c.l.bf16 %v100_v4  ;;  %v89_v7 = vunpack.c.h.bf16 %v100_v4 }
   0x3   :  { %v73_v5 = vld [vmem:[%s142_s2] ss:$0 sm:$0xff] }
   0x4   :  { %v29_v8 = vmul.f32 %v84_v2, %v72_v1  ;;  %v30_v9 = vmul.f32 %v85_v3, %v72_v1  ;;  %v31_v10 = vmul.f32 %v88_v6, %v72_v1  ;;  %v32_v11 = vmul.f32 %v89_v7, %v72_v1 }
   0x6   :  { %v40_v12 = vadd.f32 %v73_v5, %v29_v8  ;;  %v41_v13 = vadd.f32 %v73_v5, %v30_v9  ;;  %v42_v14 = vadd.f32 %v73_v5, %v31_v10  ;;  %v43_v15 = vadd.f32 %v73_v5, %v32_v11 }
   0x8   :  { %v44_v16 = vmax.f32 %v40_v12, 0.0  ;;  %v45_v17 = vmax.f32 %v41_v13, 0.0  ;;  %v46_v18 = vmax.f32 %v42_v14, 0.0  ;;  %v47_v19 = vmax.f32 %v43_v15, 0.0 }
   0xa   :  { %v93_v20 = vpack.c.bf16 %v45_v17, %v44_v16  ;;  %v98_v21 = vpack.c.bf16 %v47_v19, %v46_v18 }
   0xc   :  { %94 = vst [vmem:[%s143_s3] sm:$0xff] %v93_v20   ;;  %101 = vst [vmem:[%s143_s3 + $0x8] sm:$0xff] %v98_v21  }

// kernel: generator_forward.11
= control target key start
LH: loop header
LB: loop body
LE: loop exit
PB: predicated region body
PF: predicated region fallthrough
CT: control target
= control target key end

     0   :  { %s1015_s15 = smov 0   ;;  %s1208_s0 = inlined_call_operand.vmem [shape: bf16[2,24,192], index: 0, kind: input, shape index: {}]   ;;  %s1209_s1 = inlined_call_operand.vmem [shape: bf16[3,192,128], index: 1, kind: input, shape index: {}]   ;;  %s1210_s2 = inlined_call_operand.vmem [shape: bf16[2,16,128], index: 2, kind: output, shape index: {0}]   ;;  %s1211_s3 = inlined_call_operand.vmem [shape: f32[2,1,128], index: 3, kind: output, shape index: {1}]   ;;  %s1212_s4 = inlined_call_operand.vmem [shape: f32[2,1,128], index: 4, kind: output, shape index: {2}]  }
   0x1 LB: > { %s812_s16 = sadd.s32 4294967295, %s987_s15   ;;  %p816_p0 = scmp.ge.s32.totalorder %s987_s15, 1  ;;  %s987_s15 = sphi %s1015_s15, %s15_s15  }
   0x2   : > { %p167_p1 = scmp.lt.s32.totalorder %s987_s15, 3 }
   0x4   : > { %p168_p2 = pnand %p816_p0, %p167_p1 }
   0x5   : > { %p199_p3 = scmp.lt.s32.totalorder (!%p168_p2), %s812_s16, 1 }
   0x6   : > { %171 = sbr.rel (%p168_p2) target bundleno = 324 (0x144), region = 28 }
   0xb   : > { %v937_v0 = vld [vmem:[%s1209_s1 + $0x98] sm:$0xff]   ;;  %v989_v1 = vmov 0   ;;  %v939_v3 = vld [vmem:[%s1209_s1 + $0x90] sm:$0xff]   ;;  %v941_v5 = vld [vmem:[%s1209_s1 + $0x88] sm:$0xff]   ;;  %s1214_s16 = smov (!%p199_p3, %s812_s16), 1  ;;  %vm362_vm0 = vcmask 523264  }
   0xc   : > { %366 = vmatprep.subr.bf16.mxu0 %v989_v1  ;;  %488 = vmatprep.subr.bf16.mxu1 %v989_v1  ;;  %v938_v2 = vld [vmem:[%s1209_s1 + $0x38] sm:$0xff]   ;;  %v940_v4 = vld [vmem:[%s1209_s1 + $0x30] sm:$0xff]   ;;  %v942_v6 = vld [vmem:[%s1209_s1 + $0x28] sm:$0xff]   ;;  %s927_s11 = smul.u32 24, %s1214_s16  ;;  %vm282_vm1 = vcmask 1045504   ;;  %s919_s22 = sshll.u32 %s1214_s16, 3 }
   0xd   : > { %367 = vmatpush1.bf16.msra.mxu0 %v937_v0  ;;  %489 = vmatpush1.bf16.msra.mxu1 %v938_v2  ;;  %v943_v7 = vld [vmem:[%s1209_s1 + $0x80] sm:$0xff]   ;;  %v945_v9 = vld [vmem:[%s1209_s1 + $0x78] sm:$0xff]   ;;  %v947_v11 = vld [vmem:[%s1209_s1 + $0x70] sm:$0xff]   ;;  %s208_s25 = scalar_lea.vmem %s1210_s2, %s919_s22  ;;  %s211_s27 = scalar_lea.vmem %s1211_s3, %s1214_s16 }
   0xe   : > { %368 = vmatprep.subr.bf16.mxu0 %v989_v1  ;;  %490 = vmatprep.subr.bf16.mxu1 %v989_v1  ;;  %v944_v8 = vld [vmem:[%s1209_s1 + $0x20] sm:$0xff]   ;;  %v946_v10 = vld [vmem:[%s1209_s1 + $0x18] sm:$0xff]   ;;  %v948_v12 = vld [vmem:[%s1209_s1 + $0x10] sm:$0xff]   ;;  %s1077_s20 = scalar_lea.vmem %s1208_s0, %s927_s11  ;;  %s214_s30 = scalar_lea.vmem %s1212_s4, %s1214_s16 }
   0xf   : > { %v949_v13 = vld [vmem:[%s1209_s1 + $0x68] sm:$0xff]   ;;  %v242_v16 = vld [vmem:[%s1077_s20] sm:$0xcc]  ;;  %v243_v17 = vld [vmem:[%s1077_s20 + $0x10] sm:$0x33] }
  0x10   : > { %v950_v14 = vld [vmem:[%s1209_s1 + $0x8] sm:$0xff]   ;;  %v847_v19 = vcombine.high %v243_v17, %v243_v17  ;;  %v216_v20 = vld [vmem:[%s1077_s20] sm:$0xff]  ;;  %v953_v27 = vld [vmem:[%s1209_s1 + $0xb8] sm:$0xff]   ;;  %v846_v33 = vcombine.low %v243_v17, %v243_v17 }
  0x11   : > { %369 = vmatpush1.bf16.msra.mxu0 %v939_v3  ;;  %491 = vmatpush1.bf16.msra.mxu1 %v940_v4  ;;  %v1088_v15 = vld [vmem:[%s1077_s20 + $0x8] sm:$0xff]  ;;  %v951_v21 = vld [vmem:[%s1209_s1 + $0x60] sm:$0xff]   ;;  %v954_v28 = vld [vmem:[%s1209_s1 + $0x58] sm:$0xff]  }
  0x12   : > { %370 = vmatprep.subr.bf16.mxu0 %v989_v1  ;;  %492 = vmatprep.subr.bf16.mxu1 %v989_v1  ;;  %v845_v18 = vcombine.high %v242_v16, %v1088_v15  ;;  %v862_v22 = vcombine.high %v216_v20, %v1088_v15  ;;  %v952_v23 = vld [vmem:[%s1209_s1] sm:$0xff]   ;;  %v287_v25 = vrot.slane %v847_v19, 2  ;;  %v955_v29 = vld [vmem:[%s1209_s1 + $0xb0] sm:$0xff]   ;;  %v957_v31 = vld [vmem:[%s1209_s1 + $0xa8] sm:$0xff]   ;;  %v844_v32 = vcombine.low %v242_v16, %v1088_v15 }
  0x13   : > { %v956_v30 = vld [vmem:[%s1209_s1 + $0x50] sm:$0xff]   ;;  %v958_v34 = vld [vmem:[%s1209_s1 + $0x48] sm:$0xff]   ;;  %v959_v35 = vld [vmem:[%s1209_s1 + $0xa0] sm:$0xff]   ;;  %v284_v37 = vrot.slane %v846_v33, 2  ;;  %v861_v40 = vcombine.low %v216_v20, %v1088_v15 }
  0x14   : > { %v286_v24 = vrot.slane %v845_v18, 2  ;;  %875 = vmatprep.mubr.msk.bf16.mxu1 %vm362_vm0, %v862_v22  ;;  %v283_v36 = vrot.slane %v844_v32, 2  ;;  %v960_v38 = vld [vmem:[%s1209_s1 + $0x40] sm:$0xff]   ;;  %v529_v39 = vld [vmem:[%s1077_s20 + $0x10] sm:$0xff]  ;;  %v967_v42 = vld [vmem:[%s1209_s1 + $0xf8] sm:$0xff]  }
  0x15   : > { %371 = vmatpush1.bf16.msra.mxu0 %v941_v5  ;;  %493 = vmatpush1.bf16.msra.mxu1 %v942_v6  ;;  %v901_v43 = vcombine.high %v1088_v15, %v529_v39  ;;  %v968_v44 = vld [vmem:[%s1209_s1 + $0xf0] sm:$0xff]   ;;  %v969_v45 = vld [vmem:[%s1209_s1 + $0xe8] sm:$0xff]   ;;  %v970_v46 = vld [vmem:[%s1209_s1 + $0xe0] sm:$0xff]   ;;  %v900_v55 = vcombine.low %v1088_v15, %v529_v39 }
  0x16   : > { %372 = vmatprep.subr.bf16.mxu0 %v989_v1  ;;  %494 = vmatprep.subr.bf16.mxu1 %v989_v1  ;;  %v288_v26 = vsel %vm282_vm1, %v286_v24, %v287_v25  ;;  %v285_v41 = vsel %vm282_vm1, %v283_v36, %v284_v37  ;;  %v971_v47 = vld [vmem:[%s1209_s1 + $0xd8] sm:$0xff]   ;;  %v972_v48 = vld [vmem:[%s1209_s1 + $0xd0] sm:$0xff]   ;;  %v973_v49 = vld [vmem:[%s1209_s1 + $0xc8] sm:$0xff]  }
  0x17   : > { %860 = vmatprep.mubr.msk.bf16.mxu0 %vm362_vm0, %v288_v26  ;;  %v974_v50 = vld [vmem:[%s1209_s1 + $0xc0] sm:$0xff]   ;;  %v975_v51 = vld [vmem:[%s1209_s1 + $0x118] sm:$0xff]   ;;  %v976_v52 = vld [vmem:[%s1209_s1 + $0x110] sm:$0xff]  }
  0x18   : > { %v977_v53 = vld [vmem:[%s1209_s1 + $0x108] sm:$0xff]   ;;  %v978_v54 = vld [vmem:[%s1209_s1 + $0x100] sm:$0xff]  }
  0x19   : > { %373 = vmatpush1.bf16.msra.mxu0 %v943_v7  ;;  %495 = vmatpush1.bf16.msra.mxu1 %v944_v8 }
  0x1a   : > { %374 = vmatprep.subr.bf16.mxu0 %v989_v1  ;;  %496 = vmatprep.subr.bf16.mxu1 %v989_v1 }
  0x1d   : > { %375 = vmatpush1.bf16.msra.mxu0 %v945_v9  ;;  %497 = vmatpush1.bf16.msra.mxu1 %v946_v10 }
  0x1e   : > { %376 = vmatprep.subr.bf16.mxu0 %v989_v1  ;;  %498 = vmatprep.subr.bf16.mxu1 %v989_v1 }
  0x21   : > { %377 = vmatpush1.bf16.msra.mxu0 %v947_v11  ;;  %499 = vmatpush1.bf16.msra.mxu1 %v948_v12 }
  0x22   : > { %378 = vmatprep.subr.bf16.mxu0 %v989_v1  ;;  %500 = vmatprep.subr.bf16.mxu1 %v989_v1 }
  0x25   : > { %379 = vmatpush1.bf16.msra.mxu0 %v949_v13  ;;  %501 = vmatpush1.bf16.msra.mxu1 %v950_v14 }
  0x26   : > { %380 = vmatprep.subr.bf16.mxu0 %v989_v1  ;;  %502 = vmatprep.subr.bf16.mxu1 %v989_v1 }
  0x29   : > { %381 = vmatpush1.bf16.msra.mxu0 %v951_v21  ;;  %503 = vmatpush1.bf16.msra.mxu1 %v952_v23 }
  0x2a   : > { %390 = vmatprep.subr.bf16.mxu0 %v989_v1  ;;  %512 = vmatprep.subr.bf16.mxu1 %v989_v1 }
  0x2d   : > { %391 = vmatpush2.bf16.msra.mxu0 %v953_v27  ;;  %513 = vmatpush2.bf16.msra.mxu1 %v954_v28 }
  0x2e   : > { %392 = vmatprep.subr.bf16.mxu0 %v989_v1  ;;  %514 = vmatprep.subr.bf16.mxu1 %v989_v1 }
  0x31   : > { %393 = vmatpush2.bf16.msra.mxu0 %v955_v29  ;;  %515 = vmatpush2.bf16.msra.mxu1 %v956_v30 }
  0x32   : > { %394 = vmatprep.subr.bf16.mxu0 %v989_v1  ;;  %516 = vmatprep.subr.bf16.mxu1 %v989_v1 }
  0x35   : > { %395 = vmatpush2.bf16.msra.mxu0 %v957_v31  ;;  %517 = vmatpush2.bf16.msra.mxu1 %v958_v34 }
  0x36   : > { %396 = vmatprep.subr.bf16.mxu0 %v989_v1  ;;  %518 = vmatprep.subr.bf16.mxu1 %v989_v1 }
  0x39   : > { %397 = vmatpush2.bf16.msra.mxu0 %v959_v35  ;;  %519 = vmatpush2.bf16.msra.mxu1 %v960_v38 }
  0x3a   : > { %636 = vmatprep.subr.bf16.mxu0 %v989_v1 }
  0x3c   : > { %399 = vmatmul.mubr.bf16.vlgmr.msra.gmra.mxu0 %v285_v41  ;;  %521 = vmatmul.mubr.bf16.vlgmr.msra.gmra.mxu1 %v861_v40 }
  0x3d   : > { %637 = vmatpush1.bf16.msra.mxu0 %v967_v42  ;;  %914 = vmatprep.mubr.msk.bf16.mxu0 %vm362_vm0, %v901_v43 }
  0x3e   : > { %638 = vmatprep.subr.bf16.mxu0 %v989_v1 }
  0x41   : > { %639 = vmatpush1.bf16.msra.mxu0 %v968_v44 }
  0x42   : > { %640 = vmatprep.subr.bf16.mxu0 %v989_v1 }
  0x45   : > { %641 = vmatpush1.bf16.msra.mxu0 %v969_v45 }
  0x46   : > { %642 = vmatprep.subr.bf16.mxu0 %v989_v1 }
  0x49   : > { %643 = vmatpush1.bf16.msra.mxu0 %v970_v46 }
  0x4a   : > { %644 = vmatprep.subr.bf16.mxu0 %v989_v1 }
  0x4d   : > { %645 = vmatpush1.bf16.msra.mxu0 %v971_v47 }
  0x4e   : > { %646 = vmatprep.subr.bf16.mxu0 %v989_v1 }
  0x51   : > { %647 = vmatpush1.bf16.msra.mxu0 %v972_v48 }
  0x52   : > { %648 = vmatprep.subr.bf16.mxu0 %v989_v1 }
  0x55   : > { %649 = vmatpush1.bf16.msra.mxu0 %v973_v49 }
  0x56   : > { %650 = vmatprep.subr.bf16.mxu0 %v989_v1 }
  0x59   : > { %651 = vmatpush1.bf16.msra.mxu0 %v974_v50 }
  0x5a   : > { %660 = vmatprep.subr.bf16.mxu0 %v989_v1 }
  0x5d   : > { %661 = vmatpush2.bf16.msra.mxu0 %v975_v51 }
  0x5e   : > { %662 = vmatprep.subr.bf16.mxu0 %v989_v1 }
  0x61   : > { %663 = vmatpush2.bf16.msra.mxu0 %v976_v52 }
  0x62   : > { %664 = vmatprep.subr.bf16.mxu0 %v989_v1 }
  0x65   : > { %665 = vmatpush2.bf16.msra.mxu0 %v977_v53 }
  0x66   : > { %666 = vmatprep.subr.bf16.mxu0 %v989_v1 }
  0x69   : > { %667 = vmatpush2.bf16.msra.mxu0 %v978_v54 }
  0x6c   : > { %669 = vmatmul.mubr.bf16.vlgmr.msra.gmra.mxu0 %v900_v55 }
  0xfc   : > { %v400_v56 = vpop.f32.mrf.mxu0  ;;  %v522_v57 = vpop.f32.mrf.mxu1 }
  0xfd   : > { %v523_v2 = vadd.f32 %v522_v57, %v400_v56 }
  0xfe   : > { %v402_v58 = vpop.f32.mrf.mxu0  ;;  %v524_v59 = vpop.f32.mrf.mxu1 }
 0x100   : > { %v403_v60 = vpop.f32.mrf.mxu0  ;;  %v525_v61 = vpop.f32.mrf.mxu1 }
 0x101   : > { %v526_v4 = vadd.f32 %v525_v61, %v403_v60 }
 0x102   : > { %v405_v62 = vpop.f32.mrf.mxu0  ;;  %v527_v63 = vpop.f32.mrf.mxu1 }
 0x12c   : > { %v670_v0 = vpop.f32.mrf.mxu0 }
 0x12d   : > { %v677_v5 = vadd.f32 %v670_v0, %v523_v2 }
 0x12e   : > { %v672_v3 = vpop.f32.mrf.mxu0 }
 0x12f   : > { %v697_v8 = vmul.f32 %v677_v5, %v677_v5 }
 0x130   : > { %v673_v1 = vpop.f32.mrf.mxu0 }
 0x131   : > { %v678_v6 = vadd.f32 %v673_v1, %v526_v4 }
 0x132   : > { %v675_v7 = vpop.f32.mrf.mxu0 }
 0x133   : > { %v925_v9 = vpack.c.bf16 %v678_v6, %v677_v5  ;;  %v689_v10 = vadd.f32 %v678_v6, %v677_v5  ;;  %v698_v11 = vmul.f32 %v678_v6, %v678_v6 }
 0x135   : > { %926 = vst [vmem:[%s208_s25] sm:$0xff] %v925_v9   ;;  %v690_v12 = vrot.slane %v689_v10, 4  ;;  %v699_v13 = vadd.f32 %v698_v11, %v697_v8 }
 0x137   : > { %v691_v14 = vadd.f32 %v690_v12, %v689_v10  ;;  %v700_v15 = vrot.slane %v699_v13, 4 }
 0x139   : > { %v692_v16 = vrot.slane %v691_v14, 2  ;;  %v701_v17 = vadd.f32 %v700_v15, %v699_v13 }
 0x13b   : > { %v693_v18 = vadd.f32 %v692_v16, %v691_v14  ;;  %v702_v19 = vrot.slane %v701_v17, 2 }
 0x13d   : > { %v694_v20 = vrot.slane %v693_v18, 1  ;;  %v703_v21 = vadd.f32 %v702_v19, %v701_v17 }
 0x13f   : > { %v695_v22 = vadd.f32 %v694_v20, %v693_v18  ;;  %v704_v23 = vrot.slane %v703_v21, 1 }
 0x141   : > { %696 = vst [vmem:[%s211_s27] sm:$0x1] %v695_v22  ;;  %v705_v24 = vadd.f32 %v704_v23, %v703_v21 }
 0x143   : > { %706 = vst [vmem:[%s214_s30] sm:$0x1] %v705_v24 }
 0x144 PF: > { %s15_s15 = sadd.s32 1, %s987_s15  }
 0x145   : > { %p12_p4 = scmp.ge.s32.totalorder %s15_s15, 4  }
 0x147   :  { %14 = sbr.rel (!%p12_p4) target bundleno = 1 (0x1), region = 84 }

// kernel: tile.83
= control target key start
LH: loop header
LB: loop body
LE: loop exit
PB: predicated region body
PF: predicated region fallthrough
CT: control target
= control target key end

     0   :  { %s22_s0 = inlined_call_operand.vmem [shape: f32[16], index: 0, kind: input, shape index: {}]   ;;  %s23_s1 = inlined_call_operand.vmem [shape: f32[4,16], index: 1, kind: output, shape index: {}]  }
   0x1   :  { %v4_v0 = vld [vmem:[%s22_s0] ss:$0 sm:$0xff] }
   0x2   :  { %5 = vst [vmem:[%s23_s1] sm:$0xf] %v4_v0 }

// kernel: tile.91
= control target key start
LH: loop header
LB: loop body
LE: loop exit
PB: predicated region body
PF: predicated region fallthrough
CT: control target
= control target key end

     0   :  { %vm8_vm0 = vcmask 130048   ;;  %s40_s8 = smov 16   ;;  %s41_s9 = smov 32   ;;  %vm14_vm1 = vcmask 523648   ;;  %vm20_vm2 = vcmask 392448   ;;  %vm26_vm3 = vcmask 261248   ;;  %s58_s0 = inlined_call_operand.vmem [shape: f32[4,16], index: 0, kind: input, shape index: {}]   ;;  %s59_s1 = inlined_call_operand.vmem [shape: f32[64], index: 1, kind: output, shape index: {}]  }
   0x1   :  { %v5_v0 = vld [vmem:[%s58_s0] sm:$0xf]  ;;  %s39_s0 = smov 48  }
   0x2   :  { %6 = vst [vmem:[#allocation1] sm:$0xf] %v5_v0 }
   0x9   :  { %v11_v1 = vld [vmem:[#allocation1 + $0x3] sm:$0x1]   ;;  %v23_v2 = vld [vmem:[#allocation1 + $0x1] sm:$0x1]   ;;  %v7_v3 = vld [vmem:[#allocation1] sm:$0x1]  }
   0xa   :  { %12 = vrot.lane.b32.xlu0 %v11_v1, %s39_s0  ;;  %24 = vrot.lane.b32.xlu1 %v23_v2, %s40_s8  ;;  %v17_v4 = vld [vmem:[#allocation1 + $0x2] sm:$0x1]   ;;  %9 = vst.msk [vmem:[#allocation0] sm:$0x1] %vm8_vm0, %v7_v3  }
   0xe   :  { %18 = vrot.lane.b32.xlu0 %v17_v4, %s41_s9 }
  0x7c   :  { %v13_v5 = vpop.permute.xlu0 %12   ;;  %v25_v6 = vpop.permute.xlu1 %24  }
  0x7d   :  { %15 = vst.msk [vmem:[#allocation0] sm:$0x1] %vm14_vm1, %v13_v5  }
  0x80   :  { %v19_v7 = vpop.permute.xlu0 %18  }
  0x81   :  { %21 = vst.msk [vmem:[#allocation0] sm:$0x1] %vm20_vm2, %v19_v7  }
  0x82   :  { %27 = vst.msk [vmem:[#allocation0] sm:$0x1] %vm26_vm3, %v25_v6  }
  0x89   :  { %v32_v8 = vld [vmem:[#allocation0] sm:$0x1] }
  0x8a   :  { %35 = vst [vmem:[%s59_s1] sm:$0x1] %v32_v8 }

// kernel: generator_forward.13
= control target key start
LH: loop header
LB: loop body
LE: loop exit
PB: predicated region body
PF: predicated region fallthrough
CT: control target
= control target key end

     0   :  { %s1132_s15 = smov 0   ;;  %s1276_s0 = inlined_call_operand.vmem [shape: bf16[2,80,96], index: 0, kind: input, shape index: {}]   ;;  %s1277_s1 = inlined_call_operand.vmem [shape: bf16[3,96,64], index: 1, kind: input, shape index: {}]   ;;  %s1278_s2 = inlined_call_operand.vmem [shape: bf16[2,64,64], index: 2, kind: output, shape index: {0}]   ;;  %s1279_s3 = inlined_call_operand.vmem [shape: f32[2,1,64], index: 3, kind: output, shape index: {1}]   ;;  %s1280_s4 = inlined_call_operand.vmem [shape: f32[2,1,64], index: 4, kind: output, shape index: {2}]  }
   0x1 LB: > { %s865_s16 = sadd.s32 4294967295, %s1105_s15   ;;  %p869_p0 = scmp.ge.s32.totalorder %s1105_s15, 1  ;;  %s1105_s15 = sphi %s1132_s15, %s15_s15  }
   0x2   : > { %p167_p1 = scmp.lt.s32.totalorder %s1105_s15, 3 }
   0x4   : > { %p168_p2 = pnand %p869_p0, %p167_p1 }
   0x5   : > { %p199_p3 = scmp.lt.s32.totalorder (!%p168_p2), %s865_s16, 1 }
   0x6   : > { %171 = sbr.rel (%p168_p2) target bundleno = 291 (0x123), region = 28 }
   0xb   : > { %v1069_v0 = vld [vmem:[%s1277_s1 + $0x58] sm:$0xff]   ;;  %v1070_v1 = vld [vmem:[%s1277_s1 + $0x28] sm:$0xff]   ;;  %v1071_v2 = vld [vmem:[%s1277_s1 + $0x50] sm:$0xff]   ;;  %s1282_s16 = smov (!%p199_p3, %s865_s16), 1  ;;  %vm306_vm0 = vcmask 785408   ;;  %vm697_vm1 = vcmask 519168  }
   0xc   : > { %988 = vmatprep.subr.bf16.mxu0 %v1069_v0  ;;  %1008 = vmatprep.subr.bf16.mxu1 %v1070_v1  ;;  %v1072_v3 = vld [vmem:[%s1277_s1 + $0x20] sm:$0xff]   ;;  %v1073_v4 = vld [vmem:[%s1277_s1 + $0x48] sm:$0xff]   ;;  %v1074_v5 = vld [vmem:[%s1277_s1 + $0x18] sm:$0xff]   ;;  %s1060_s29 = smul.u32 40, %s1282_s16  ;;  %s949_s7 = sshll.u32 %s1282_s16, 5  ;;  %vm706_vm2 = vcmask 523264  }
   0xd   : > { %989 = vmatpush3.bf16.msra.mxu0 %v1069_v0  ;;  %1009 = vmatpush3.bf16.msra.mxu1 %v1070_v1  ;;  %v1075_v6 = vld [vmem:[%s1277_s1 + $0x40] sm:$0xff]   ;;  %v1076_v7 = vld [vmem:[%s1277_s1 + $0x10] sm:$0xff]   ;;  %v1077_v8 = vld [vmem:[%s1277_s1 + $0x38] sm:$0xff]   ;;  %s211_s13 = scalar_lea.vmem %s1279_s3, %s1282_s16  ;;  %vm728_vm3 = vcmask 516096   ;;  %s214_s18 = scalar_lea.vmem %s1280_s4, %s1282_s16 }
   0xe   : > { %990 = vmatprep.subr.bf16.mxu0 %v1071_v2  ;;  %1010 = vmatprep.subr.bf16.mxu1 %v1072_v3  ;;  %s1170_s10 = scalar_lea.vmem %s1276_s0, %s1060_s29  ;;  %v1078_v11 = vld [vmem:[%s1277_s1 + $0x8] sm:$0xff]   ;;  %v1079_v15 = vld [vmem:[%s1277_s1 + $0x30] sm:$0xff]   ;;  %v1080_v16 = vld [vmem:[%s1277_s1] sm:$0xff]  }
   0xf   : > { %v217_v9 = vld [vmem:[%s1170_s10 + $0x4] sm:$0xf]  ;;  %v218_v10 = vld [vmem:[%s1170_s10 + $0x8] sm:$0xf]  ;;  %v216_v13 = vld [vmem:[%s1170_s10] sm:$0xf] }
  0x10   : > { %v885_v12 = vcombine.low %v217_v9, %v218_v10  ;;  %v899_v14 = vcombine.low %v216_v13, %v217_v9  ;;  %v219_v17 = vld [vmem:[%s1170_s10 + $0xc] sm:$0xf]  ;;  %v220_v18 = vld [vmem:[%s1170_s10 + $0x10] sm:$0xf]  ;;  %v221_v20 = vld [vmem:[%s1170_s10 + $0x14] sm:$0xf] }
  0x11   : > { %991 = vmatpush3.bf16.msra.mxu0 %v1071_v2  ;;  %1011 = vmatpush3.bf16.msra.mxu1 %v1072_v3  ;;  %v1085_v19 = vld [vmem:[%s1277_s1 + $0x88] sm:$0xff]   ;;  %v886_v21 = vcombine.low %v219_v17, %v220_v18  ;;  %v222_v22 = vld [vmem:[%s1170_s10 + $0x18] sm:$0xf]  ;;  %v900_v23 = vcombine.low %v218_v10, %v219_v17  ;;  %v1086_v24 = vld [vmem:[%s1277_s1 + $0x80] sm:$0xff]   ;;  %v901_v26 = vcombine.low %v220_v18, %v221_v20 }
  0x12   : > { %992 = vmatprep.subr.bf16.mxu0 %v1073_v4  ;;  %1012 = vmatprep.subr.bf16.mxu1 %v1074_v5  ;;  %v887_v25 = vcombine.low %v221_v20, %v222_v22  ;;  %v223_v27 = vld [vmem:[%s1170_s10 + $0x1c] sm:$0xf]  ;;  %v236_v28 = vld [vmem:[%s1170_s10 + $0x20] sm:$0xf]  ;;  %v1092_v32 = vld [vmem:[%s1277_s1 + $0x70] sm:$0xff]  }
  0x13   : > { %1000 = vmatprep.mubr.msk.bf16.mxu0 %vm306_vm0, %v885_v12  ;;  %1020 = vmatprep.mubr.msk.bf16.mxu1 %vm306_vm0, %v899_v14  ;;  %v1087_v29 = vld [vmem:[%s1277_s1 + $0x78] sm:$0xff]   ;;  %v888_v30 = vcombine.low %v223_v27, %v236_v28  ;;  %v902_v31 = vcombine.low %v222_v22, %v223_v27  ;;  %v1095_v33 = vld [vmem:[%s1170_s10 + $0x8] sm:$0xff]   ;;  %v1094_v36 = vld [vmem:[%s1277_s1 + $0x60] sm:$0xff]  }
  0x14   : > { %v1096_v34 = vld [vmem:[%s1170_s10 + $0x18] sm:$0xff]   ;;  %v1093_v35 = vld [vmem:[%s1277_s1 + $0x68] sm:$0xff]   ;;  %v1097_v37 = vld [vmem:[%s1170_s10 + $0x10] sm:$0xff]  }
  0x15   : > { %993 = vmatpush3.bf16.msra.mxu0 %v1073_v4  ;;  %1013 = vmatpush3.bf16.msra.mxu1 %v1074_v5  ;;  %v1098_v38 = vld [vmem:[%s1170_s10 + $0x20] sm:$0xff]   ;;  %s1231_s10 = scalar_lea.vmem %s1278_s2, %s949_s7 }
  0x16   : > { %994 = vmatprep.subr.bf16.mxu0 %v1075_v6  ;;  %1014 = vmatprep.subr.bf16.mxu1 %v1076_v7 }
  0x19   : > { %995 = vmatpush3.bf16.msra.mxu0 %v1075_v6  ;;  %1015 = vmatpush3.bf16.msra.mxu1 %v1076_v7 }
  0x1a   : > { %996 = vmatprep.subr.bf16.mxu0 %v1077_v8  ;;  %1016 = vmatprep.subr.bf16.mxu1 %v1078_v11 }
  0x1d   : > { %997 = vmatpush3.bf16.msra.mxu0 %v1077_v8  ;;  %1017 = vmatpush3.bf16.msra.mxu1 %v1078_v11 }
  0x1e   : > { %998 = vmatprep.subr.bf16.mxu0 %v1079_v15  ;;  %1018 = vmatprep.subr.bf16.mxu1 %v1080_v16 }
  0x21   : > { %999 = vmatpush3.bf16.msra.mxu0 %v1079_v15  ;;  %1019 = vmatpush3.bf16.msra.mxu1 %v1080_v16 }
  0x22   : > { %1028 = vmatprep.subr.bf16.mxu0 %v1085_v19  ;;  %1048 = vmatprep.subr.bf16.mxu1 %v1085_v19 }
  0x24   : > { %1001 = vmatmul.mubr.msk.bf16.vlgmr.msra.gmra.mxu0 %vm306_vm0, %v886_v21  ;;  %1021 = vmatmul.mubr.msk.bf16.vlgmr.msra.gmra.mxu1 %vm306_vm0, %v900_v23 }
  0x25   : > { %1029 = vmatpush3.bf16.msra.mxu0 %v1085_v19  ;;  %1054 = vmatpush3.bf16.msra.mxu1 %v1085_v19 }
  0x26   : > { %1030 = vmatprep.subr.bf16.mxu0 %v1086_v24  ;;  %1049 = vmatprep.subr.bf16.mxu1 %v1086_v24 }
  0x27   : > { %1004 = vmatprep.mubr.msk.bf16.mxu0 %vm306_vm0, %v887_v25  ;;  %1024 = vmatprep.mubr.msk.bf16.mxu1 %vm306_vm0, %v901_v26 }
  0x29   : > { %1031 = vmatpush3.bf16.msra.mxu0 %v1086_v24  ;;  %1055 = vmatpush3.bf16.msra.mxu1 %v1086_v24 }
  0x2a   : > { %1032 = vmatprep.subr.bf16.mxu0 %v1087_v29  ;;  %1050 = vmatprep.subr.bf16.mxu1 %v1087_v29 }
  0x2c   : > { %1005 = vmatmul.mubr.msk.bf16.gmra.mxu0 %vm306_vm0, %v888_v30  ;;  %1025 = vmatmul.mubr.msk.bf16.gmra.mxu1 %vm306_vm0, %v902_v31 }
  0x2d   : > { %1033 = vmatpush3.bf16.msra.mxu0 %v1087_v29  ;;  %1056 = vmatpush3.bf16.msra.mxu1 %v1087_v29 }
  0x2e   : > { %1034 = vmatprep.subr.bf16.mxu0 %v1092_v32  ;;  %1051 = vmatprep.subr.bf16.mxu1 %v1092_v32 }
  0x2f   : > { %1040 = vmatprep.mubr.msk.bf16.mxu0 %vm306_vm0, %v1095_v33  ;;  %1044 = vmatprep.mubr.msk.bf16.mxu1 %vm306_vm0, %v1096_v34 }
  0x31   : > { %1035 = vmatpush3.bf16.msra.mxu0 %v1092_v32  ;;  %1057 = vmatpush3.bf16.msra.mxu1 %v1092_v32 }
  0x32   : > { %1036 = vmatprep.subr.bf16.mxu0 %v1093_v35  ;;  %1052 = vmatprep.subr.bf16.mxu1 %v1093_v35 }
  0x35   : > { %1037 = vmatpush3.bf16.msra.mxu0 %v1093_v35  ;;  %1058 = vmatpush3.bf16.msra.mxu1 %v1093_v35 }
  0x36   : > { %1038 = vmatprep.subr.bf16.mxu0 %v1094_v36  ;;  %1053 = vmatprep.subr.bf16.mxu1 %v1094_v36 }
  0x39   : > { %1039 = vmatpush3.bf16.msra.mxu0 %v1094_v36  ;;  %1059 = vmatpush3.bf16.msra.mxu1 %v1094_v36 }
  0x3c   : > { %1041 = vmatmul.mubr.msk.bf16.vlgmr.msra.gmra.mxu0 %vm306_vm0, %v1097_v37  ;;  %1045 = vmatmul.mubr.msk.bf16.vlgmr.msra.gmra.mxu1 %vm306_vm0, %v1098_v38 }
  0xe4   : > { %v1002_v39 = vpop.f32.mrf.mxu0  ;;  %v1022_v40 = vpop.f32.mrf.mxu1 }
  0xe5   : > { %v481_v54 = vadd.f32 %v1022_v40, %v1002_v39 }
  0xe6   : > { %v353_v41 = vpop.f32.mrf.mxu0  ;;  %v472_v42 = vpop.f32.mrf.mxu1 }
  0xe7   : > { %v473_v58 = vadd.f32 %v472_v42, %v353_v41 }
  0xe8   : > { %v1003_v43 = vpop.f32.mrf.mxu0  ;;  %v1023_v44 = vpop.f32.mrf.mxu1 }
  0xe9   : > { %v484_v6 = vadd.f32 %v1023_v44, %v1003_v43 }
  0xea   : > { %v356_v45 = vpop.f32.mrf.mxu0  ;;  %v475_v46 = vpop.f32.mrf.mxu1 }
  0xeb   : > { %v476_v7 = vadd.f32 %v475_v46, %v356_v45 }
  0xec   : > { %v1006_v47 = vpop.f32.mrf.mxu0  ;;  %v1026_v48 = vpop.f32.mrf.mxu1 }
  0xed   : > { %v497_v56 = vadd.f32 %v1026_v48, %v1006_v47 }
  0xee   : > { %v369_v49 = vpop.f32.mrf.mxu0  ;;  %v488_v50 = vpop.f32.mrf.mxu1 }
  0xef   : > { %v489_v61 = vadd.f32 %v488_v50, %v369_v49 }
  0xf0   : > { %v1007_v51 = vpop.f32.mrf.mxu0  ;;  %v1027_v52 = vpop.f32.mrf.mxu1 }
  0xf1   : > { %v500_v8 = vadd.f32 %v1027_v52, %v1007_v51 }
  0xf2   : > { %v372_v53 = vpop.f32.mrf.mxu0  ;;  %v491_v55 = vpop.f32.mrf.mxu1 }
  0xf3   : > { %v492_v11 = vadd.f32 %v491_v55, %v372_v53 }
  0xfc   : > { %v1042_v57 = vpop.f32.mrf.mxu0  ;;  %v1046_v60 = vpop.f32.mrf.mxu1 }
  0xfd   : > { %v659_v59 = vadd.f32 %v1042_v57, %v481_v54  ;;  %v663_v62 = vadd.f32 %v1046_v60, %v497_v56 }
  0xfe   : > { %v626_v63 = vpop.f32.mrf.mxu0  ;;  %v642_v2 = vpop.f32.mrf.mxu1 }
  0xff   : > { %v952_v0 = vpack.c.bf16 %v659_v59, %v659_v59  ;;  %v657_v1 = vadd.f32 %v626_v63, %v473_v58  ;;  %v956_v3 = vpack.c.bf16 %v663_v62, %v663_v62  ;;  %v661_v4 = vadd.f32 %v642_v2, %v489_v61 }
 0x100   : > { %v1043_v5 = vpop.f32.mrf.mxu0  ;;  %v1047_v10 = vpop.f32.mrf.mxu1  ;;  %v732_v25 = vmul.f32 %v659_v59, %v659_v59  ;;  %v710_v29 = vsel %vm706_vm2, %v659_v59, 0.0  ;;  %v736_v46 = vmul.f32 %v663_v62, %v663_v62  ;;  %v718_v49 = vsel %vm706_vm2, %v663_v62, 0.0 }
 0x101   : > { %700 = vst.msk [vmem:[%s1231_s10 + $0x8] sm:$0xf] %vm697_vm1, %v952_v0  ;;  %v950_v9 = vpack.c.bf16 %v657_v1, %v657_v1  ;;  %704 = vst.msk [vmem:[%s1231_s10 + $0x18] sm:$0xf] %vm697_vm1, %v956_v3  ;;  %v954_v12 = vpack.c.bf16 %v661_v4, %v661_v4  ;;  %v660_v14 = vadd.f32 %v1043_v5, %v484_v6  ;;  %v707_v22 = vsel %vm706_vm2, %v657_v1, 0.0 }
 0x102   : > { %v629_v13 = vpop.f32.mrf.mxu0  ;;  %v664_v15 = vadd.f32 %v1047_v10, %v500_v8  ;;  %v645_v17 = vpop.f32.mrf.mxu1  ;;  %v730_v19 = vmul.f32 %v657_v1, %v657_v1  ;;  %v741_v36 = vsel %vm706_vm2, %v732_v25, 0.0  ;;  %v734_v37 = vmul.f32 %v661_v4, %v661_v4 }
 0x103   : > { %698 = vst.msk [vmem:[%s1231_s10] sm:$0xf] %vm697_vm1, %v950_v9  ;;  %v658_v16 = vadd.f32 %v629_v13, %v476_v7  ;;  %702 = vst.msk [vmem:[%s1231_s10 + $0x10] sm:$0xf] %vm697_vm1, %v954_v12  ;;  %v662_v18 = vadd.f32 %v645_v17, %v492_v11  ;;  %v953_v20 = vpack.c.bf16 %v660_v14, %v660_v14  ;;  %v712_v34 = vsel %vm706_vm2, %v660_v14, 0.0 }
 0x104   : > { %v957_v21 = vpack.c.bf16 %v664_v15, %v664_v15  ;;  %v738_v30 = vsel %vm706_vm2, %v730_v19, 0.0  ;;  %v733_v31 = vmul.f32 %v660_v14, %v660_v14  ;;  %v714_v39 = vsel %vm706_vm2, %v661_v4, 0.0 }
 0x105   : > { %v951_v23 = vpack.c.bf16 %v658_v16, %v658_v16  ;;  %v708_v24 = vsel %vm706_vm2, %v658_v16, 0.0  ;;  %701 = vst.msk [vmem:[%s1231_s10 + $0xc] sm:$0xf] %vm697_vm1, %v953_v20  ;;  %v731_v27 = vmul.f32 %v658_v16, %v658_v16  ;;  %v955_v28 = vpack.c.bf16 %v662_v18, %v662_v18 }
 0x106   : > { %705 = vst.msk [vmem:[%s1231_s10 + $0x1c] sm:$0xf] %vm697_vm1, %v957_v21  ;;  %v709_v26 = vadd.f32 %v708_v24, %v707_v22  ;;  %v743_v41 = vsel %vm706_vm2, %v733_v31, 0.0  ;;  %v735_v43 = vmul.f32 %v662_v18, %v662_v18  ;;  %v716_v44 = vsel %vm706_vm2, %v662_v18, 0.0 }
 0x107   : > { %699 = vst.msk [vmem:[%s1231_s10 + $0x4] sm:$0xf] %vm697_vm1, %v951_v23  ;;  %v739_v33 = vsel %vm706_vm2, %v731_v27, 0.0  ;;  %703 = vst.msk [vmem:[%s1231_s10 + $0x14] sm:$0xf] %vm697_vm1, %v955_v28  ;;  %v745_v47 = vsel %vm706_vm2, %v734_v37, 0.0  ;;  %v737_v51 = vmul.f32 %v664_v15, %v664_v15 }
 0x108   : > { %v711_v32 = vadd.f32 %v710_v29, %v709_v26  ;;  %v740_v35 = vadd.f32 %v739_v33, %v738_v30  ;;  %v747_v53 = vsel %vm706_vm2, %v735_v43, 0.0  ;;  %v720_v54 = vsel %vm706_vm2, %v664_v15, 0.0 }
 0x109   : > { %v749_v56 = vsel %vm706_vm2, %v736_v46, 0.0  ;;  %v751_v59 = vsel %vm706_vm2, %v737_v51, 0.0 }
 0x10a   : > { %v713_v38 = vadd.f32 %v712_v34, %v711_v32  ;;  %v742_v40 = vadd.f32 %v741_v36, %v740_v35 }
 0x10c   : > { %v715_v42 = vadd.f32 %v714_v39, %v713_v38  ;;  %v744_v45 = vadd.f32 %v743_v41, %v742_v40 }
 0x10e   : > { %v717_v48 = vadd.f32 %v716_v44, %v715_v42  ;;  %v746_v50 = vadd.f32 %v745_v47, %v744_v45 }
 0x110   : > { %v719_v52 = vadd.f32 %v718_v49, %v717_v48  ;;  %v748_v55 = vadd.f32 %v747_v53, %v746_v50 }
 0x112   : > { %v721_v57 = vadd.f32 %v720_v54, %v719_v52  ;;  %v750_v58 = vadd.f32 %v749_v56, %v748_v55 }
 0x114   : > { %v722_v60 = vrot.slane %v721_v57, 4  ;;  %v752_v61 = vadd.f32 %v751_v59, %v750_v58 }
 0x116   : > { %v723_v63 = vadd.f32 %v722_v60, %v721_v57  ;;  %v753_v62 = vrot.slane %v752_v61, 4 }
 0x118   : > { %v724_v0 = vrot.slane %v723_v63, 2  ;;  %v754_v1 = vadd.f32 %v753_v62, %v752_v61 }
 0x11a   : > { %v725_v2 = vadd.f32 %v724_v0, %v723_v63  ;;  %v755_v3 = vrot.slane %v754_v1, 2 }
 0x11c   : > { %v726_v4 = vrot.slane %v725_v2, 1  ;;  %v756_v5 = vadd.f32 %v755_v3, %v754_v1 }
 0x11e   : > { %v727_v6 = vadd.f32 %v726_v4, %v725_v2  ;;  %v757_v7 = vrot.slane %v756_v5, 1 }
 0x120   : > { %729 = vst.msk [vmem:[%s211_s13] sm:$0x1] %vm728_vm3, %v727_v6  ;;  %v758_v8 = vadd.f32 %v757_v7, %v756_v5 }
 0x122   : > { %759 = vst.msk [vmem:[%s214_s18] sm:$0x1] %vm728_vm3, %v758_v8 }
 0x123 PF: > { %s15_s15 = sadd.s32 1, %s1105_s15  }
 0x124   : > { %p12_p4 = scmp.ge.s32.totalorder %s15_s15, 4  }
 0x126   :  { %14 = sbr.rel (!%p12_p4) target bundleno = 1 (0x1), region = 84 }

// kernel: generator_forward.14
= control target key start
LH: loop header
LB: loop body
LE: loop exit
PB: predicated region body
PF: predicated region fallthrough
CT: control target
= control target key end

     0   :  { %s222_s0 = inlined_call_operand.vmem [shape: bf16[64,128], index: 0, kind: input, shape index: {}]   ;;  %s223_s1 = inlined_call_operand.vmem [shape: f32[1,128], index: 1, kind: input, shape index: {}]   ;;  %s224_s2 = inlined_call_operand.vmem [shape: f32[1,128], index: 2, kind: input, shape index: {}]   ;;  %s225_s3 = inlined_call_operand.vmem [shape: bf16[64,128], index: 3, kind: output, shape index: {}]  }
   0x1   :  { %v131_v0 = vld [vmem:[%s222_s0] sm:$0xff]   ;;  %v166_v4 = vld [vmem:[%s222_s0 + $0x8] sm:$0xff]   ;;  %v167_v5 = vld [vmem:[%s222_s0 + $0x10] sm:$0xff]  }
   0x2   :  { %v112_v1 = vld [vmem:[%s223_s1] ss:$0 sm:$0xff]  ;;  %v132_v2 = vunpack.c.l.bf16 %v131_v0  ;;  %v133_v3 = vunpack.c.h.bf16 %v131_v0  ;;  %v168_v6 = vld [vmem:[%s222_s0 + $0x18] sm:$0xff]   ;;  %v136_v8 = vunpack.c.l.bf16 %v166_v4  ;;  %v137_v9 = vunpack.c.h.bf16 %v166_v4 }
   0x3   :  { %v113_v7 = vld [vmem:[%s224_s2] ss:$0 sm:$0xff]  ;;  %v140_v10 = vunpack.c.l.bf16 %v167_v5  ;;  %v141_v11 = vunpack.c.h.bf16 %v167_v5  ;;  %v144_v14 = vunpack.c.l.bf16 %v168_v6  ;;  %v145_v15 = vunpack.c.h.bf16 %v168_v6 }
   0x4   :  { %v37_v12 = vmul.f32 %v132_v2, %v112_v1  ;;  %v38_v13 = vmul.f32 %v133_v3, %v112_v1  ;;  %v39_v16 = vmul.f32 %v136_v8, %v112_v1  ;;  %v40_v17 = vmul.f32 %v137_v9, %v112_v1 }
   0x5   :  { %v41_v18 = vmul.f32 %v140_v10, %v112_v1  ;;  %v42_v19 = vmul.f32 %v141_v11, %v112_v1  ;;  %v43_v22 = vmul.f32 %v144_v14, %v112_v1  ;;  %v44_v23 = vmul.f32 %v145_v15, %v112_v1 }
   0x6   :  { %v52_v20 = vadd.f32 %v113_v7, %v37_v12  ;;  %v53_v21 = vadd.f32 %v113_v7, %v38_v13  ;;  %v54_v24 = vadd.f32 %v113_v7, %v39_v16  ;;  %v55_v25 = vadd.f32 %v113_v7, %v40_v17 }
   0x7   :  { %v56_v26 = vadd.f32 %v113_v7, %v41_v18  ;;  %v57_v27 = vadd.f32 %v113_v7, %v42_v19  ;;  %v58_v30 = vadd.f32 %v113_v7, %v43_v22  ;;  %v59_v31 = vadd.f32 %v113_v7, %v44_v23 }
   0x8   :  { %v60_v28 = vmax.f32 %v52_v20, 0.0  ;;  %v61_v29 = vmax.f32 %v53_v21, 0.0  ;;  %v62_v32 = vmax.f32 %v54_v24, 0.0  ;;  %v63_v33 = vmax.f32 %v55_v25, 0.0 }
   0x9   :  { %v64_v34 = vmax.f32 %v56_v26, 0.0  ;;  %v65_v35 = vmax.f32 %v57_v27, 0.0  ;;  %v66_v37 = vmax.f32 %v58_v30, 0.0  ;;  %v67_v38 = vmax.f32 %v59_v31, 0.0 }
   0xa   :  { %v149_v36 = vpack.c.bf16 %v61_v29, %v60_v28  ;;  %v154_v39 = vpack.c.bf16 %v63_v33, %v62_v32 }
   0xb   :  { %v159_v40 = vpack.c.bf16 %v65_v35, %v64_v34  ;;  %v164_v41 = vpack.c.bf16 %v67_v38, %v66_v37 }
   0xc   :  { %150 = vst [vmem:[%s225_s3] sm:$0xff] %v149_v36   ;;  %169 = vst [vmem:[%s225_s3 + $0x8] sm:$0xff] %v154_v39  }
   0xd   :  { %170 = vst [vmem:[%s225_s3 + $0x10] sm:$0xff] %v159_v40   ;;  %171 = vst [vmem:[%s225_s3 + $0x18] sm:$0xff] %v164_v41  }

// kernel: tile.101
= control target key start
LH: loop header
LB: loop body
LE: loop exit
PB: predicated region body
PF: predicated region fallthrough
CT: control target
= control target key end

     0   :  { %s22_s0 = inlined_call_operand.vmem [shape: f32[8], index: 0, kind: input, shape index: {}]   ;;  %s23_s1 = inlined_call_operand.vmem [shape: f32[4,8], index: 1, kind: output, shape index: {}]  }
   0x1   :  { %v4_v0 = vld [vmem:[%s22_s0] ss:$0 sm:$0xff] }
   0x2   :  { %5 = vst [vmem:[%s23_s1] sm:$0xf] %v4_v0 }

// kernel: tile.109
= control target key start
LH: loop header
LB: loop body
LE: loop exit
PB: predicated region body
PF: predicated region fallthrough
CT: control target
= control target key end

     0   :  { %vm8_vm0 = vcmask 64512   ;;  %s40_s8 = smov 8   ;;  %s41_s9 = smov 16   ;;  %vm14_vm1 = vcmask 261312   ;;  %vm20_vm2 = vcmask 195712   ;;  %vm26_vm3 = vcmask 130112   ;;  %s58_s0 = inlined_call_operand.vmem [shape: f32[4,8], index: 0, kind: input, shape index: {}]   ;;  %s59_s1 = inlined_call_operand.vmem [shape: f32[32], index: 1, kind: output, shape index: {}]  }
   0x1   :  { %v5_v0 = vld [vmem:[%s58_s0] sm:$0xf]  ;;  %s39_s0 = smov 24  }
   0x2   :  { %6 = vst [vmem:[#allocation1] sm:$0xf] %v5_v0 }
   0x9   :  { %v11_v1 = vld [vmem:[#allocation1 + $0x3] sm:$0x1]   ;;  %v23_v2 = vld [vmem:[#allocation1 + $0x1] sm:$0x1]   ;;  %v7_v3 = vld [vmem:[#allocation1] sm:$0x1]  }
   0xa   :  { %12 = vrot.lane.b32.xlu0 %v11_v1, %s39_s0  ;;  %24 = vrot.lane.b32.xlu1 %v23_v2, %s40_s8  ;;  %v17_v4 = vld [vmem:[#allocation1 + $0x2] sm:$0x1]   ;;  %9 = vst.msk [vmem:[#allocation0] sm:$0x1] %vm8_vm0, %v7_v3  }
   0xe   :  { %18 = vrot.lane.b32.xlu0 %v17_v4, %s41_s9 }
  0x7c   :  { %v13_v5 = vpop.permute.xlu0 %12   ;;  %v25_v6 = vpop.permute.xlu1 %24  }
  0x7d   :  { %15 = vst.msk [vmem:[#allocation0] sm:$0x1] %vm14_vm1, %v13_v5  }
  0x80   :  { %v19_v7 = vpop.permute.xlu0 %18  }
  0x81   :  { %21 = vst.msk [vmem:[#allocation0] sm:$0x1] %vm20_vm2, %v19_v7  }
  0x82   :  { %27 = vst.msk [vmem:[#allocation0] sm:$0x1] %vm26_vm3, %v25_v6  }
  0x89   :  { %v32_v8 = vld [vmem:[#allocation0] sm:$0x1] }
  0x8a   :  { %35 = vst [vmem:[%s59_s1] sm:$0x1] %v32_v8 }

// kernel: generator_forward.15
= control target key start
LH: loop header
LB: loop body
LE: loop exit
PB: predicated region body
PF: predicated region fallthrough
CT: control target
= control target key end

     0   :  { %s2014_s15 = smov 0   ;;  %s2381_s0 = inlined_call_operand.vmem [shape: bf16[2,288,48], index: 0, kind: input, shape index: {}]   ;;  %s2382_s1 = inlined_call_operand.vmem [shape: bf16[3,48,32], index: 1, kind: input, shape index: {}]   ;;  %s2383_s2 = inlined_call_operand.vmem [shape: bf16[2,256,32], index: 2, kind: output, shape index: {0}]   ;;  %s2384_s3 = inlined_call_operand.vmem [shape: f32[2,1,32], index: 3, kind: output, shape index: {1}]   ;;  %s2385_s4 = inlined_call_operand.vmem [shape: f32[2,1,32], index: 4, kind: output, shape index: {2}]  }
   0x1 LB: > { %s1576_s16 = sadd.s32 4294967295, %s1987_s15   ;;  %p1580_p0 = scmp.ge.s32.totalorder %s1987_s15, 1  ;;  %s1987_s15 = sphi %s2014_s15, %s15_s15  }
   0x2   : > { %p167_p1 = scmp.lt.s32.totalorder %s1987_s15, 3 }
   0x4   : > { %p168_p2 = pnand %p1580_p0, %p167_p1 }
   0x5   : > { %p199_p3 = scmp.lt.s32.totalorder (!%p168_p2), %s1576_s16, 1 }
   0x6   : > { %171 = sbr.rel (%p168_p2) target bundleno = 338 (0x152), region = 28 }
   0xb   : > { %v1939_v0 = vld [vmem:[%s2382_s1 + $0x28] sm:$0xff]   ;;  %v1940_v1 = vld [vmem:[%s2382_s1 + $0x20] sm:$0xff]   ;;  %s2387_s16 = smov (!%p199_p3, %s1576_s16), 1  ;;  %v1941_v2 = vld [vmem:[%s2382_s1 + $0x18] sm:$0xff]   ;;  %vm361_vm0 = vcmask 392192   ;;  %vm1264_vm1 = vcmask 257024  }
   0xc   : > { %1810 = vmatprep.subr.bf16.mxu0 %v1939_v0  ;;  %1924 = vmatprep.subr.bf16.mxu1 %v1939_v0  ;;  %s1930_s23 = smul.u32 144, %s2387_s16  ;;  %v1946_v3 = vld [vmem:[%s2382_s1 + $0x10] sm:$0xff]   ;;  %v1947_v4 = vld [vmem:[%s2382_s1 + $0x40] sm:$0xff]   ;;  %v1952_v10 = vld [vmem:[%s2382_s1 + $0x8] sm:$0xff]   ;;  %s1720_s13 = sshll.u32 %s2387_s16, 7  ;;  %vm1297_vm2 = vcmask 261120  }
   0xd   : > { %1811 = vmatpush3.bf16.msra.mxu0 %v1939_v0  ;;  %1927 = vmatpush3.bf16.msra.mxu1 %v1939_v0  ;;  %v1953_v12 = vld [vmem:[%s2382_s1 + $0x38] sm:$0xff]   ;;  %v1958_v17 = vld [vmem:[%s2382_s1] sm:$0xff]   ;;  %v1963_v19 = vld [vmem:[%s2382_s1 + $0x30] sm:$0xff]   ;;  %s2214_s18 = scalar_lea.vmem %s2383_s2, %s1720_s13  ;;  %s211_s21 = scalar_lea.vmem %s2384_s3, %s2387_s16  ;;  %vm1367_vm3 = vcmask 253952  }
   0xe   : > { %1812 = vmatprep.subr.bf16.mxu0 %v1940_v1  ;;  %1925 = vmatprep.subr.bf16.mxu1 %v1940_v1  ;;  %s2037_s26 = scalar_lea.vmem %s2381_s0, %s1930_s23  ;;  %s214_s24 = scalar_lea.vmem %s2385_s4, %s2387_s16 }
   0xf   : > { %v1942_v5 = vld [vmem:[%s2037_s26 + $0x8] sm:$0xff]   ;;  %v1944_v7 = vld [vmem:[%s2037_s26 + $0x10] sm:$0xff]   ;;  %v1948_v9 = vld [vmem:[%s2037_s26 + $0x18] sm:$0xff]  }
  0x10   : > { %v2047_v6 = vld [vmem:[%s2037_s26 + $0x48] sm:$0xff]   ;;  %1816 = vmatprep.mubr.msk.bf16.mxu0 %vm361_vm0, %v1942_v5  ;;  %v2054_v8 = vld [vmem:[%s2037_s26 + $0x50] sm:$0xff]   ;;  %v2061_v11 = vld [vmem:[%s2037_s26 + $0x58] sm:$0xff]  }
  0x11   : > { %1813 = vmatpush3.bf16.msra.mxu0 %v1940_v1  ;;  %1928 = vmatpush3.bf16.msra.mxu1 %v1940_v1  ;;  %v1950_v13 = vld [vmem:[%s2037_s26 + $0x20] sm:$0xff]   ;;  %v1954_v15 = vld [vmem:[%s2037_s26 + $0x28] sm:$0xff]   ;;  %v1956_v18 = vld [vmem:[%s2037_s26 + $0x30] sm:$0xff]  }
  0x12   : > { %1814 = vmatprep.subr.bf16.mxu0 %v1941_v2  ;;  %1926 = vmatprep.subr.bf16.mxu1 %v1941_v2  ;;  %v2074_v14 = vld [vmem:[%s2037_s26 + $0x60] sm:$0xff]   ;;  %v2078_v16 = vld [vmem:[%s2037_s26 + $0x68] sm:$0xff]   ;;  %v1957_v20 = vld [vmem:[%s2037_s26 + $0x70] sm:$0xff]  }
  0x13   : > { %1832 = vmatprep.mubr.msk.bf16.mxu1 %vm361_vm0, %v2047_v6  ;;  %v1959_v21 = vld [vmem:[%s2037_s26 + $0x38] sm:$0xff]   ;;  %v1961_v23 = vld [vmem:[%s2037_s26 + $0x40] sm:$0xff]   ;;  %v1965_v26 = vld [vmem:[%s2037_s26 + $0x10] sm:$0xff]  }
  0x14   : > { %v1960_v22 = vld [vmem:[%s2037_s26 + $0x78] sm:$0xff]   ;;  %v1962_v24 = vld [vmem:[%s2037_s26 + $0x80] sm:$0xff]   ;;  %v1968_v29 = vld [vmem:[%s2037_s26 + $0x28] sm:$0xff]  }
  0x15   : > { %1815 = vmatpush3.bf16.msra.mxu0 %v1941_v2  ;;  %1929 = vmatpush3.bf16.msra.mxu1 %v1941_v2  ;;  %v1964_v25 = vld [vmem:[%s2037_s26] sm:$0xff]   ;;  %v1966_v27 = vld [vmem:[%s2037_s26 + $0x18] sm:$0xff]   ;;  %v1969_v30 = vld [vmem:[%s2037_s26 + $0x30] sm:$0xff]  }
  0x16   : > { %1848 = vmatprep.subr.bf16.mxu1 %v1946_v3  ;;  %1886 = vmatprep.subr.bf16.mxu0 %v1947_v4  ;;  %v1967_v28 = vld [vmem:[%s2037_s26 + $0x20] sm:$0xff]   ;;  %v1970_v31 = vld [vmem:[%s2037_s26 + $0x38] sm:$0xff]   ;;  %v1972_v33 = vld [vmem:[%s2037_s26 + $0x48] sm:$0xff]  }
  0x17   : > { %v1971_v32 = vld [vmem:[%s2037_s26 + $0x40] sm:$0xff]   ;;  %v1973_v34 = vld [vmem:[%s2037_s26 + $0x50] sm:$0xff]   ;;  %v1974_v35 = vld [vmem:[%s2037_s26 + $0x58] sm:$0xff]  }
  0x18   : > { %1817 = vmatmul.mubr.msk.bf16.vlgmr.msra.gmra.mxu0 %vm361_vm0, %v1944_v7  ;;  %1833 = vmatmul.mubr.msk.bf16.vlgmr.msra.gmra.mxu1 %vm361_vm0, %v2054_v8  ;;  %v1975_v36 = vld [vmem:[%s2037_s26 + $0x60] sm:$0xff]   ;;  %v1976_v37 = vld [vmem:[%s2037_s26 + $0x68] sm:$0xff]   ;;  %v1977_v38 = vld [vmem:[%s2037_s26 + $0x70] sm:$0xff]  }
  0x19   : > { %1849 = vmatpush3.bf16.msra.mxu1 %v1946_v3  ;;  %1887 = vmatpush3.bf16.msra.mxu0 %v1947_v4  ;;  %v1978_v39 = vld [vmem:[%s2037_s26 + $0x78] sm:$0xff]   ;;  %v1979_v40 = vld [vmem:[%s2037_s26 + $0x80] sm:$0xff]   ;;  %v1980_v41 = vld [vmem:[%s2037_s26 + $0x88] sm:$0xff]  }
  0x1a   : > { %1820 = vmatprep.mubr.msk.bf16.mxu0 %vm361_vm0, %v1948_v9  ;;  %1836 = vmatprep.mubr.msk.bf16.mxu1 %vm361_vm0, %v2061_v11 }
  0x1b   : > { %1850 = vmatprep.subr.bf16.mxu1 %v1952_v10  ;;  %1888 = vmatprep.subr.bf16.mxu0 %v1953_v12 }
  0x1d   : > { %1851 = vmatpush3.bf16.msra.mxu1 %v1952_v10  ;;  %1889 = vmatpush3.bf16.msra.mxu0 %v1953_v12 }
  0x1e   : > { %1852 = vmatprep.subr.bf16.mxu1 %v1958_v17  ;;  %1890 = vmatprep.subr.bf16.mxu0 %v1963_v19 }
  0x20   : > { %1821 = vmatmul.mubr.msk.bf16.gmra.mxu0 %vm361_vm0, %v1950_v13  ;;  %1837 = vmatmul.mubr.msk.bf16.gmra.mxu1 %vm361_vm0, %v2074_v14 }
  0x21   : > { %1824 = vmatprep.mubr.msk.bf16.mxu0 %vm361_vm0, %v1954_v15  ;;  %1840 = vmatprep.mubr.msk.bf16.mxu1 %vm361_vm0, %v2078_v16 }
  0x22   : > { %1853 = vmatpush3.bf16.msra.mxu1 %v1958_v17  ;;  %1891 = vmatpush3.bf16.msra.mxu0 %v1963_v19 }
  0x28   : > { %1825 = vmatmul.mubr.msk.bf16.gmra.mxu0 %vm361_vm0, %v1956_v18  ;;  %1841 = vmatmul.mubr.msk.bf16.gmra.mxu1 %vm361_vm0, %v1957_v20 }
  0x29   : > { %1828 = vmatprep.mubr.msk.bf16.mxu0 %vm361_vm0, %v1959_v21  ;;  %1844 = vmatprep.mubr.msk.bf16.mxu1 %vm361_vm0, %v1960_v22 }
  0x30   : > { %1829 = vmatmul.mubr.msk.bf16.gmra.mxu0 %vm361_vm0, %v1961_v23  ;;  %1845 = vmatmul.mubr.msk.bf16.gmra.mxu1 %vm361_vm0, %v1962_v24 }
  0x31   : > { %1854 = vmatprep.mubr.msk.bf16.mxu1 %vm361_vm0, %v1964_v25  ;;  %1892 = vmatprep.mubr.msk.bf16.mxu0 %vm361_vm0, %v1965_v26 }
  0x38   : > { %1855 = vmatmul.mubr.msk.bf16.vlgmr.msra.gmra.mxu1 %vm361_vm0, %v1942_v5  ;;  %1893 = vmatmul.mubr.msk.bf16.vlgmr.msra.gmra.mxu0 %vm361_vm0, %v1966_v27 }
  0x39   : > { %1858 = vmatprep.mubr.msk.bf16.mxu1 %vm361_vm0, %v1944_v7  ;;  %1896 = vmatprep.mubr.msk.bf16.mxu0 %vm361_vm0, %v1967_v28 }
  0x40   : > { %1859 = vmatmul.mubr.msk.bf16.gmra.mxu1 %vm361_vm0, %v1948_v9  ;;  %1897 = vmatmul.mubr.msk.bf16.gmra.mxu0 %vm361_vm0, %v1968_v29 }
  0x41   : > { %1862 = vmatprep.mubr.msk.bf16.mxu1 %vm361_vm0, %v1950_v13  ;;  %1900 = vmatprep.mubr.msk.bf16.mxu0 %vm361_vm0, %v1969_v30 }
  0x48   : > { %1863 = vmatmul.mubr.msk.bf16.gmra.mxu1 %vm361_vm0, %v1954_v15  ;;  %1901 = vmatmul.mubr.msk.bf16.gmra.mxu0 %vm361_vm0, %v1970_v31 }
  0x49   : > { %1866 = vmatprep.mubr.msk.bf16.mxu1 %vm361_vm0, %v1956_v18  ;;  %1904 = vmatprep.mubr.msk.bf16.mxu0 %vm361_vm0, %v1971_v32 }
  0x50   : > { %1867 = vmatmul.mubr.msk.bf16.gmra.mxu1 %vm361_vm0, %v1959_v21  ;;  %1905 = vmatmul.mubr.msk.bf16.gmra.mxu0 %vm361_vm0, %v1972_v33 }
  0x51   : > { %1870 = vmatprep.mubr.msk.bf16.mxu1 %vm361_vm0, %v1961_v23  ;;  %1908 = vmatprep.mubr.msk.bf16.mxu0 %vm361_vm0, %v1973_v34 }
  0x58   : > { %1871 = vmatmul.mubr.msk.bf16.gmra.mxu1 %vm361_vm0, %v2047_v6  ;;  %1909 = vmatmul.mubr.msk.bf16.gmra.mxu0 %vm361_vm0, %v1974_v35 }
  0x59   : > { %1874 = vmatprep.mubr.msk.bf16.mxu1 %vm361_vm0, %v2054_v8  ;;  %1912 = vmatprep.mubr.msk.bf16.mxu0 %vm361_vm0, %v1975_v36 }
  0x60   : > { %1875 = vmatmul.mubr.msk.bf16.gmra.mxu1 %vm361_vm0, %v2061_v11  ;;  %1913 = vmatmul.mubr.msk.bf16.gmra.mxu0 %vm361_vm0, %v1976_v37 }
  0x61   : > { %1878 = vmatprep.mubr.msk.bf16.mxu1 %vm361_vm0, %v2074_v14  ;;  %1916 = vmatprep.mubr.msk.bf16.mxu0 %vm361_vm0, %v1977_v38 }
  0x68   : > { %1879 = vmatmul.mubr.msk.bf16.gmra.mxu1 %vm361_vm0, %v2078_v16  ;;  %1917 = vmatmul.mubr.msk.bf16.gmra.mxu0 %vm361_vm0, %v1978_v39 }
  0x69   : > { %1882 = vmatprep.mubr.msk.bf16.mxu1 %vm361_vm0, %v1957_v20  ;;  %1920 = vmatprep.mubr.msk.bf16.mxu0 %vm361_vm0, %v1979_v40 }
  0x70   : > { %1883 = vmatmul.mubr.msk.bf16.gmra.mxu1 %vm361_vm0, %v1960_v22  ;;  %1921 = vmatmul.mubr.msk.bf16.gmra.mxu0 %vm361_vm0, %v1980_v41 }
  0xd8   : > { %v1818_v42 = vpop.f32.mrf.mxu0  ;;  %v2158_v43 = vpop.f32.mrf.mxu1 }
  0xda   : > { %v444_v44 = vpop.f32.mrf.mxu0  ;;  %v2160_v45 = vpop.f32.mrf.mxu1 }
  0xdc   : > { %v1819_v46 = vpop.f32.mrf.mxu0  ;;  %v2162_v47 = vpop.f32.mrf.mxu1 }
  0xde   : > { %v447_v48 = vpop.f32.mrf.mxu0  ;;  %v2164_v49 = vpop.f32.mrf.mxu1 }
  0xe0   : > { %v1822_v50 = vpop.f32.mrf.mxu0  ;;  %v2166_v51 = vpop.f32.mrf.mxu1 }
  0xe2   : > { %v460_v52 = vpop.f32.mrf.mxu0  ;;  %v2168_v53 = vpop.f32.mrf.mxu1 }
  0xe4   : > { %v2170_v54 = vpop.f32.mrf.mxu0  ;;  %v2172_v55 = vpop.f32.mrf.mxu1 }
  0xe6   : > { %v2174_v56 = vpop.f32.mrf.mxu0  ;;  %v2176_v57 = vpop.f32.mrf.mxu1 }
  0xe8   : > { %v2178_v58 = vpop.f32.mrf.mxu0  ;;  %v2180_v59 = vpop.f32.mrf.mxu1 }
  0xea   : > { %v2182_v60 = vpop.f32.mrf.mxu0  ;;  %v2184_v61 = vpop.f32.mrf.mxu1 }
  0xec   : > { %v2186_v62 = vpop.f32.mrf.mxu0  ;;  %v2188_v63 = vpop.f32.mrf.mxu1 }
  0xee   : > { %v2190_v0 = vpop.f32.mrf.mxu0  ;;  %v2192_v1 = vpop.f32.mrf.mxu1 }
  0xf0   : > { %v2194_v2 = vpop.f32.mrf.mxu0  ;;  %v2196_v3 = vpop.f32.mrf.mxu1 }
  0xf2   : > { %v2198_v4 = vpop.f32.mrf.mxu0  ;;  %v2200_v5 = vpop.f32.mrf.mxu1 }
  0xf4   : > { %v2202_v6 = vpop.f32.mrf.mxu0  ;;  %v2204_v7 = vpop.f32.mrf.mxu1 }
  0xf6   : > { %v2206_v8 = vpop.f32.mrf.mxu0  ;;  %v2208_v9 = vpop.f32.mrf.mxu1 }
  0xf8   : > { %v1856_v10 = vpop.f32.mrf.mxu1  ;;  %v1894_v11 = vpop.f32.mrf.mxu0 }
  0xf9   : > { %v640_v12 = vadd.f32 %v1856_v10, %v1818_v42 }
  0xfa   : > { %v631_v13 = vpop.f32.mrf.mxu1  ;;  %v977_v14 = vpop.f32.mrf.mxu0 }
  0xfb   : > { %v1106_v15 = vadd.f32 %v1894_v11, %v640_v12  ;;  %v632_v16 = vadd.f32 %v631_v13, %v444_v44 }
  0xfc   : > { %v1857_v17 = vpop.f32.mrf.mxu1  ;;  %v1895_v18 = vpop.f32.mrf.mxu0 }
  0xfd   : > { %v1723_v19 = vpack.c.bf16 %v1106_v15, %v1106_v15  ;;  %v1104_v20 = vadd.f32 %v977_v14, %v632_v16  ;;  %v643_v21 = vadd.f32 %v1857_v17, %v1819_v46  ;;  %v1371_v35 = vmul.f32 %v1106_v15, %v1106_v15 }
  0xfe   : > { %v634_v22 = vpop.f32.mrf.mxu1  ;;  %v980_v23 = vpop.f32.mrf.mxu0  ;;  %v1301_v46 = vsel %vm1297_vm2, %v1106_v15, 0.0 }
  0xff   : > { %1267 = vst.msk [vmem:[%s2214_s18 + $0x8] sm:$0xf] %vm1264_vm1, %v1723_v19  ;;  %v1721_v24 = vpack.c.bf16 %v1104_v20, %v1104_v20  ;;  %v1107_v25 = vadd.f32 %v1895_v18, %v643_v21  ;;  %v635_v26 = vadd.f32 %v634_v22, %v447_v48  ;;  %v1369_v29 = vmul.f32 %v1104_v20, %v1104_v20 }
 0x100   : > { %v1860_v27 = vpop.f32.mrf.mxu1  ;;  %v1898_v28 = vpop.f32.mrf.mxu0  ;;  %v1298_v38 = vsel %vm1297_vm2, %v1104_v20, 0.0  ;;  %v1404_v17 = vsel %vm1297_vm2, %v1371_v35, 0.0 }
 0x101   : > { %1265 = vst.msk [vmem:[%s2214_s18] sm:$0xf] %vm1264_vm1, %v1721_v24  ;;  %v656_v30 = vadd.f32 %v1860_v27, %v1822_v50  ;;  %v1724_v31 = vpack.c.bf16 %v1107_v25, %v1107_v25  ;;  %v1105_v32 = vadd.f32 %v980_v23, %v635_v26  ;;  %v1401_v48 = vsel %vm1297_vm2, %v1369_v29, 0.0 }
 0x102   : > { %v647_v33 = vpop.f32.mrf.mxu1  ;;  %v993_v34 = vpop.f32.mrf.mxu0  ;;  %v1372_v11 = vmul.f32 %v1107_v25, %v1107_v25  ;;  %v1303_v20 = vsel %vm1297_vm2, %v1107_v25, 0.0 }
 0x103   : > { %v1110_v36 = vadd.f32 %v1898_v28, %v656_v30  ;;  %v648_v37 = vadd.f32 %v647_v33, %v460_v52  ;;  %1268 = vst.msk [vmem:[%s2214_s18 + $0xc] sm:$0xf] %vm1264_vm1, %v1724_v31  ;;  %v1722_v39 = vpack.c.bf16 %v1105_v32, %v1105_v32  ;;  %v1299_v40 = vsel %vm1297_vm2, %v1105_v32, 0.0 }
 0x104   : > { %v1370_v41 = vmul.f32 %v1105_v32, %v1105_v32  ;;  %v1861_v42 = vpop.f32.mrf.mxu1  ;;  %v1899_v44 = vpop.f32.mrf.mxu0  ;;  %v1300_v50 = vadd.f32 %v1299_v40, %v1298_v38  ;;  %v1406_v30 = vsel %vm1297_vm2, %v1372_v11, 0.0 }
 0x105   : > { %v1727_v10 = vpack.c.bf16 %v1110_v36, %v1110_v36  ;;  %1266 = vst.msk [vmem:[%s2214_s18 + $0x4] sm:$0xf] %vm1264_vm1, %v1722_v39  ;;  %v1108_v12 = vadd.f32 %v993_v34, %v648_v37  ;;  %v659_v13 = vadd.f32 %v1861_v42, %v2170_v54  ;;  %v1375_v31 = vmul.f32 %v1110_v36, %v1110_v36 }
 0x106   : > { %v1402_v52 = vsel %vm1297_vm2, %v1370_v41, 0.0  ;;  %v650_v14 = vpop.f32.mrf.mxu1  ;;  %v996_v16 = vpop.f32.mrf.mxu0  ;;  %v1302_v18 = vadd.f32 %v1301_v46, %v1300_v50 }
 0x107   : > { %v1403_v19 = vadd.f32 %v1402_v52, %v1401_v48  ;;  %1271 = vst.msk [vmem:[%s2214_s18 + $0x18] sm:$0xf] %vm1264_vm1, %v1727_v10  ;;  %v651_v15 = vadd.f32 %v650_v14, %v2174_v56  ;;  %v1725_v21 = vpack.c.bf16 %v1108_v12, %v1108_v12  ;;  %v1373_v22 = vmul.f32 %v1108_v12, %v1108_v12 }
 0x108   : > { %v1111_v23 = vadd.f32 %v1899_v44, %v659_v13  ;;  %v1864_v24 = vpop.f32.mrf.mxu1  ;;  %v1902_v26 = vpop.f32.mrf.mxu0  ;;  %v1304_v54 = vadd.f32 %v1303_v20, %v1302_v18  ;;  %v1305_v56 = vsel %vm1297_vm2, %v1108_v12, 0.0  ;;  %v1309_v10 = vsel %vm1297_vm2, %v1110_v36, 0.0 }
 0x109   : > { %v1405_v27 = vadd.f32 %v1404_v17, %v1403_v19  ;;  %v1109_v28 = vadd.f32 %v996_v16, %v651_v15  ;;  %v672_v29 = vadd.f32 %v1864_v24, %v2178_v58  ;;  %1269 = vst.msk [vmem:[%s2214_s18 + $0x10] sm:$0xf] %vm1264_vm1, %v1725_v21  ;;  %v1408_v39 = vsel %vm1297_vm2, %v1373_v22, 0.0 }
 0x10a   : > { %v1728_v25 = vpack.c.bf16 %v1111_v23, %v1111_v23  ;;  %v663_v32 = vpop.f32.mrf.mxu1  ;;  %v1009_v33 = vpop.f32.mrf.mxu0  ;;  %v1306_v34 = vadd.f32 %v1305_v56, %v1304_v54  ;;  %v1376_v11 = vmul.f32 %v1111_v23, %v1111_v23  ;;  %v1412_v19 = vsel %vm1297_vm2, %v1375_v31, 0.0 }
 0x10b   : > { %v1407_v35 = vadd.f32 %v1406_v30, %v1405_v27  ;;  %v1726_v37 = vpack.c.bf16 %v1109_v28, %v1109_v28  ;;  %v1307_v38 = vsel %vm1297_vm2, %v1109_v28, 0.0  ;;  %v1374_v58 = vmul.f32 %v1109_v28, %v1109_v28 }
 0x10c   : > { %1272 = vst.msk [vmem:[%s2214_s18 + $0x1c] sm:$0xf] %vm1264_vm1, %v1728_v25  ;;  %v1114_v40 = vadd.f32 %v1902_v26, %v672_v29  ;;  %v664_v41 = vadd.f32 %v663_v32, %v2182_v60  ;;  %v1865_v42 = vpop.f32.mrf.mxu1  ;;  %v1903_v44 = vpop.f32.mrf.mxu0  ;;  %v1308_v48 = vadd.f32 %v1307_v38, %v1306_v34  ;;  %v1311_v15 = vsel %vm1297_vm2, %v1111_v23, 0.0 }
 0x10d   : > { %v1409_v46 = vadd.f32 %v1408_v39, %v1407_v35  ;;  %1270 = vst.msk [vmem:[%s2214_s18 + $0x14] sm:$0xf] %vm1264_vm1, %v1726_v37  ;;  %v675_v50 = vadd.f32 %v1865_v42, %v2186_v62  ;;  %v1410_v52 = vsel %vm1297_vm2, %v1374_v58, 0.0  ;;  %v1414_v26 = vsel %vm1297_vm2, %v1376_v11, 0.0 }
 0x10e   : > { %v1731_v12 = vpack.c.bf16 %v1114_v40, %v1114_v40  ;;  %v666_v13 = vpop.f32.mrf.mxu1  ;;  %v1012_v14 = vpop.f32.mrf.mxu0  ;;  %v1310_v16 = vadd.f32 %v1309_v10, %v1308_v48  ;;  %v1112_v60 = vadd.f32 %v1009_v33, %v664_v41  ;;  %v1379_v25 = vmul.f32 %v1114_v40, %v1114_v40 }
 0x10f   : > { %v1411_v17 = vadd.f32 %v1410_v52, %v1409_v46  ;;  %v1115_v18 = vadd.f32 %v1903_v44, %v675_v50  ;;  %v667_v62 = vadd.f32 %v666_v13, %v2190_v0  ;;  %v1317_v10 = vsel %vm1297_vm2, %v1114_v40, 0.0 }
 0x110   : > { %1275 = vst.msk [vmem:[%s2214_s18 + $0x28] sm:$0xf] %vm1264_vm1, %v1731_v12  ;;  %v1868_v36 = vpop.f32.mrf.mxu1  ;;  %v1906_v20 = vpop.f32.mrf.mxu0  ;;  %v1729_v22 = vpack.c.bf16 %v1112_v60, %v1112_v60  ;;  %v1312_v24 = vadd.f32 %v1311_v15, %v1310_v16  ;;  %v1313_v27 = vsel %vm1297_vm2, %v1112_v60, 0.0  ;;  %v1377_v54 = vmul.f32 %v1112_v60, %v1112_v60 }
 0x111   : > { %v1413_v21 = vadd.f32 %v1412_v19, %v1411_v17  ;;  %v1732_v28 = vpack.c.bf16 %v1115_v18, %v1115_v18  ;;  %v1113_v56 = vadd.f32 %v1012_v14, %v667_v62  ;;  %v688_v0 = vadd.f32 %v1868_v36, %v2194_v2 }
 0x112   : > { %v679_v29 = vpop.f32.mrf.mxu1  ;;  %v1025_v30 = vpop.f32.mrf.mxu0  ;;  %1273 = vst.msk [vmem:[%s2214_s18 + $0x20] sm:$0xf] %vm1264_vm1, %v1729_v22  ;;  %v1314_v23 = vadd.f32 %v1313_v27, %v1312_v24  ;;  %v1416_v32 = vsel %vm1297_vm2, %v1377_v54, 0.0  ;;  %v1380_v33 = vmul.f32 %v1115_v18, %v1115_v18  ;;  %v1420_v52 = vsel %vm1297_vm2, %v1379_v25, 0.0 }
 0x113   : > { %v1415_v31 = vadd.f32 %v1414_v26, %v1413_v21  ;;  %1276 = vst.msk [vmem:[%s2214_s18 + $0x2c] sm:$0xf] %vm1264_vm1, %v1732_v28  ;;  %v680_v34 = vadd.f32 %v679_v29, %v2198_v4  ;;  %v1730_v39 = vpack.c.bf16 %v1113_v56, %v1113_v56  ;;  %v1315_v58 = vsel %vm1297_vm2, %v1113_v56, 0.0 }
 0x114   : > { %v1869_v35 = vpop.f32.mrf.mxu1  ;;  %v1907_v37 = vpop.f32.mrf.mxu0  ;;  %v1378_v41 = vmul.f32 %v1113_v56, %v1113_v56  ;;  %v1316_v42 = vadd.f32 %v1315_v58, %v1314_v23  ;;  %v1118_v44 = vadd.f32 %v1906_v20, %v688_v0  ;;  %v1422_v60 = vsel %vm1297_vm2, %v1380_v33, 0.0 }
 0x115   : > { %v1417_v38 = vadd.f32 %v1416_v32, %v1415_v31  ;;  %v1116_v46 = vadd.f32 %v1025_v30, %v680_v34  ;;  %v691_v2 = vadd.f32 %v1869_v35, %v2202_v6  ;;  %1274 = vst.msk [vmem:[%s2214_s18 + $0x24] sm:$0xf] %vm1264_vm1, %v1730_v39  ;;  %v1319_v6 = vsel %vm1297_vm2, %v1115_v18, 0.0 }
 0x116   : > { %v682_v48 = vpop.f32.mrf.mxu1  ;;  %v1028_v50 = vpop.f32.mrf.mxu0  ;;  %v1418_v4 = vsel %vm1297_vm2, %v1378_v41, 0.0  ;;  %v1318_v12 = vadd.f32 %v1317_v10, %v1316_v42  ;;  %v1735_v14 = vpack.c.bf16 %v1118_v44, %v1118_v44  ;;  %v1383_v22 = vmul.f32 %v1118_v44, %v1118_v44 }
 0x117   : > { %v683_v11 = vadd.f32 %v682_v48, %v2206_v8  ;;  %v1419_v13 = vadd.f32 %v1418_v4, %v1417_v38  ;;  %v1733_v19 = vpack.c.bf16 %v1116_v46, %v1116_v46  ;;  %v1381_v40 = vmul.f32 %v1116_v46, %v1116_v46 }
 0x118   : > { %v1872_v16 = vpop.f32.mrf.mxu1  ;;  %v1910_v17 = vpop.f32.mrf.mxu0  ;;  %1279 = vst.msk [vmem:[%s2214_s18 + $0x38] sm:$0xf] %vm1264_vm1, %v1735_v14  ;;  %v1320_v62 = vadd.f32 %v1319_v6, %v1318_v12  ;;  %v1119_v36 = vadd.f32 %v1907_v37, %v691_v2  ;;  %v1321_v24 = vsel %vm1297_vm2, %v1116_v46, 0.0  ;;  %v1325_v37 = vsel %vm1297_vm2, %v1118_v44, 0.0 }
 0x119   : > { %v1421_v15 = vadd.f32 %v1420_v52, %v1419_v13  ;;  %v1117_v8 = vadd.f32 %v1028_v50, %v683_v11  ;;  %1277 = vst.msk [vmem:[%s2214_s18 + $0x30] sm:$0xf] %vm1264_vm1, %v1733_v19  ;;  %v704_v18 = vadd.f32 %v1872_v16, %v2158_v43  ;;  %v1424_v28 = vsel %vm1297_vm2, %v1381_v40, 0.0 }
 0x11a   : > { %v695_v20 = vpop.f32.mrf.mxu1  ;;  %v1041_v21 = vpop.f32.mrf.mxu0  ;;  %v1322_v27 = vadd.f32 %v1321_v24, %v1320_v62  ;;  %v1736_v29 = vpack.c.bf16 %v1119_v36, %v1119_v36  ;;  %v1384_v31 = vmul.f32 %v1119_v36, %v1119_v36  ;;  %v1428_v41 = vsel %vm1297_vm2, %v1383_v22, 0.0 }
 0x11b   : > { %v696_v26 = vadd.f32 %v695_v20, %v2160_v45  ;;  %v1423_v54 = vadd.f32 %v1422_v60, %v1421_v15  ;;  %v1734_v56 = vpack.c.bf16 %v1117_v8, %v1117_v8  ;;  %v1323_v0 = vsel %vm1297_vm2, %v1117_v8, 0.0 }
 0x11c   : > { %v1873_v30 = vpop.f32.mrf.mxu1  ;;  %v1911_v23 = vpop.f32.mrf.mxu0  ;;  %v1382_v25 = vmul.f32 %v1117_v8, %v1117_v8  ;;  %1280 = vst.msk [vmem:[%s2214_s18 + $0x3c] sm:$0xf] %vm1264_vm1, %v1736_v29  ;;  %v1324_v33 = vadd.f32 %v1323_v0, %v1322_v27  ;;  %v1122_v43 = vadd.f32 %v1910_v17, %v704_v18  ;;  %v1327_v10 = vsel %vm1297_vm2, %v1119_v36, 0.0 }
 0x11d   : > { %v1425_v32 = vadd.f32 %v1424_v28, %v1423_v54  ;;  %v1120_v34 = vadd.f32 %v1041_v21, %v696_v26  ;;  %1278 = vst.msk [vmem:[%s2214_s18 + $0x34] sm:$0xf] %vm1264_vm1, %v1734_v56  ;;  %v707_v39 = vadd.f32 %v1873_v30, %v2162_v47  ;;  %v1430_v44 = vsel %vm1297_vm2, %v1384_v31, 0.0 }
 0x11e   : > { %v698_v45 = vpop.f32.mrf.mxu1  ;;  %v1044_v35 = vpop.f32.mrf.mxu0  ;;  %v1426_v38 = vsel %vm1297_vm2, %v1382_v25, 0.0  ;;  %v1326_v42 = vadd.f32 %v1325_v37, %v1324_v33  ;;  %v1739_v2 = vpack.c.bf16 %v1122_v43, %v1122_v43  ;;  %v1387_v16 = vmul.f32 %v1122_v43, %v1122_v43 }
 0x11f   : > { %v699_v58 = vadd.f32 %v698_v45, %v2164_v49  ;;  %v1427_v46 = vadd.f32 %v1426_v38, %v1425_v32  ;;  %v1737_v4 = vpack.c.bf16 %v1120_v34, %v1120_v34  ;;  %v1385_v11 = vmul.f32 %v1120_v34, %v1120_v34 }
 0x120   : > { %v1876_v48 = vpop.f32.mrf.mxu1  ;;  %v1914_v50 = vpop.f32.mrf.mxu0  ;;  %1283 = vst.msk [vmem:[%s2214_s18 + $0x48] sm:$0xf] %vm1264_vm1, %v1739_v2  ;;  %v1328_v47 = vadd.f32 %v1327_v10, %v1326_v42  ;;  %v1123_v12 = vadd.f32 %v1911_v23, %v707_v39  ;;  %v1329_v17 = vsel %vm1297_vm2, %v1120_v34, 0.0  ;;  %v1333_v28 = vsel %vm1297_vm2, %v1122_v43, 0.0 }
 0x121   : > { %v1429_v52 = vadd.f32 %v1428_v41, %v1427_v46  ;;  %v1121_v49 = vadd.f32 %v1044_v35, %v699_v58  ;;  %1281 = vst.msk [vmem:[%s2214_s18 + $0x40] sm:$0xf] %vm1264_vm1, %v1737_v4  ;;  %v720_v6 = vadd.f32 %v1876_v48, %v2166_v51  ;;  %v1432_v15 = vsel %vm1297_vm2, %v1385_v11, 0.0 }
 0x122   : > { %v711_v13 = vpop.f32.mrf.mxu1  ;;  %v1057_v14 = vpop.f32.mrf.mxu0  ;;  %v1330_v19 = vadd.f32 %v1329_v17, %v1328_v47  ;;  %v1740_v62 = vpack.c.bf16 %v1123_v12, %v1123_v12  ;;  %v1388_v20 = vmul.f32 %v1123_v12, %v1123_v12  ;;  %v1436_v31 = vsel %vm1297_vm2, %v1387_v16, 0.0 }
 0x123   : > { %v712_v60 = vadd.f32 %v711_v13, %v2168_v53  ;;  %v1431_v40 = vadd.f32 %v1430_v44, %v1429_v52  ;;  %v1738_v21 = vpack.c.bf16 %v1121_v49, %v1121_v49  ;;  %v1331_v22 = vsel %vm1297_vm2, %v1121_v49, 0.0 }
 0x124   : > { %v1877_v36 = vpop.f32.mrf.mxu1  ;;  %v1915_v8 = vpop.f32.mrf.mxu0  ;;  %v1386_v24 = vmul.f32 %v1121_v49, %v1121_v49  ;;  %1284 = vst.msk [vmem:[%s2214_s18 + $0x4c] sm:$0xf] %vm1264_vm1, %v1740_v62  ;;  %v1332_v26 = vadd.f32 %v1331_v22, %v1330_v19  ;;  %v1126_v51 = vadd.f32 %v1914_v50, %v720_v6  ;;  %v1335_v34 = vsel %vm1297_vm2, %v1123_v12, 0.0 }
 0x125   : > { %v1433_v18 = vadd.f32 %v1432_v15, %v1431_v40  ;;  %v1124_v27 = vadd.f32 %v1057_v14, %v712_v60  ;;  %1282 = vst.msk [vmem:[%s2214_s18 + $0x44] sm:$0xf] %vm1264_vm1, %v1738_v21  ;;  %v723_v30 = vadd.f32 %v1877_v36, %v2172_v55  ;;  %v1438_v43 = vsel %vm1297_vm2, %v1388_v20, 0.0 }
 0x126   : > { %v714_v53 = vpop.f32.mrf.mxu1  ;;  %v1060_v54 = vpop.f32.mrf.mxu0  ;;  %v1434_v29 = vsel %vm1297_vm2, %v1386_v24, 0.0  ;;  %v1334_v56 = vadd.f32 %v1333_v28, %v1332_v26  ;;  %v1743_v25 = vpack.c.bf16 %v1126_v51, %v1126_v51  ;;  %v1391_v41 = vmul.f32 %v1126_v51, %v1126_v51 }
 0x127   : > { %v715_v23 = vadd.f32 %v714_v53, %v2176_v57  ;;  %v1435_v0 = vadd.f32 %v1434_v29, %v1433_v18  ;;  %v1741_v45 = vpack.c.bf16 %v1124_v27, %v1124_v27  ;;  %v1389_v35 = vmul.f32 %v1124_v27, %v1124_v27 }
 0x128   : > { %v1880_v32 = vpop.f32.mrf.mxu1  ;;  %v1918_v33 = vpop.f32.mrf.mxu0  ;;  %1287 = vst.msk [vmem:[%s2214_s18 + $0x58] sm:$0xf] %vm1264_vm1, %v1743_v25  ;;  %v1336_v55 = vadd.f32 %v1335_v34, %v1334_v56  ;;  %v1127_v38 = vadd.f32 %v1915_v8, %v723_v30  ;;  %v1337_v42 = vsel %vm1297_vm2, %v1124_v27, 0.0  ;;  %v1341_v6 = vsel %vm1297_vm2, %v1126_v51, 0.0 }
 0x129   : > { %v1437_v37 = vadd.f32 %v1436_v31, %v1435_v0  ;;  %v1125_v57 = vadd.f32 %v1060_v54, %v715_v23  ;;  %1285 = vst.msk [vmem:[%s2214_s18 + $0x50] sm:$0xf] %vm1264_vm1, %v1741_v45  ;;  %v736_v46 = vadd.f32 %v1880_v32, %v2180_v59  ;;  %v1440_v10 = vsel %vm1297_vm2, %v1389_v35, 0.0 }
 0x12a   : > { %v727_v39 = vpop.f32.mrf.mxu1  ;;  %v1073_v58 = vpop.f32.mrf.mxu0  ;;  %v1338_v48 = vadd.f32 %v1337_v42, %v1336_v55  ;;  %v1744_v44 = vpack.c.bf16 %v1127_v38, %v1127_v38  ;;  %v1392_v52 = vmul.f32 %v1127_v38, %v1127_v38  ;;  %v1444_v15 = vsel %vm1297_vm2, %v1391_v41, 0.0 }
 0x12b   : > { %v728_v2 = vadd.f32 %v727_v39, %v2184_v61  ;;  %v1439_v50 = vadd.f32 %v1438_v43, %v1437_v37  ;;  %v1742_v47 = vpack.c.bf16 %v1125_v57, %v1125_v57  ;;  %v1339_v12 = vsel %vm1297_vm2, %v1125_v57, 0.0 }
 0x12c   : > { %v1881_v4 = vpop.f32.mrf.mxu1  ;;  %v1919_v11 = vpop.f32.mrf.mxu0  ;;  %v1390_v49 = vmul.f32 %v1125_v57, %v1125_v57  ;;  %1288 = vst.msk [vmem:[%s2214_s18 + $0x5c] sm:$0xf] %vm1264_vm1, %v1744_v44  ;;  %v1340_v14 = vadd.f32 %v1339_v12, %v1338_v48  ;;  %v1130_v59 = vadd.f32 %v1918_v33, %v736_v46  ;;  %v1343_v22 = vsel %vm1297_vm2, %v1127_v38, 0.0 }
 0x12d   : > { %v1441_v13 = vadd.f32 %v1440_v10, %v1439_v50  ;;  %v1128_v16 = vadd.f32 %v1073_v58, %v728_v2  ;;  %1286 = vst.msk [vmem:[%s2214_s18 + $0x54] sm:$0xf] %vm1264_vm1, %v1742_v47  ;;  %v739_v19 = vadd.f32 %v1881_v4, %v2188_v63  ;;  %v1446_v24 = vsel %vm1297_vm2, %v1392_v52, 0.0 }
 0x12e   : > { %v730_v61 = vpop.f32.mrf.mxu1  ;;  %v1076_v17 = vpop.f32.mrf.mxu0  ;;  %v1442_v60 = vsel %vm1297_vm2, %v1390_v49, 0.0  ;;  %v1342_v62 = vadd.f32 %v1341_v6, %v1340_v14  ;;  %v1747_v8 = vpack.c.bf16 %v1130_v59, %v1130_v59  ;;  %v1349_v28 = vsel %vm1297_vm2, %v1130_v59, 0.0 }
 0x12f   : > { %v731_v40 = vadd.f32 %v730_v61, %v2192_v1  ;;  %v1443_v36 = vadd.f32 %v1442_v60, %v1441_v13  ;;  %v1745_v18 = vpack.c.bf16 %v1128_v16, %v1128_v16  ;;  %v1393_v26 = vmul.f32 %v1128_v16, %v1128_v16 }
 0x130   : > { %v1884_v20 = vpop.f32.mrf.mxu1  ;;  %v1922_v21 = vpop.f32.mrf.mxu0  ;;  %1291 = vst.msk [vmem:[%s2214_s18 + $0x68] sm:$0xf] %vm1264_vm1, %v1747_v8  ;;  %v1344_v63 = vadd.f32 %v1343_v22, %v1342_v62  ;;  %v1131_v27 = vadd.f32 %v1919_v11, %v739_v19  ;;  %v1345_v29 = vsel %vm1297_vm2, %v1128_v16, 0.0  ;;  %v1395_v31 = vmul.f32 %v1130_v59, %v1130_v59 }
 0x131   : > { %v1445_v51 = vadd.f32 %v1444_v15, %v1443_v36  ;;  %v1129_v1 = vadd.f32 %v1076_v17, %v731_v40  ;;  %1289 = vst.msk [vmem:[%s2214_s18 + $0x60] sm:$0xf] %vm1264_vm1, %v1745_v18  ;;  %v752_v30 = vadd.f32 %v1884_v20, %v2196_v3  ;;  %v1448_v33 = vsel %vm1297_vm2, %v1393_v26, 0.0 }
 0x132   : > { %v743_v53 = vpop.f32.mrf.mxu1  ;;  %v1089_v54 = vpop.f32.mrf.mxu0  ;;  %v1346_v56 = vadd.f32 %v1345_v29, %v1344_v63  ;;  %v1748_v25 = vpack.c.bf16 %v1131_v27, %v1131_v27  ;;  %v1396_v57 = vmul.f32 %v1131_v27, %v1131_v27  ;;  %v1452_v48 = vsel %vm1297_vm2, %v1395_v31, 0.0 }
 0x133   : > { %v744_v23 = vadd.f32 %v743_v53, %v2200_v5  ;;  %v1447_v0 = vadd.f32 %v1446_v24, %v1445_v51  ;;  %v1746_v34 = vpack.c.bf16 %v1129_v1, %v1129_v1  ;;  %v1347_v43 = vsel %vm1297_vm2, %v1129_v1, 0.0 }
 0x134   : > { %v1885_v32 = vpop.f32.mrf.mxu1  ;;  %v1394_v45 = vmul.f32 %v1129_v1, %v1129_v1  ;;  %v1923_v35 = vpop.f32.mrf.mxu0  ;;  %1292 = vst.msk [vmem:[%s2214_s18 + $0x6c] sm:$0xf] %vm1264_vm1, %v1748_v25  ;;  %v1348_v55 = vadd.f32 %v1347_v43, %v1346_v56  ;;  %v1134_v3 = vadd.f32 %v1922_v21, %v752_v30  ;;  %v1351_v50 = vsel %vm1297_vm2, %v1131_v27, 0.0 }
 0x135   : > { %v1449_v37 = vadd.f32 %v1448_v33, %v1447_v0  ;;  %v1132_v38 = vadd.f32 %v1089_v54, %v744_v23  ;;  %1290 = vst.msk [vmem:[%s2214_s18 + $0x64] sm:$0xf] %vm1264_vm1, %v1746_v34  ;;  %v755_v58 = vadd.f32 %v1885_v32, %v2204_v7  ;;  %v1454_v12 = vsel %vm1297_vm2, %v1396_v57, 0.0 }
 0x136   : > { %v746_v5 = vpop.f32.mrf.mxu1  ;;  %v1450_v39 = vsel %vm1297_vm2, %v1394_v45, 0.0  ;;  %v1350_v42 = vadd.f32 %v1349_v28, %v1348_v55  ;;  %v1751_v2 = vpack.c.bf16 %v1134_v3, %v1134_v3  ;;  %v1092_v4 = vpop.f32.mrf.mxu0  ;;  %v1399_v49 = vmul.f32 %v1134_v3, %v1134_v3 }
 0x137   : > { %v747_v41 = vadd.f32 %v746_v5, %v2208_v9  ;;  %v1451_v46 = vadd.f32 %v1450_v39, %v1449_v37  ;;  %v1749_v10 = vpack.c.bf16 %v1132_v38, %v1132_v38  ;;  %v1397_v44 = vmul.f32 %v1132_v38, %v1132_v38 }
 0x138   : > { %1295 = vst.msk [vmem:[%s2214_s18 + $0x78] sm:$0xf] %vm1264_vm1, %v1751_v2  ;;  %v1352_v52 = vadd.f32 %v1351_v50, %v1350_v42  ;;  %v1135_v47 = vadd.f32 %v1923_v35, %v755_v58  ;;  %v1353_v9 = vsel %vm1297_vm2, %v1132_v38, 0.0  ;;  %v1357_v40 = vsel %vm1297_vm2, %v1134_v3, 0.0 }
 0x139   : > { %v1453_v11 = vadd.f32 %v1452_v48, %v1451_v46  ;;  %v1133_v7 = vadd.f32 %v1092_v4, %v747_v41  ;;  %1293 = vst.msk [vmem:[%s2214_s18 + $0x70] sm:$0xf] %vm1264_vm1, %v1749_v10  ;;  %v1456_v16 = vsel %vm1297_vm2, %v1397_v44, 0.0  ;;  %v1460_v20 = vsel %vm1297_vm2, %v1399_v49, 0.0 }
 0x13a   : > { %v1354_v13 = vadd.f32 %v1353_v9, %v1352_v52  ;;  %v1752_v59 = vpack.c.bf16 %v1135_v47, %v1135_v47  ;;  %v1400_v15 = vmul.f32 %v1135_v47, %v1135_v47  ;;  %v1359_v21 = vsel %vm1297_vm2, %v1135_v47, 0.0 }
 0x13b   : > { %v1455_v14 = vadd.f32 %v1454_v12, %v1453_v11  ;;  %v1750_v61 = vpack.c.bf16 %v1133_v7, %v1133_v7  ;;  %v1355_v17 = vsel %vm1297_vm2, %v1133_v7, 0.0  ;;  %v1398_v6 = vmul.f32 %v1133_v7, %v1133_v7 }
 0x13c   : > { %1296 = vst.msk [vmem:[%s2214_s18 + $0x7c] sm:$0xf] %vm1264_vm1, %v1752_v59  ;;  %v1356_v19 = vadd.f32 %v1355_v17, %v1354_v13  ;;  %v1462_v18 = vsel %vm1297_vm2, %v1400_v15, 0.0 }
 0x13d   : > { %v1457_v60 = vadd.f32 %v1456_v16, %v1455_v14  ;;  %1294 = vst.msk [vmem:[%s2214_s18 + $0x74] sm:$0xf] %vm1264_vm1, %v1750_v61  ;;  %v1458_v62 = vsel %vm1297_vm2, %v1398_v6, 0.0 }
 0x13e   : > { %v1358_v36 = vadd.f32 %v1357_v40, %v1356_v19 }
 0x13f   : > { %v1459_v8 = vadd.f32 %v1458_v62, %v1457_v60 }
 0x140   : > { %v1360_v22 = vadd.f32 %v1359_v21, %v1358_v36 }
 0x141   : > { %v1461_v24 = vadd.f32 %v1460_v20, %v1459_v8 }
 0x142   : > { %v1361_v26 = vrot.slane %v1360_v22, 4 }
 0x143   : > { %v1463_v51 = vadd.f32 %v1462_v18, %v1461_v24 }
 0x144   : > { %v1362_v63 = vadd.f32 %v1361_v26, %v1360_v22 }
 0x145   : > { %v1464_v27 = vrot.slane %v1463_v51, 4 }
 0x146   : > { %v1363_v1 = vrot.slane %v1362_v63, 2 }
 0x147   : > { %v1465_v53 = vadd.f32 %v1464_v27, %v1463_v51 }
 0x148   : > { %v1364_v54 = vadd.f32 %v1363_v1, %v1362_v63 }
 0x149   : > { %v1466_v28 = vrot.slane %v1465_v53, 2 }
 0x14a   : > { %v1365_v29 = vrot.slane %v1364_v54, 1 }
 0x14b   : > { %v1467_v30 = vadd.f32 %v1466_v28, %v1465_v53 }
 0x14c   : > { %v1366_v23 = vadd.f32 %v1365_v29, %v1364_v54 }
 0x14d   : > { %v1468_v31 = vrot.slane %v1467_v30, 1 }
 0x14e   : > { %1368 = vst.msk [vmem:[%s211_s21] sm:$0x1] %vm1367_vm3, %v1366_v23 }
 0x14f   : > { %v1469_v56 = vadd.f32 %v1468_v31, %v1467_v30 }
 0x151   : > { %1470 = vst.msk [vmem:[%s214_s24] sm:$0x1] %vm1367_vm3, %v1469_v56 }
 0x152 PF: > { %s15_s15 = sadd.s32 1, %s1987_s15  }
 0x153   : > { %p12_p4 = scmp.ge.s32.totalorder %s15_s15, 4  }
 0x155   :  { %14 = sbr.rel (!%p12_p4) target bundleno = 1 (0x1), region = 84 }

// kernel: generator_forward.16
= control target key start
LH: loop header
LB: loop body
LE: loop exit
PB: predicated region body
PF: predicated region fallthrough
CT: control target
= control target key end

     0   :  { %s422_s0 = inlined_call_operand.vmem [shape: bf16[128,128], index: 0, kind: input, shape index: {}]   ;;  %s423_s1 = inlined_call_operand.vmem [shape: f32[1,128], index: 1, kind: input, shape index: {}]   ;;  %s424_s2 = inlined_call_operand.vmem [shape: f32[1,128], index: 2, kind: input, shape index: {}]   ;;  %s425_s3 = inlined_call_operand.vmem [shape: bf16[128,128], index: 3, kind: output, shape index: {}]  }
   0x1   :  { %v227_v0 = vld [vmem:[%s422_s0] sm:$0xff]   ;;  %v298_v4 = vld [vmem:[%s422_s0 + $0x8] sm:$0xff]   ;;  %v299_v5 = vld [vmem:[%s422_s0 + $0x10] sm:$0xff]  }
   0x2   :  { %v338_v1 = vld [vmem:[%s423_s1] ss:$0 sm:$0xff]  ;;  %v228_v2 = vunpack.c.l.bf16 %v227_v0  ;;  %v229_v3 = vunpack.c.h.bf16 %v227_v0  ;;  %v300_v6 = vld [vmem:[%s422_s0 + $0x18] sm:$0xff]   ;;  %v232_v8 = vunpack.c.l.bf16 %v298_v4  ;;  %v233_v9 = vunpack.c.h.bf16 %v298_v4  ;;  %v302_v33 = vld [vmem:[%s422_s0 + $0x28] sm:$0xff]  }
   0x3   :  { %v352_v7 = vld [vmem:[%s424_s2] ss:$0 sm:$0xff]  ;;  %v236_v10 = vunpack.c.l.bf16 %v299_v5  ;;  %v237_v11 = vunpack.c.h.bf16 %v299_v5  ;;  %v240_v14 = vunpack.c.l.bf16 %v300_v6  ;;  %v241_v15 = vunpack.c.h.bf16 %v300_v6  ;;  %v303_v38 = vld [vmem:[%s422_s0 + $0x30] sm:$0xff]   ;;  %v304_v43 = vld [vmem:[%s422_s0 + $0x38] sm:$0xff]  }
   0x4   :  { %v53_v12 = vmul.f32 %v228_v2, %v338_v1  ;;  %v54_v13 = vmul.f32 %v229_v3, %v338_v1  ;;  %v55_v16 = vmul.f32 %v232_v8, %v338_v1  ;;  %v56_v17 = vmul.f32 %v233_v9, %v338_v1  ;;  %v301_v28 = vld [vmem:[%s422_s0 + $0x20] sm:$0xff]  }
   0x5   :  { %v57_v18 = vmul.f32 %v236_v10, %v338_v1  ;;  %v58_v19 = vmul.f32 %v237_v11, %v338_v1  ;;  %v59_v22 = vmul.f32 %v240_v14, %v338_v1  ;;  %v60_v23 = vmul.f32 %v241_v15, %v338_v1 }
   0x6   :  { %v76_v20 = vadd.f32 %v352_v7, %v53_v12  ;;  %v77_v21 = vadd.f32 %v352_v7, %v54_v13  ;;  %v78_v24 = vadd.f32 %v352_v7, %v55_v16  ;;  %v79_v25 = vadd.f32 %v352_v7, %v56_v17 }
   0x7   :  { %v80_v26 = vadd.f32 %v352_v7, %v57_v18  ;;  %v81_v27 = vadd.f32 %v352_v7, %v58_v19  ;;  %v82_v31 = vadd.f32 %v352_v7, %v59_v22  ;;  %v83_v32 = vadd.f32 %v352_v7, %v60_v23 }
   0x8   :  { %v92_v29 = vmax.f32 %v76_v20, 0.0  ;;  %v93_v30 = vmax.f32 %v77_v21, 0.0  ;;  %v94_v34 = vmax.f32 %v78_v24, 0.0  ;;  %v95_v35 = vmax.f32 %v79_v25, 0.0 }
   0x9   :  { %v96_v36 = vmax.f32 %v80_v26, 0.0  ;;  %v97_v37 = vmax.f32 %v81_v27, 0.0  ;;  %v98_v40 = vmax.f32 %v82_v31, 0.0  ;;  %v99_v41 = vmax.f32 %v83_v32, 0.0 }
   0xa   :  { %v261_v39 = vpack.c.bf16 %v93_v30, %v92_v29  ;;  %v244_v42 = vunpack.c.l.bf16 %v301_v28  ;;  %v266_v44 = vpack.c.bf16 %v95_v35, %v94_v34  ;;  %v245_v46 = vunpack.c.h.bf16 %v301_v28 }
   0xb   :  { %v271_v45 = vpack.c.bf16 %v97_v37, %v96_v36  ;;  %v248_v47 = vunpack.c.l.bf16 %v302_v33  ;;  %v276_v48 = vpack.c.bf16 %v99_v41, %v98_v40  ;;  %v249_v50 = vunpack.c.h.bf16 %v302_v33 }
   0xc   :  { %262 = vst [vmem:[%s425_s3] sm:$0xff] %v261_v39   ;;  %v61_v49 = vmul.f32 %v244_v42, %v338_v1  ;;  %v252_v51 = vunpack.c.l.bf16 %v303_v38  ;;  %305 = vst [vmem:[%s425_s3 + $0x8] sm:$0xff] %v266_v44   ;;  %v62_v52 = vmul.f32 %v245_v46, %v338_v1  ;;  %v253_v54 = vunpack.c.h.bf16 %v303_v38 }
   0xd   :  { %306 = vst [vmem:[%s425_s3 + $0x10] sm:$0xff] %v271_v45   ;;  %v63_v53 = vmul.f32 %v248_v47, %v338_v1  ;;  %v256_v55 = vunpack.c.l.bf16 %v304_v43  ;;  %307 = vst [vmem:[%s425_s3 + $0x18] sm:$0xff] %v276_v48   ;;  %v64_v57 = vmul.f32 %v249_v50, %v338_v1  ;;  %v257_v59 = vunpack.c.h.bf16 %v304_v43 }
   0xe   :  { %v84_v56 = vadd.f32 %v352_v7, %v61_v49  ;;  %v65_v58 = vmul.f32 %v252_v51, %v338_v1  ;;  %v85_v60 = vadd.f32 %v352_v7, %v62_v52  ;;  %v66_v62 = vmul.f32 %v253_v54, %v338_v1 }
   0xf   :  { %v86_v61 = vadd.f32 %v352_v7, %v63_v53  ;;  %v67_v63 = vmul.f32 %v256_v55, %v338_v1  ;;  %v87_v2 = vadd.f32 %v352_v7, %v64_v57  ;;  %v68_v4 = vmul.f32 %v257_v59, %v338_v1 }
  0x10   :  { %v100_v0 = vmax.f32 %v84_v56, 0.0  ;;  %v88_v3 = vadd.f32 %v352_v7, %v65_v58  ;;  %v101_v5 = vmax.f32 %v85_v60, 0.0  ;;  %v89_v8 = vadd.f32 %v352_v7, %v66_v62 }
  0x11   :  { %v102_v6 = vmax.f32 %v86_v61, 0.0  ;;  %v90_v9 = vadd.f32 %v352_v7, %v67_v63  ;;  %v103_v10 = vmax.f32 %v87_v2, 0.0  ;;  %v91_v12 = vadd.f32 %v352_v7, %v68_v4 }
  0x12   :  { %v104_v11 = vmax.f32 %v88_v3, 0.0  ;;  %v281_v13 = vpack.c.bf16 %v101_v5, %v100_v0  ;;  %v105_v14 = vmax.f32 %v89_v8, 0.0 }
  0x13   :  { %v106_v15 = vmax.f32 %v90_v9, 0.0  ;;  %v286_v16 = vpack.c.bf16 %v103_v10, %v102_v6  ;;  %v107_v17 = vmax.f32 %v91_v12, 0.0 }
  0x14   :  { %308 = vst [vmem:[%s425_s3 + $0x20] sm:$0xff] %v281_v13   ;;  %v291_v1 = vpack.c.bf16 %v105_v14, %v104_v11 }
  0x15   :  { %309 = vst [vmem:[%s425_s3 + $0x28] sm:$0xff] %v286_v16   ;;  %v296_v18 = vpack.c.bf16 %v107_v17, %v106_v15 }
  0x16   :  { %310 = vst [vmem:[%s425_s3 + $0x30] sm:$0xff] %v291_v1  }
  0x17   :  { %311 = vst [vmem:[%s425_s3 + $0x38] sm:$0xff] %v296_v18  }

// kernel: generator_forward.17
= control target key start
LH: loop header
LB: loop body
LE: loop exit
PB: predicated region body
PF: predicated region fallthrough
CT: control target
= control target key end

     0   :  { %s4960_s9 = smov 0   ;;  %s6160_s0 = inlined_call_operand.vmem [shape: bf16[2,1088,24], index: 0, kind: input, shape index: {}]   ;;  %s6161_s1 = inlined_call_operand.vmem [shape: bf16[3,24,12], index: 1, kind: input, shape index: {}]   ;;  %s6162_s2 = inlined_call_operand.vmem [shape: f32[2,1024,12], index: 2, kind: output, shape index: {}]  }
   0x1 LB: > { %s3569_s10 = sadd.s32 4294967295, %s4943_s9   ;;  %p3573_p0 = scmp.ge.s32.totalorder %s4943_s9, 1  ;;  %s4943_s9 = sphi %s4960_s9, %s12_s9  }
   0x2   : > { %p112_p1 = scmp.lt.s32.totalorder %s4943_s9, 3 }
   0x4   : > { %p113_p2 = pnand %p3573_p0, %p112_p1 }
   0x6   : > { %116 = sbr.rel (%p113_p2) target bundleno = 615 (0x267), region = 28 }
   0xb   : > { %v4525_v0 = vld [vmem:[%s6161_s1 + $0x14] ss:$0 sps:$4 sm:$0xff]   ;;  %vm806_vm0 = vcmask 1043456   ;;  %v4526_v1 = vld [vmem:[%s6161_s1 + $0xc] sm:$0xff]   ;;  %p134_p3 = scmp.lt.s32.totalorder %s3569_s10, 1  ;;  %vm613_vm1 = vcmask 195584  }
   0xc   : > { %4512 = vmatprep.subr.msk.bf16.mxu0 %vm806_vm0, %v4525_v0  ;;  %4513 = vmatprep.subr.msk.bf16.mxu1 %vm806_vm0, %v4525_v0  ;;  %v808_v2 = vsel %vm806_vm0, %v4525_v0, 0  ;;  %v4531_v3 = vld [vmem:[%s6161_s1 + $0x8] ss:$0 sps:$4 sm:$0xff]   ;;  %v4532_v4 = vld [vmem:[%s6161_s1 + $0x20] ss:$0 sps:$4 sm:$0xff]   ;;  %v4566_v10 = vld [vmem:[%s6161_s1 + $0x18] sm:$0xff]  }
   0xd   : > { %4113 = vmatpush3.bf16.msra.mxu0 %v808_v2  ;;  %4510 = vmatpush3.bf16.msra.mxu1 %v808_v2  ;;  %s6336_s10 = smov (!%p134_p3, %s3569_s10), 1  ;;  %v4565_v7 = vld [vmem:[%s6161_s1] sm:$0xff]   ;;  %v2582_v9 = vsel %vm806_vm0, %v4532_v4, 0  ;;  %v1381_v12 = vsel %vm806_vm0, %v4531_v3, 0  ;;  %vm3385_vm2 = vcmask 97280  }
   0xe   : > { %4114 = vmatprep.subr.bf16.mxu0 %v4526_v1  ;;  %4509 = vmatprep.subr.bf16.mxu1 %v4526_v1  ;;  %s4516_s19 = smul.u32 544, %s6336_s10  ;;  %s3913_s27 = sshll.u32 %s6336_s10, 10 }
   0xf   : > { %s5738_s30 = scalar_lea.vmem %s6162_s2, %s3913_s27 }
  0x10   : > { %s4989_s22 = scalar_lea.vmem %s6160_s0, %s4516_s19 }
  0x11   : > { %4115 = vmatpush3.bf16.msra.mxu0 %v4526_v1  ;;  %4511 = vmatpush3.bf16.msra.mxu1 %v4526_v1  ;;  %v4992_v5 = vld [vmem:[%s4989_s22 + $0x10] sm:$0xff]   ;;  %v5003_v8 = vld [vmem:[%s4989_s22 + $0x18] sm:$0xff]   ;;  %v5015_v13 = vld [vmem:[%s4989_s22 + $0x20] sm:$0xff]  }
  0x12   : > { %4514 = vmatprep.subr.msk.bf16.mxu1 %vm806_vm0, %v4531_v3  ;;  %4515 = vmatprep.subr.msk.bf16.mxu0 %vm806_vm0, %v4532_v4  ;;  %v4528_v6 = vld [vmem:[%s4989_s22 + $0x110] sm:$0xff]   ;;  %v4530_v11 = vld [vmem:[%s4989_s22 + $0x118] sm:$0xff]   ;;  %v4534_v14 = vld [vmem:[%s4989_s22 + $0x120] sm:$0xff]  }
  0x13   : > { %4116 = vmatprep.mubr.msk.bf16.mxu0 %vm613_vm1, %v4992_v5  ;;  %4180 = vmatprep.mubr.msk.bf16.mxu1 %vm613_vm1, %v4528_v6  ;;  %v5023_v15 = vld [vmem:[%s4989_s22 + $0x28] sm:$0xff]   ;;  %v5027_v17 = vld [vmem:[%s4989_s22 + $0x30] sm:$0xff]   ;;  %v5037_v19 = vld [vmem:[%s4989_s22 + $0x38] sm:$0xff]  }
  0x14   : > { %4117 = vmatmul.mubr.msk.bf16.vlgmr.msra.gmra.mxu0 %vm613_vm1, %v5003_v8  ;;  %4181 = vmatmul.mubr.msk.bf16.vlgmr.msra.gmra.mxu1 %vm613_vm1, %v4530_v11  ;;  %v4536_v16 = vld [vmem:[%s4989_s22 + $0x128] sm:$0xff]   ;;  %v4538_v18 = vld [vmem:[%s4989_s22 + $0x130] sm:$0xff]   ;;  %v4540_v20 = vld [vmem:[%s4989_s22 + $0x138] sm:$0xff]  }
  0x15   : > { %4377 = vmatpush3.bf16.msra.mxu0 %v2582_v9  ;;  %4245 = vmatpush3.bf16.msra.mxu1 %v1381_v12  ;;  %v5041_v21 = vld [vmem:[%s4989_s22 + $0x40] sm:$0xff]   ;;  %v5051_v23 = vld [vmem:[%s4989_s22 + $0x48] sm:$0xff]   ;;  %v5055_v25 = vld [vmem:[%s4989_s22 + $0x50] sm:$0xff]  }
  0x16   : > { %4120 = vmatprep.mubr.msk.bf16.mxu0 %vm613_vm1, %v5015_v13  ;;  %4184 = vmatprep.mubr.msk.bf16.mxu1 %vm613_vm1, %v4534_v14  ;;  %v4542_v22 = vld [vmem:[%s4989_s22 + $0x140] sm:$0xff]   ;;  %v4544_v24 = vld [vmem:[%s4989_s22 + $0x148] sm:$0xff]   ;;  %v4546_v26 = vld [vmem:[%s4989_s22 + $0x150] sm:$0xff]  }
  0x17   : > { %4246 = vmatprep.subr.bf16.mxu1 %v4565_v7  ;;  %4378 = vmatprep.subr.bf16.mxu0 %v4566_v10  ;;  %v5065_v27 = vld [vmem:[%s4989_s22 + $0x58] sm:$0xff]   ;;  %v5069_v29 = vld [vmem:[%s4989_s22 + $0x60] sm:$0xff]   ;;  %v5079_v31 = vld [vmem:[%s4989_s22 + $0x68] sm:$0xff]  }
  0x18   : > { %v4548_v28 = vld [vmem:[%s4989_s22 + $0x158] sm:$0xff]   ;;  %v4550_v30 = vld [vmem:[%s4989_s22 + $0x160] sm:$0xff]   ;;  %v4552_v32 = vld [vmem:[%s4989_s22 + $0x168] sm:$0xff]  }
  0x19   : > { %4379 = vmatpush3.bf16.msra.mxu0 %v4566_v10  ;;  %4247 = vmatpush3.bf16.msra.mxu1 %v4565_v7  ;;  %v5083_v33 = vld [vmem:[%s4989_s22 + $0x70] sm:$0xff]   ;;  %v5093_v35 = vld [vmem:[%s4989_s22 + $0x78] sm:$0xff]   ;;  %v5099_v37 = vld [vmem:[%s4989_s22 + $0x80] sm:$0xff]  }
  0x1a   : > { %v4554_v34 = vld [vmem:[%s4989_s22 + $0x170] sm:$0xff]   ;;  %v5096_v36 = vld [vmem:[%s4989_s22 + $0x178] sm:$0xff]   ;;  %v5102_v38 = vld [vmem:[%s4989_s22 + $0x180] sm:$0xff]  }
  0x1b   : > { %v5113_v39 = vld [vmem:[%s4989_s22 + $0x88] sm:$0xff]   ;;  %v5119_v41 = vld [vmem:[%s4989_s22 + $0x90] sm:$0xff]   ;;  %v5133_v43 = vld [vmem:[%s4989_s22 + $0x98] sm:$0xff]  }
  0x1c   : > { %4121 = vmatmul.mubr.msk.bf16.gmra.mxu0 %vm613_vm1, %v5023_v15  ;;  %4185 = vmatmul.mubr.msk.bf16.gmra.mxu1 %vm613_vm1, %v4536_v16  ;;  %v5116_v40 = vld [vmem:[%s4989_s22 + $0x188] sm:$0xff]   ;;  %v5122_v42 = vld [vmem:[%s4989_s22 + $0x190] sm:$0xff]   ;;  %v5136_v44 = vld [vmem:[%s4989_s22 + $0x198] sm:$0xff]  }
  0x1d   : > { %4124 = vmatprep.mubr.msk.bf16.mxu0 %vm613_vm1, %v5027_v17  ;;  %4188 = vmatprep.mubr.msk.bf16.mxu1 %vm613_vm1, %v4538_v18  ;;  %v5139_v45 = vld [vmem:[%s4989_s22 + $0xa0] sm:$0xff]   ;;  %v5153_v47 = vld [vmem:[%s4989_s22 + $0xa8] sm:$0xff]   ;;  %v5159_v49 = vld [vmem:[%s4989_s22 + $0xb0] sm:$0xff]  }
  0x1e   : > { %v5142_v46 = vld [vmem:[%s4989_s22 + $0x1a0] sm:$0xff]   ;;  %v5156_v48 = vld [vmem:[%s4989_s22 + $0x1a8] sm:$0xff]   ;;  %v5162_v50 = vld [vmem:[%s4989_s22 + $0x1b0] sm:$0xff]  }
  0x1f   : > { %v5173_v51 = vld [vmem:[%s4989_s22 + $0xb8] sm:$0xff]   ;;  %v5179_v53 = vld [vmem:[%s4989_s22 + $0xc0] sm:$0xff]   ;;  %v5193_v55 = vld [vmem:[%s4989_s22 + $0xc8] sm:$0xff]  }
  0x20   : > { %v5176_v52 = vld [vmem:[%s4989_s22 + $0x1b8] sm:$0xff]   ;;  %v5182_v54 = vld [vmem:[%s4989_s22 + $0x1c0] sm:$0xff]   ;;  %v4578_v56 = vld [vmem:[%s4989_s22 + $0x1c8] sm:$0xff]  }
  0x21   : > { %v5197_v57 = vld [vmem:[%s4989_s22 + $0xd0] sm:$0xff]   ;;  %v5207_v59 = vld [vmem:[%s4989_s22 + $0xd8] sm:$0xff]   ;;  %v5211_v61 = vld [vmem:[%s4989_s22 + $0xe0] sm:$0xff]  }
  0x22   : > { %v4580_v58 = vld [vmem:[%s4989_s22 + $0x1d0] sm:$0xff]   ;;  %v4582_v60 = vld [vmem:[%s4989_s22 + $0x1d8] sm:$0xff]   ;;  %v4584_v62 = vld [vmem:[%s4989_s22 + $0x1e0] sm:$0xff]  }
  0x23   : > { %v5221_v63 = vld [vmem:[%s4989_s22 + $0xe8] sm:$0xff]   ;;  %v5225_v1 = vld [vmem:[%s4989_s22 + $0xf0] sm:$0xff]   ;;  %v5235_v3 = vld [vmem:[%s4989_s22 + $0xf8] sm:$0xff]  }
  0x24   : > { %4125 = vmatmul.mubr.msk.bf16.gmra.mxu0 %vm613_vm1, %v5037_v19  ;;  %4189 = vmatmul.mubr.msk.bf16.gmra.mxu1 %vm613_vm1, %v4540_v20  ;;  %v4586_v0 = vld [vmem:[%s4989_s22 + $0x1e8] sm:$0xff]   ;;  %v4588_v2 = vld [vmem:[%s4989_s22 + $0x1f0] sm:$0xff]   ;;  %v4590_v4 = vld [vmem:[%s4989_s22 + $0x1f8] sm:$0xff]  }
  0x25   : > { %4128 = vmatprep.mubr.msk.bf16.mxu0 %vm613_vm1, %v5041_v21  ;;  %4192 = vmatprep.mubr.msk.bf16.mxu1 %vm613_vm1, %v4542_v22  ;;  %v5239_v6 = vld [vmem:[%s4989_s22 + $0x100] sm:$0xff]   ;;  %v5249_v9 = vld [vmem:[%s4989_s22 + $0x108] sm:$0xff]   ;;  %v4599_v18 = vld [vmem:[%s4989_s22 + $0x30] sm:$0xff]  }
  0x26   : > { %v4592_v7 = vld [vmem:[%s4989_s22 + $0x200] sm:$0xff]   ;;  %v4594_v10 = vld [vmem:[%s4989_s22 + $0x208] sm:$0xff]   ;;  %v4600_v20 = vld [vmem:[%s4989_s22 + $0x38] sm:$0xff]  }
  0x27   : > { %v4596_v11 = vld [vmem:[%s4989_s22 + $0x20] sm:$0xff]   ;;  %v4598_v14 = vld [vmem:[%s4989_s22 + $0x28] sm:$0xff]  }
  0x28   : > { %v4595_v12 = vld [vmem:[%s4989_s22] sm:$0xff]   ;;  %v4597_v16 = vld [vmem:[%s4989_s22 + $0x8] sm:$0xff]  }
  0x29   : > { %v4601_v22 = vld [vmem:[%s4989_s22 + $0x40] sm:$0xff]  }
  0x2c   : > { %4129 = vmatmul.mubr.msk.bf16.gmra.mxu0 %vm613_vm1, %v5051_v23  ;;  %4193 = vmatmul.mubr.msk.bf16.gmra.mxu1 %vm613_vm1, %v4544_v24  ;;  %v4602_v24 = vld [vmem:[%s4989_s22 + $0x48] sm:$0xff]  }
  0x2d   : > { %4132 = vmatprep.mubr.msk.bf16.mxu0 %vm613_vm1, %v5055_v25  ;;  %4196 = vmatprep.mubr.msk.bf16.mxu1 %vm613_vm1, %v4546_v26  ;;  %v4603_v26 = vld [vmem:[%s4989_s22 + $0x50] sm:$0xff]  }
  0x34   : > { %4133 = vmatmul.mubr.msk.bf16.gmra.mxu0 %vm613_vm1, %v5065_v27  ;;  %4197 = vmatmul.mubr.msk.bf16.gmra.mxu1 %vm613_vm1, %v4548_v28  ;;  %v4614_v28 = vld [vmem:[%s4989_s22 + $0xa8] sm:$0xff]  }
  0x35   : > { %4136 = vmatprep.mubr.msk.bf16.mxu0 %vm613_vm1, %v5069_v29  ;;  %4200 = vmatprep.mubr.msk.bf16.mxu1 %vm613_vm1, %v4550_v30 }
  0x3c   : > { %4137 = vmatmul.mubr.msk.bf16.gmra.mxu0 %vm613_vm1, %v5079_v31  ;;  %4201 = vmatmul.mubr.msk.bf16.gmra.mxu1 %vm613_vm1, %v4552_v32 }
  0x3d   : > { %4140 = vmatprep.mubr.msk.bf16.mxu0 %vm613_vm1, %v5083_v33  ;;  %4204 = vmatprep.mubr.msk.bf16.mxu1 %vm613_vm1, %v4554_v34 }
  0x44   : > { %4141 = vmatmul.mubr.msk.bf16.gmra.mxu0 %vm613_vm1, %v5093_v35  ;;  %4205 = vmatmul.mubr.msk.bf16.gmra.mxu1 %vm613_vm1, %v5096_v36 }
  0x45   : > { %4144 = vmatprep.mubr.msk.bf16.mxu0 %vm613_vm1, %v5099_v37  ;;  %4208 = vmatprep.mubr.msk.bf16.mxu1 %vm613_vm1, %v5102_v38 }
  0x4c   : > { %4145 = vmatmul.mubr.msk.bf16.gmra.mxu0 %vm613_vm1, %v5113_v39  ;;  %4209 = vmatmul.mubr.msk.bf16.gmra.mxu1 %vm613_vm1, %v5116_v40 }
  0x4d   : > { %4148 = vmatprep.mubr.msk.bf16.mxu0 %vm613_vm1, %v5119_v41  ;;  %4212 = vmatprep.mubr.msk.bf16.mxu1 %vm613_vm1, %v5122_v42 }
  0x54   : > { %4149 = vmatmul.mubr.msk.bf16.gmra.mxu0 %vm613_vm1, %v5133_v43  ;;  %4213 = vmatmul.mubr.msk.bf16.gmra.mxu1 %vm613_vm1, %v5136_v44 }
  0x55   : > { %4152 = vmatprep.mubr.msk.bf16.mxu0 %vm613_vm1, %v5139_v45  ;;  %4216 = vmatprep.mubr.msk.bf16.mxu1 %vm613_vm1, %v5142_v46 }
  0x5c   : > { %4153 = vmatmul.mubr.msk.bf16.gmra.mxu0 %vm613_vm1, %v5153_v47  ;;  %4217 = vmatmul.mubr.msk.bf16.gmra.mxu1 %vm613_vm1, %v5156_v48 }
  0x5d   : > { %4156 = vmatprep.mubr.msk.bf16.mxu0 %vm613_vm1, %v5159_v49  ;;  %4220 = vmatprep.mubr.msk.bf16.mxu1 %vm613_vm1, %v5162_v50 }
  0x64   : > { %4157 = vmatmul.mubr.msk.bf16.gmra.mxu0 %vm613_vm1, %v5173_v51  ;;  %4221 = vmatmul.mubr.msk.bf16.gmra.mxu1 %vm613_vm1, %v5176_v52 }
  0x65   : > { %4160 = vmatprep.mubr.msk.bf16.mxu0 %vm613_vm1, %v5179_v53  ;;  %4224 = vmatprep.mubr.msk.bf16.mxu1 %vm613_vm1, %v5182_v54 }
  0x6c   : > { %4161 = vmatmul.mubr.msk.bf16.gmra.mxu0 %vm613_vm1, %v5193_v55  ;;  %4225 = vmatmul.mubr.msk.bf16.gmra.mxu1 %vm613_vm1, %v4578_v56  ;;  %v4617_v56 = vld [vmem:[%s4989_s22 + $0xc0] sm:$0xff]  }
  0x6d   : > { %4164 = vmatprep.mubr.msk.bf16.mxu0 %vm613_vm1, %v5197_v57  ;;  %4228 = vmatprep.mubr.msk.bf16.mxu1 %vm613_vm1, %v4580_v58 }
  0x74   : > { %4165 = vmatmul.mubr.msk.bf16.gmra.mxu0 %vm613_vm1, %v5207_v59  ;;  %4229 = vmatmul.mubr.msk.bf16.gmra.mxu1 %vm613_vm1, %v4582_v60 }
  0x75   : > { %4168 = vmatprep.mubr.msk.bf16.mxu0 %vm613_vm1, %v5211_v61  ;;  %4232 = vmatprep.mubr.msk.bf16.mxu1 %vm613_vm1, %v4584_v62 }
  0x7c   : > { %4169 = vmatmul.mubr.msk.bf16.gmra.mxu0 %vm613_vm1, %v5221_v63  ;;  %4233 = vmatmul.mubr.msk.bf16.gmra.mxu1 %vm613_vm1, %v4586_v0 }
  0x7d   : > { %4172 = vmatprep.mubr.msk.bf16.mxu0 %vm613_vm1, %v5225_v1  ;;  %4236 = vmatprep.mubr.msk.bf16.mxu1 %vm613_vm1, %v4588_v2 }
  0x84   : > { %4173 = vmatmul.mubr.msk.bf16.gmra.mxu0 %vm613_vm1, %v5235_v3  ;;  %4237 = vmatmul.mubr.msk.bf16.gmra.mxu1 %vm613_vm1, %v4590_v4  ;;  %v4618_v4 = vld [vmem:[%s4989_s22 + $0xc8] sm:$0xff]  }
  0x85   : > { %4176 = vmatprep.mubr.msk.bf16.mxu0 %vm613_vm1, %v5239_v6  ;;  %4240 = vmatprep.mubr.msk.bf16.mxu1 %vm613_vm1, %v4592_v7 }
  0x8c   : > { %4177 = vmatmul.mubr.msk.bf16.gmra.mxu0 %vm613_vm1, %v5249_v9  ;;  %4241 = vmatmul.mubr.msk.bf16.gmra.mxu1 %vm613_vm1, %v4594_v10  ;;  %v4619_v10 = vld [vmem:[%s4989_s22 + $0xd0] sm:$0xff]  }
  0x8d   : > { %4380 = vmatprep.mubr.msk.bf16.mxu0 %vm613_vm1, %v4596_v11  ;;  %4248 = vmatprep.mubr.msk.bf16.mxu1 %vm613_vm1, %v4595_v12 }
  0x94   : > { %4381 = vmatmul.mubr.msk.bf16.vlgmr.msra.gmra.mxu0 %vm613_vm1, %v4598_v14  ;;  %4249 = vmatmul.mubr.msk.bf16.vlgmr.msra.gmra.mxu1 %vm613_vm1, %v4597_v16 }
  0x95   : > { %4384 = vmatprep.mubr.msk.bf16.mxu0 %vm613_vm1, %v4599_v18  ;;  %4252 = vmatprep.mubr.msk.bf16.mxu1 %vm613_vm1, %v4992_v5  ;;  %v4604_v5 = vld [vmem:[%s4989_s22 + $0x58] sm:$0xff]  }
  0x9c   : > { %4385 = vmatmul.mubr.msk.bf16.gmra.mxu0 %vm613_vm1, %v4600_v20  ;;  %4253 = vmatmul.mubr.msk.bf16.gmra.mxu1 %vm613_vm1, %v5003_v8  ;;  %v4605_v8 = vld [vmem:[%s4989_s22 + $0x60] sm:$0xff]   ;;  %v4620_v20 = vld [vmem:[%s4989_s22 + $0xd8] sm:$0xff]  }
  0x9d   : > { %4388 = vmatprep.mubr.msk.bf16.mxu0 %vm613_vm1, %v4601_v22  ;;  %4256 = vmatprep.mubr.msk.bf16.mxu1 %vm613_vm1, %v5015_v13  ;;  %v4606_v13 = vld [vmem:[%s4989_s22 + $0x68] sm:$0xff]  }
  0xa4   : > { %4389 = vmatmul.mubr.msk.bf16.gmra.mxu0 %vm613_vm1, %v4602_v24  ;;  %4257 = vmatmul.mubr.msk.bf16.gmra.mxu1 %vm613_vm1, %v5023_v15  ;;  %v4607_v15 = vld [vmem:[%s4989_s22 + $0x70] sm:$0xff]   ;;  %v4621_v24 = vld [vmem:[%s4989_s22 + $0xe0] sm:$0xff]  }
  0xa5   : > { %4392 = vmatprep.mubr.msk.bf16.mxu0 %vm613_vm1, %v4603_v26  ;;  %4260 = vmatprep.mubr.msk.bf16.mxu1 %vm613_vm1, %v5027_v17  ;;  %v4608_v17 = vld [vmem:[%s4989_s22 + $0x78] sm:$0xff]  }
  0xac   : > { %4393 = vmatmul.mubr.msk.bf16.gmra.mxu0 %vm613_vm1, %v4604_v5  ;;  %4261 = vmatmul.mubr.msk.bf16.gmra.mxu1 %vm613_vm1, %v5037_v19  ;;  %v4609_v19 = vld [vmem:[%s4989_s22 + $0x80] sm:$0xff]  }
  0xad   : > { %4396 = vmatprep.mubr.msk.bf16.mxu0 %vm613_vm1, %v4605_v8  ;;  %4264 = vmatprep.mubr.msk.bf16.mxu1 %vm613_vm1, %v5041_v21  ;;  %v4610_v21 = vld [vmem:[%s4989_s22 + $0x88] sm:$0xff]  }
  0xb4   : > { %4397 = vmatmul.mubr.msk.bf16.gmra.mxu0 %vm613_vm1, %v4606_v13  ;;  %4265 = vmatmul.mubr.msk.bf16.gmra.mxu1 %vm613_vm1, %v5051_v23  ;;  %v4611_v23 = vld [vmem:[%s4989_s22 + $0x90] sm:$0xff]  }
  0xb5   : > { %4400 = vmatprep.mubr.msk.bf16.mxu0 %vm613_vm1, %v4607_v15  ;;  %4268 = vmatprep.mubr.msk.bf16.mxu1 %vm613_vm1, %v5055_v25  ;;  %v4612_v25 = vld [vmem:[%s4989_s22 + $0x98] sm:$0xff]  }
  0xbc   : > { %4401 = vmatmul.mubr.msk.bf16.gmra.mxu0 %vm613_vm1, %v4608_v17  ;;  %4269 = vmatmul.mubr.msk.bf16.gmra.mxu1 %vm613_vm1, %v5065_v27  ;;  %v4613_v27 = vld [vmem:[%s4989_s22 + $0xa0] sm:$0xff]   ;;  %v4622_v17 = vld [vmem:[%s4989_s22 + $0xe8] sm:$0xff]  }
  0xbd   : > { %4404 = vmatprep.mubr.msk.bf16.mxu0 %vm613_vm1, %v4609_v19  ;;  %4272 = vmatprep.mubr.msk.bf16.mxu1 %vm613_vm1, %v5069_v29  ;;  %v4615_v29 = vld [vmem:[%s4989_s22 + $0xb0] sm:$0xff]  }
  0xc4   : > { %4405 = vmatmul.mubr.msk.bf16.gmra.mxu0 %vm613_vm1, %v4610_v21  ;;  %4273 = vmatmul.mubr.msk.bf16.gmra.mxu1 %vm613_vm1, %v5079_v31  ;;  %v4623_v21 = vld [vmem:[%s4989_s22 + $0xf0] sm:$0xff]  }
  0xc5   : > { %4408 = vmatprep.mubr.msk.bf16.mxu0 %vm613_vm1, %v4611_v23  ;;  %4276 = vmatprep.mubr.msk.bf16.mxu1 %vm613_vm1, %v5083_v33 }
  0xcc   : > { %4409 = vmatmul.mubr.msk.bf16.gmra.mxu0 %vm613_vm1, %v4612_v25  ;;  %4277 = vmatmul.mubr.msk.bf16.gmra.mxu1 %vm613_vm1, %v5093_v35  ;;  %v4616_v35 = vld [vmem:[%s4989_s22 + $0xb8] sm:$0xff]  }
  0xcd   : > { %4412 = vmatprep.mubr.msk.bf16.mxu0 %vm613_vm1, %v4613_v27  ;;  %4280 = vmatprep.mubr.msk.bf16.mxu1 %vm613_vm1, %v5099_v37 }
  0xd4   : > { %v5325_v30 = vpop.f32.mrf.mxu0  ;;  %4413 = vmatmul.mubr.msk.bf16.gmra.mxu0 %vm613_vm1, %v4614_v28  ;;  %v5328_v31 = vpop.f32.mrf.mxu1  ;;  %4281 = vmatmul.mubr.msk.bf16.gmra.mxu1 %vm613_vm1, %v5113_v39 }
  0xd5   : > { %6163 = vst [vmem:[#allocation2_spill] sm:$0xff] %v5328_v31  ;;  %4416 = vmatprep.mubr.msk.bf16.mxu0 %vm613_vm1, %v4615_v29  ;;  %4284 = vmatprep.mubr.msk.bf16.mxu1 %vm613_vm1, %v5119_v41  ;;  %v4638_v31 = vld [vmem:[%s4989_s22 + $0x168] sm:$0xff]  }
  0xd6   : > { %v5333_v32 = vpop.f32.mrf.mxu0  ;;  %v5337_v33 = vpop.f32.mrf.mxu1 }
  0xd7   : > { %6164 = vst [vmem:[#allocation3_spill] sm:$0xff] %v5337_v33 }
  0xd8   : > { %v5339_v34 = vpop.f32.mrf.mxu0  ;;  %v5342_v37 = vpop.f32.mrf.mxu1 }
  0xd9   : > { %6165 = vst [vmem:[#allocation4_spill] sm:$0xff] %v5342_v37 }
  0xda   : > { %v5345_v58 = vpop.f32.mrf.mxu0  ;;  %v5347_v39 = vpop.f32.mrf.mxu1 }
  0xdb   : > { %6166 = vst [vmem:[#allocation5_spill] sm:$0xff] %v5347_v39 }
  0xdc   : > { %v5349_v60 = vpop.f32.mrf.mxu0  ;;  %4417 = vmatmul.mubr.msk.bf16.gmra.mxu0 %vm613_vm1, %v4616_v35  ;;  %v5352_v62 = vpop.f32.mrf.mxu1  ;;  %4285 = vmatmul.mubr.msk.bf16.gmra.mxu1 %vm613_vm1, %v5133_v43  ;;  %v4624_v35 = vld [vmem:[%s4989_s22 + $0xf8] sm:$0xff]  }
  0xdd   : > { %6167 = vst [vmem:[#allocation6_spill] sm:$0xff] %v5352_v62  ;;  %4420 = vmatprep.mubr.msk.bf16.mxu0 %vm613_vm1, %v4617_v56  ;;  %4288 = vmatprep.mubr.msk.bf16.mxu1 %vm613_vm1, %v5139_v45  ;;  %v4636_v62 = vld [vmem:[%s4989_s22 + $0x158] sm:$0xff]  }
  0xde   : > { %v5357_v41 = vpop.f32.mrf.mxu0  ;;  %v5361_v0 = vpop.f32.mrf.mxu1 }
  0xdf   : > { %6168 = vst [vmem:[#allocation7_spill] sm:$0xff] %v5361_v0 }
  0xe0   : > { %v5363_v2 = vpop.f32.mrf.mxu0  ;;  %v5366_v7 = vpop.f32.mrf.mxu1 }
  0xe1   : > { %6169 = vst [vmem:[#allocation8_spill] sm:$0xff] %v5366_v7 }
  0xe2   : > { %v5369_v11 = vpop.f32.mrf.mxu0  ;;  %v5371_v43 = vpop.f32.mrf.mxu1 }
  0xe3   : > { %6170 = vst [vmem:[#allocation9_spill] sm:$0xff] %v5371_v43 }
  0xe4   : > { %v5373_v12 = vpop.f32.mrf.mxu0  ;;  %4421 = vmatmul.mubr.msk.bf16.gmra.mxu0 %vm613_vm1, %v4618_v4  ;;  %v5376_v14 = vpop.f32.mrf.mxu1  ;;  %4289 = vmatmul.mubr.msk.bf16.gmra.mxu1 %vm613_vm1, %v5153_v47  ;;  %v4625_v4 = vld [vmem:[%s4989_s22 + $0x100] sm:$0xff]  }
  0xe5   : > { %6171 = vst [vmem:[#allocation10_spill] sm:$0xff] %v5376_v14  ;;  %4424 = vmatprep.mubr.msk.bf16.mxu0 %vm613_vm1, %v4619_v10  ;;  %4292 = vmatprep.mubr.msk.bf16.mxu1 %vm613_vm1, %v5159_v49  ;;  %v4634_v14 = vld [vmem:[%s4989_s22 + $0x148] sm:$0xff]  }
  0xe6   : > { %v5381_v45 = vpop.f32.mrf.mxu0  ;;  %v5385_v16 = vpop.f32.mrf.mxu1 }
  0xe7   : > { %6172 = vst [vmem:[#allocation11_spill] sm:$0xff] %v5385_v16 }
  0xe8   : > { %v5387_v18 = vpop.f32.mrf.mxu0  ;;  %v5390_v22 = vpop.f32.mrf.mxu1 }
  0xe9   : > { %6173 = vst [vmem:[#allocation12_spill] sm:$0xff] %v5390_v22 }
  0xea   : > { %v5393_v26 = vpop.f32.mrf.mxu0  ;;  %v5395_v47 = vpop.f32.mrf.mxu1 }
  0xeb   : > { %6174 = vst [vmem:[#allocation13_spill] sm:$0xff] %v5395_v47 }
  0xec   : > { %v5397_v5 = vpop.f32.mrf.mxu0  ;;  %4425 = vmatmul.mubr.msk.bf16.gmra.mxu0 %vm613_vm1, %v4620_v20  ;;  %v5400_v8 = vpop.f32.mrf.mxu1  ;;  %4293 = vmatmul.mubr.msk.bf16.gmra.mxu1 %vm613_vm1, %v5173_v51 }
  0xed   : > { %6175 = vst [vmem:[#allocation14_spill] sm:$0xff] %v5400_v8  ;;  %4428 = vmatprep.mubr.msk.bf16.mxu0 %vm613_vm1, %v4621_v24  ;;  %4296 = vmatprep.mubr.msk.bf16.mxu1 %vm613_vm1, %v5179_v53  ;;  %v4632_v8 = vld [vmem:[%s4989_s22 + $0x138] sm:$0xff]  }
  0xee   : > { %v5405_v49 = vpop.f32.mrf.mxu0  ;;  %v5409_v13 = vpop.f32.mrf.mxu1 }
  0xef   : > { %6176 = vst [vmem:[#allocation15_spill] sm:$0xff] %v5409_v13 }
  0xf0   : > { %v5411_v15 = vpop.f32.mrf.mxu0  ;;  %v5414_v19 = vpop.f32.mrf.mxu1 }
  0xf1   : > { %6177 = vst [vmem:[#allocation16_spill] sm:$0xff] %v5414_v19 }
  0xf2   : > { %v5417_v23 = vpop.f32.mrf.mxu0  ;;  %v5419_v51 = vpop.f32.mrf.mxu1 }
  0xf3   : > { %6178 = vst [vmem:[#allocation17_spill] sm:$0xff] %v5419_v51 }
  0xf4   : > { %v5421_v25 = vpop.f32.mrf.mxu0  ;;  %4429 = vmatmul.mubr.msk.bf16.gmra.mxu0 %vm613_vm1, %v4622_v17  ;;  %v5424_v27 = vpop.f32.mrf.mxu1  ;;  %4297 = vmatmul.mubr.msk.bf16.gmra.mxu1 %vm613_vm1, %v5193_v55 }
  0xf5   : > { %6179 = vst [vmem:[#allocation18_spill] sm:$0xff] %v5424_v27  ;;  %4432 = vmatprep.mubr.msk.bf16.mxu0 %vm613_vm1, %v4623_v21  ;;  %4300 = vmatprep.mubr.msk.bf16.mxu1 %vm613_vm1, %v5197_v57 }
  0xf6   : > { %v5429_v53 = vpop.f32.mrf.mxu0  ;;  %v5433_v28 = vpop.f32.mrf.mxu1 }
  0xf7   : > { %6180 = vst [vmem:[#allocation19_spill] sm:$0xff] %v5433_v28 }
  0xf8   : > { %v5435_v29 = vpop.f32.mrf.mxu0  ;;  %v5438_v56 = vpop.f32.mrf.mxu1 }
  0xf9   : > { %6181 = vst [vmem:[#allocation20_spill] sm:$0xff] %v5438_v56 }
  0xfa   : > { %v5441_v10 = vpop.f32.mrf.mxu0  ;;  %v5443_v55 = vpop.f32.mrf.mxu1 }
  0xfb   : > { %6182 = vst [vmem:[#allocation21_spill] sm:$0xff] %v5443_v55  ;;  %v4626_v55 = vld [vmem:[%s4989_s22 + $0x108] sm:$0xff]  }
  0xfc   : > { %v5445_v20 = vpop.f32.mrf.mxu0  ;;  %4433 = vmatmul.mubr.msk.bf16.gmra.mxu0 %vm613_vm1, %v4624_v35  ;;  %v5448_v24 = vpop.f32.mrf.mxu1  ;;  %4301 = vmatmul.mubr.msk.bf16.gmra.mxu1 %vm613_vm1, %v5207_v59 }
  0xfd   : > { %6183 = vst [vmem:[#allocation22_spill] sm:$0xff] %v5448_v24  ;;  %4436 = vmatprep.mubr.msk.bf16.mxu0 %vm613_vm1, %v4625_v4  ;;  %4304 = vmatprep.mubr.msk.bf16.mxu1 %vm613_vm1, %v5211_v61  ;;  %v4627_v24 = vld [vmem:[%s4989_s22 + $0x110] sm:$0xff]  }
  0xfe   : > { %v5453_v57 = vpop.f32.mrf.mxu0  ;;  %v5457_v17 = vpop.f32.mrf.mxu1 }
  0xff   : > { %6184 = vst [vmem:[#allocation23_spill] sm:$0xff] %v5457_v17  ;;  %v4628_v17 = vld [vmem:[%s4989_s22 + $0x118] sm:$0xff]  }
 0x100   : > { %v5459_v21 = vpop.f32.mrf.mxu0  ;;  %v5462_v35 = vpop.f32.mrf.mxu1 }
 0x101   : > { %6185 = vst [vmem:[#allocation24_spill] sm:$0xff] %v5462_v35 }
 0x102   : > { %v5465_v56 = vpop.f32.mrf.mxu0  ;;  %v5467_v59 = vpop.f32.mrf.mxu1 }
 0x103   : > { %6186 = vst [vmem:[#allocation25_spill] sm:$0xff] %v5467_v59 }
 0x104   : > { %v5469_v4 = vpop.f32.mrf.mxu0  ;;  %4437 = vmatmul.mubr.msk.bf16.gmra.mxu0 %vm613_vm1, %v4626_v55  ;;  %v5472_v28 = vpop.f32.mrf.mxu1  ;;  %4305 = vmatmul.mubr.msk.bf16.gmra.mxu1 %vm613_vm1, %v5221_v63 }
 0x105   : > { %6187 = vst [vmem:[#allocation26_spill] sm:$0xff] %v5472_v28  ;;  %4440 = vmatprep.mubr.msk.bf16.mxu0 %vm613_vm1, %v4627_v24  ;;  %4308 = vmatprep.mubr.msk.bf16.mxu1 %vm613_vm1, %v5225_v1  ;;  %v4629_v28 = vld [vmem:[%s4989_s22 + $0x120] sm:$0xff]  }
 0x106   : > { %v5477_v61 = vpop.f32.mrf.mxu0  ;;  %v5481_v35 = vpop.f32.mrf.mxu1 }
 0x107   : > { %6188 = vst [vmem:[#allocation27_spill] sm:$0xff] %v5481_v35  ;;  %v4630_v35 = vld [vmem:[%s4989_s22 + $0x128] sm:$0xff]  }
 0x108   : > { %v5483_v59 = vpop.f32.mrf.mxu0  ;;  %v5486_v55 = vpop.f32.mrf.mxu1 }
 0x109   : > { %6189 = vst [vmem:[#allocation28_spill] sm:$0xff] %v5486_v55 }
 0x10a   : > { %v5489_v27 = vpop.f32.mrf.mxu0  ;;  %v5491_v63 = vpop.f32.mrf.mxu1 }
 0x10b   : > { %6190 = vst [vmem:[#allocation29_spill] sm:$0xff] %v5491_v63 }
 0x10c   : > { %v5493_v24 = vpop.f32.mrf.mxu0  ;;  %4441 = vmatmul.mubr.msk.bf16.gmra.mxu0 %vm613_vm1, %v4628_v17  ;;  %v5496_v51 = vpop.f32.mrf.mxu1  ;;  %4309 = vmatmul.mubr.msk.bf16.gmra.mxu1 %vm613_vm1, %v5235_v3 }
 0x10d   : > { %6191 = vst [vmem:[#allocation30_spill] sm:$0xff] %v5496_v51  ;;  %4444 = vmatprep.mubr.msk.bf16.mxu0 %vm613_vm1, %v4629_v28  ;;  %4312 = vmatprep.mubr.msk.bf16.mxu1 %vm613_vm1, %v5239_v6  ;;  %v4631_v51 = vld [vmem:[%s4989_s22 + $0x130] sm:$0xff]  }
 0x10e   : > { %v5501_v1 = vpop.f32.mrf.mxu0  ;;  %v5505_v55 = vpop.f32.mrf.mxu1 }
 0x10f   : > { %6192 = vst [vmem:[#allocation31_spill] sm:$0xff] %v5505_v55 }
 0x110   : > { %v5507_v63 = vpop.f32.mrf.mxu0  ;;  %v5510_v17 = vpop.f32.mrf.mxu1 }
 0x111   : > { %6193 = vst [vmem:[#allocation32_spill] sm:$0xff] %v5510_v17  ;;  %v4917_v17 = vld [vmem:[%s4989_s22 + $0x110] sm:$0xff]  }
 0x112   : > { %v5513_v19 = vpop.f32.mrf.mxu0  ;;  %v5515_v3 = vpop.f32.mrf.mxu1 }
 0x113   : > { %6194 = vst [vmem:[#allocation33_spill] sm:$0xff] %v5515_v3 }
 0x114   : > { %v5517_v28 = vpop.f32.mrf.mxu0  ;;  %4445 = vmatmul.mubr.msk.bf16.gmra.mxu0 %vm613_vm1, %v4630_v35  ;;  %v5520_v13 = vpop.f32.mrf.mxu1  ;;  %4313 = vmatmul.mubr.msk.bf16.gmra.mxu1 %vm613_vm1, %v5249_v9 }
 0x115   : > { %6195 = vst [vmem:[#allocation34_spill] sm:$0xff] %v5520_v13  ;;  %4448 = vmatprep.mubr.msk.bf16.mxu0 %vm613_vm1, %v4631_v51  ;;  %4316 = vmatprep.mubr.msk.bf16.mxu1 %vm613_vm1, %v4917_v17  ;;  %v4633_v13 = vld [vmem:[%s4989_s22 + $0x140] sm:$0xff]   ;;  %v4918_v17 = vld [vmem:[%s4989_s22 + $0x118] sm:$0xff]  }
 0x116   : > { %v5525_v6 = vpop.f32.mrf.mxu0  ;;  %v5529_v55 = vpop.f32.mrf.mxu1 }
 0x117   : > { %6196 = vst [vmem:[#allocation35_spill] sm:$0xff] %v5529_v55 }
 0x118   : > { %v5531_v3 = vpop.f32.mrf.mxu0  ;;  %v5534_v35 = vpop.f32.mrf.mxu1 }
 0x119   : > { %6197 = vst [vmem:[#allocation36_spill] sm:$0xff] %v5534_v35  ;;  %v4919_v35 = vld [vmem:[%s4989_s22 + $0x120] sm:$0xff]  }
 0x11a   : > { %v5537_v47 = vpop.f32.mrf.mxu0  ;;  %v5539_v9 = vpop.f32.mrf.mxu1 }
 0x11b   : > { %6198 = vst [vmem:[#allocation37_spill] sm:$0xff] %v5539_v9 }
 0x11c   : > { %v5541_v51 = vpop.f32.mrf.mxu0  ;;  %4449 = vmatmul.mubr.msk.bf16.gmra.mxu0 %vm613_vm1, %v4632_v8  ;;  %v5544_v22 = vpop.f32.mrf.mxu1  ;;  %4317 = vmatmul.mubr.msk.bf16.gmra.mxu1 %vm613_vm1, %v4918_v17 }
 0x11d   : > { %6199 = vst [vmem:[#allocation38_spill] sm:$0xff] %v5544_v22  ;;  %4452 = vmatprep.mubr.msk.bf16.mxu0 %vm613_vm1, %v4633_v13  ;;  %4320 = vmatprep.mubr.msk.bf16.mxu1 %vm613_vm1, %v4919_v35  ;;  %v4635_v22 = vld [vmem:[%s4989_s22 + $0x150] sm:$0xff]   ;;  %v4920_v35 = vld [vmem:[%s4989_s22 + $0x128] sm:$0xff]  }
 0x11e   : > { %v5549_v55 = vpop.f32.mrf.mxu0  ;;  %v5553_v16 = vpop.f32.mrf.mxu1 }
 0x11f   : > { %6200 = vst [vmem:[#allocation39_spill] sm:$0xff] %v5553_v16 }
 0x120   : > { %v5555_v9 = vpop.f32.mrf.mxu0  ;;  %v5558_v8 = vpop.f32.mrf.mxu1 }
 0x121   : > { %6201 = vst [vmem:[#allocation40_spill] sm:$0xff] %v5558_v8  ;;  %v4921_v8 = vld [vmem:[%s4989_s22 + $0x130] sm:$0xff]  }
 0x122   : > { %v5561_v43 = vpop.f32.mrf.mxu0  ;;  %v5563_v17 = vpop.f32.mrf.mxu1 }
 0x123   : > { %6202 = vst [vmem:[#allocation41_spill] sm:$0xff] %v5563_v17 }
 0x124   : > { %v5565_v13 = vpop.f32.mrf.mxu0  ;;  %4453 = vmatmul.mubr.msk.bf16.gmra.mxu0 %vm613_vm1, %v4634_v14  ;;  %v5568_v7 = vpop.f32.mrf.mxu1  ;;  %4321 = vmatmul.mubr.msk.bf16.gmra.mxu1 %vm613_vm1, %v4920_v35 }
 0x125   : > { %6203 = vst [vmem:[#allocation42_spill] sm:$0xff] %v5568_v7  ;;  %4456 = vmatprep.mubr.msk.bf16.mxu0 %vm613_vm1, %v4635_v22  ;;  %4324 = vmatprep.mubr.msk.bf16.mxu1 %vm613_vm1, %v4921_v8  ;;  %v4637_v7 = vld [vmem:[%s4989_s22 + $0x160] sm:$0xff]   ;;  %v4922_v8 = vld [vmem:[%s4989_s22 + $0x138] sm:$0xff]  }
 0x126   : > { %v5573_v16 = vpop.f32.mrf.mxu0  ;;  %v5577_v0 = vpop.f32.mrf.mxu1 }
 0x127   : > { %6204 = vst [vmem:[#allocation43_spill] sm:$0xff] %v5577_v0 }
 0x128   : > { %v5579_v17 = vpop.f32.mrf.mxu0  ;;  %v5582_v14 = vpop.f32.mrf.mxu1 }
 0x129   : > { %6205 = vst [vmem:[#allocation44_spill] sm:$0xff] %v5579_v17  ;;  %6206 = vst [vmem:[#allocation45_spill] sm:$0xff] %v5582_v14  ;;  %v4923_v14 = vld [vmem:[%s4989_s22 + $0x140] sm:$0xff]  }
 0x12a   : > { %v5585_v39 = vpop.f32.mrf.mxu0  ;;  %v5587_v35 = vpop.f32.mrf.mxu1 }
 0x12b   : > { %6207 = vst [vmem:[#allocation46_spill] sm:$0xff] %v5585_v39  ;;  %6208 = vst [vmem:[#allocation47_spill] sm:$0xff] %v5587_v35 }
 0x12c   : > { %v5589_v22 = vpop.f32.mrf.mxu0  ;;  %4457 = vmatmul.mubr.msk.bf16.gmra.mxu0 %vm613_vm1, %v4636_v62  ;;  %v5592_v37 = vpop.f32.mrf.mxu1  ;;  %4325 = vmatmul.mubr.msk.bf16.gmra.mxu1 %vm613_vm1, %v4922_v8 }
 0x12d   : > { %6209 = vst [vmem:[#allocation48_spill] sm:$0xff] %v5589_v22  ;;  %6210 = vst [vmem:[#allocation49_spill] sm:$0xff] %v5592_v37  ;;  %4460 = vmatprep.mubr.msk.bf16.mxu0 %vm613_vm1, %v4637_v7  ;;  %4328 = vmatprep.mubr.msk.bf16.mxu1 %vm613_vm1, %v4923_v14  ;;  %v4639_v37 = vld [vmem:[%s4989_s22 + $0x170] sm:$0xff]   ;;  %v4924_v14 = vld [vmem:[%s4989_s22 + $0x148] sm:$0xff]  }
 0x12e   : > { %v5597_v0 = vpop.f32.mrf.mxu0  ;;  %v5601_v33 = vpop.f32.mrf.mxu1 }
 0x12f   : > { %6211 = vst [vmem:[#allocation50_spill] sm:$0xff] %v5597_v0  ;;  %6212 = vst [vmem:[#allocation51_spill] sm:$0xff] %v5601_v33 }
 0x130   : > { %v5603_v35 = vpop.f32.mrf.mxu0  ;;  %v5606_v62 = vpop.f32.mrf.mxu1 }
 0x131   : > { %6213 = vst [vmem:[#allocation52_spill] sm:$0xff] %v5603_v35  ;;  %6214 = vst [vmem:[#allocation53_spill] sm:$0xff] %v5606_v62  ;;  %v4925_v62 = vld [vmem:[%s4989_s22 + $0x150] sm:$0xff]  }
 0x132   : > { %v5609_v22 = vpop.f32.mrf.mxu0  ;;  %v5611_v8 = vpop.f32.mrf.mxu1 }
 0x133   : > { %6215 = vst [vmem:[#allocation54_spill] sm:$0xff] %v5609_v22  ;;  %6216 = vst [vmem:[#allocation55_spill] sm:$0xff] %v5611_v8 }
 0x134   : > { %v5613_v7 = vpop.f32.mrf.mxu0  ;;  %4461 = vmatmul.mubr.msk.bf16.gmra.mxu0 %vm613_vm1, %v4638_v31  ;;  %v5616_v0 = vpop.f32.mrf.mxu1  ;;  %4329 = vmatmul.mubr.msk.bf16.gmra.mxu1 %vm613_vm1, %v4924_v14 }
 0x135   : > { %6217 = vst [vmem:[#allocation56_spill] sm:$0xff] %v5613_v7  ;;  %6218 = vst [vmem:[#allocation57_spill] sm:$0xff] %v5616_v0  ;;  %4464 = vmatprep.mubr.msk.bf16.mxu0 %vm613_vm1, %v4639_v37  ;;  %4332 = vmatprep.mubr.msk.bf16.mxu1 %vm613_vm1, %v4925_v62  ;;  %v4640_v7 = vld [vmem:[%s4989_s22 + $0x178] sm:$0xff]   ;;  %v4641_v0 = vld [vmem:[%s4989_s22 + $0x180] sm:$0xff]  }
 0x136   : > { %v5621_v33 = vpop.f32.mrf.mxu0  ;;  %v5625_v22 = vpop.f32.mrf.mxu1  ;;  %v4926_v62 = vld [vmem:[%s4989_s22 + $0x158] sm:$0xff]  }
 0x137   : > { %6219 = vst [vmem:[#allocation58_spill] sm:$0xff] %v5621_v33  ;;  %6220 = vst [vmem:[#allocation59_spill] sm:$0xff] %v5625_v22 }
 0x138   : > { %v5627_v8 = vpop.f32.mrf.mxu0  ;;  %v5630_v31 = vpop.f32.mrf.mxu1 }
 0x139   : > { %6221 = vst [vmem:[#allocation60_spill] sm:$0xff] %v5627_v8  ;;  %6222 = vst [vmem:[#allocation61_spill] sm:$0xff] %v5630_v31  ;;  %v4927_v31 = vld [vmem:[%s4989_s22 + $0x160] sm:$0xff]  }
 0x13a   : > { %v5633_v35 = vpop.f32.mrf.mxu0  ;;  %v5635_v14 = vpop.f32.mrf.mxu1 }
 0x13b   : > { %6223 = vst [vmem:[#allocation62_spill] sm:$0xff] %v5633_v35  ;;  %6224 = vst [vmem:[#allocation63_spill] sm:$0xff] %v5635_v14 }
 0x13c   : > { %v5637_v37 = vpop.f32.mrf.mxu0  ;;  %4465 = vmatmul.mubr.msk.bf16.gmra.mxu0 %vm613_vm1, %v4640_v7  ;;  %v5640_v33 = vpop.f32.mrf.mxu1  ;;  %4333 = vmatmul.mubr.msk.bf16.gmra.mxu1 %vm613_vm1, %v4926_v62 }
 0x13d   : > { %6225 = vst [vmem:[#allocation64_spill] sm:$0xff] %v5637_v37  ;;  %6226 = vst [vmem:[#allocation65_spill] sm:$0xff] %v5640_v33  ;;  %4468 = vmatprep.mubr.msk.bf16.mxu0 %vm613_vm1, %v4641_v0  ;;  %4336 = vmatprep.mubr.msk.bf16.mxu1 %vm613_vm1, %v4927_v31  ;;  %v4642_v37 = vld [vmem:[%s4989_s22 + $0x188] sm:$0xff]   ;;  %v4643_v33 = vld [vmem:[%s4989_s22 + $0x190] sm:$0xff]  }
 0x13e   : > { %v5645_v22 = vpop.f32.mrf.mxu0  ;;  %v5649_v35 = vpop.f32.mrf.mxu1  ;;  %v4928_v31 = vld [vmem:[%s4989_s22 + $0x168] sm:$0xff]  }
 0x13f   : > { %6227 = vst [vmem:[#allocation66_spill] sm:$0xff] %v5645_v22  ;;  %6228 = vst [vmem:[#allocation67_spill] sm:$0xff] %v5649_v35 }
 0x140   : > { %v5651_v14 = vpop.f32.mrf.mxu0  ;;  %v5654_v7 = vpop.f32.mrf.mxu1 }
 0x141   : > { %6229 = vst [vmem:[#allocation68_spill] sm:$0xff] %v5651_v14  ;;  %6230 = vst [vmem:[#allocation69_spill] sm:$0xff] %v5654_v7  ;;  %v4929_v7 = vld [vmem:[%s4989_s22 + $0x170] sm:$0xff]  }
 0x142   : > { %v5657_v8 = vpop.f32.mrf.mxu0  ;;  %v5659_v62 = vpop.f32.mrf.mxu1 }
 0x143   : > { %6231 = vst [vmem:[#allocation70_spill] sm:$0xff] %v5657_v8  ;;  %6232 = vst [vmem:[#allocation71_spill] sm:$0xff] %v5659_v62 }
 0x144   : > { %v5661_v0 = vpop.f32.mrf.mxu0  ;;  %4469 = vmatmul.mubr.msk.bf16.gmra.mxu0 %vm613_vm1, %v4642_v37  ;;  %v5664_v22 = vpop.f32.mrf.mxu1  ;;  %4337 = vmatmul.mubr.msk.bf16.gmra.mxu1 %vm613_vm1, %v4928_v31 }
 0x145   : > { %6233 = vst [vmem:[#allocation72_spill] sm:$0xff] %v5661_v0  ;;  %6234 = vst [vmem:[#allocation73_spill] sm:$0xff] %v5664_v22  ;;  %4472 = vmatprep.mubr.msk.bf16.mxu0 %vm613_vm1, %v4643_v33  ;;  %4340 = vmatprep.mubr.msk.bf16.mxu1 %vm613_vm1, %v4929_v7  ;;  %v4644_v0 = vld [vmem:[%s4989_s22 + $0x198] sm:$0xff]   ;;  %v4645_v22 = vld [vmem:[%s4989_s22 + $0x1a0] sm:$0xff]  }
 0x146   : > { %v5669_v35 = vpop.f32.mrf.mxu0  ;;  %v5673_v14 = vpop.f32.mrf.mxu1 }
 0x147   : > { %6235 = vst [vmem:[#allocation74_spill] sm:$0xff] %v5669_v35  ;;  %6236 = vst [vmem:[#allocation75_spill] sm:$0xff] %v5673_v14 }
 0x148   : > { %v5675_v62 = vpop.f32.mrf.mxu0  ;;  %v5678_v37 = vpop.f32.mrf.mxu1 }
 0x149   : > { %6237 = vst [vmem:[#allocation76_spill] sm:$0xff] %v5675_v62  ;;  %6238 = vst [vmem:[#allocation77_spill] sm:$0xff] %v5678_v37 }
 0x14a   : > { %v5681_v8 = vpop.f32.mrf.mxu0  ;;  %v5683_v31 = vpop.f32.mrf.mxu1 }
 0x14b   : > { %6239 = vst [vmem:[#allocation78_spill] sm:$0xff] %v5681_v8  ;;  %6240 = vst [vmem:[#allocation79_spill] sm:$0xff] %v5683_v31  ;;  %v4646_v31 = vld [vmem:[%s4989_s22 + $0x1a8] sm:$0xff]   ;;  %v4648_v8 = vld [vmem:[%s4989_s22 + $0x1b8] sm:$0xff]  }
 0x14c   : > { %v5685_v33 = vpop.f32.mrf.mxu0  ;;  %4473 = vmatmul.mubr.msk.bf16.gmra.mxu0 %vm613_vm1, %v4644_v0  ;;  %v5688_v35 = vpop.f32.mrf.mxu1  ;;  %4341 = vmatmul.mubr.msk.bf16.gmra.mxu1 %vm613_vm1, %v5096_v36  ;;  %v4647_v0 = vld [vmem:[%s4989_s22 + $0x1b0] sm:$0xff]  }
 0x14d   : > { %6241 = vst [vmem:[#allocation80_spill] sm:$0xff] %v5685_v33  ;;  %6242 = vst [vmem:[#allocation81_spill] sm:$0xff] %v5688_v35  ;;  %4476 = vmatprep.mubr.msk.bf16.mxu0 %vm613_vm1, %v4645_v22  ;;  %4344 = vmatprep.mubr.msk.bf16.mxu1 %vm613_vm1, %v5102_v38 }
 0x14e   : > { %v5693_v7 = vpop.f32.mrf.mxu0  ;;  %v5697_v37 = vpop.f32.mrf.mxu1 }
 0x14f   : > { %6243 = vst [vmem:[#allocation82_spill] sm:$0xff] %v5693_v7  ;;  %6244 = vst [vmem:[#allocation83_spill] sm:$0xff] %v5697_v37 }
 0x150   : > { %v5699_v14 = vpop.f32.mrf.mxu0  ;;  %v5702_v33 = vpop.f32.mrf.mxu1 }
 0x151   : > { %6245 = vst [vmem:[#allocation84_spill] sm:$0xff] %v5699_v14  ;;  %6246 = vst [vmem:[#allocation85_spill] sm:$0xff] %v5702_v33 }
 0x152   : > { %v5705_v35 = vpop.f32.mrf.mxu0  ;;  %v5707_v36 = vpop.f32.mrf.mxu1 }
 0x153   : > { %6247 = vst [vmem:[#allocation86_spill] sm:$0xff] %v5705_v35  ;;  %6248 = vst [vmem:[#allocation87_spill] sm:$0xff] %v5707_v36 }
 0x154   : > { %v4382_v22 = vpop.f32.mrf.mxu0  ;;  %4477 = vmatmul.mubr.msk.bf16.gmra.mxu0 %vm613_vm1, %v4646_v31  ;;  %v4250_v7 = vpop.f32.mrf.mxu1  ;;  %4345 = vmatmul.mubr.msk.bf16.gmra.mxu1 %vm613_vm1, %v5116_v40  ;;  %v4649_v31 = vld [vmem:[%s4989_s22 + $0x1c0] sm:$0xff]  }
 0x155   : > { %4480 = vmatprep.mubr.msk.bf16.mxu0 %vm613_vm1, %v4647_v0  ;;  %v1426_v38 = vadd.f32 %v4250_v7, %v5325_v30  ;;  %4348 = vmatprep.mubr.msk.bf16.mxu1 %vm613_vm1, %v5122_v42 }
 0x156   : > { %v2618_v37 = vpop.f32.mrf.mxu0  ;;  %v1417_v33 = vpop.f32.mrf.mxu1 }
 0x157   : > { %v3131_v35 = vadd.f32 %v4382_v22, %v1426_v38  ;;  %v1418_v14 = vadd.f32 %v1417_v33, %v5333_v32 }
 0x158   : > { %v4383_v36 = vpop.f32.mrf.mxu0  ;;  %v4251_v62 = vpop.f32.mrf.mxu1 }
 0x159   : > { %4661 = vtanh.f32 %v3131_v35  ;;  %v3129_v39 = vadd.f32 %v2618_v37, %v1418_v14  ;;  %v1429_v40 = vadd.f32 %v4251_v62, %v5339_v34  ;;  %v4650_v37 = vld [vmem:[%s4989_s22 + $0x1c8] sm:$0xff]  }
 0x15a   : > { %v2621_v17 = vpop.f32.mrf.mxu0  ;;  %v1420_v0 = vpop.f32.mrf.mxu1 }
 0x15b   : > { %4663 = vtanh.f32 %v3129_v39  ;;  %v3132_v30 = vadd.f32 %v4383_v36, %v1429_v40  ;;  %v1421_v7 = vadd.f32 %v1420_v0, %v5345_v58  ;;  %v4651_v36 = vld [vmem:[%s4989_s22 + $0x1d0] sm:$0xff]  }
 0x15c   : > { %v4386_v42 = vpop.f32.mrf.mxu0  ;;  %4481 = vmatmul.mubr.msk.bf16.gmra.mxu0 %vm613_vm1, %v4648_v8  ;;  %v4254_v32 = vpop.f32.mrf.mxu1  ;;  %4349 = vmatmul.mubr.msk.bf16.gmra.mxu1 %vm613_vm1, %v5136_v44 }
 0x15d   : > { %4484 = vmatprep.mubr.msk.bf16.mxu0 %vm613_vm1, %v4649_v31  ;;  %4665 = vtanh.f32 %v3132_v30  ;;  %v3130_v34 = vadd.f32 %v2621_v17, %v1421_v7  ;;  %v1442_v35 = vadd.f32 %v4254_v32, %v5349_v60  ;;  %4352 = vmatprep.mubr.msk.bf16.mxu1 %vm613_vm1, %v5142_v46  ;;  %v4652_v32 = vld [vmem:[%s4989_s22 + $0x1d8] sm:$0xff]  }
 0x15e   : > { %v2634_v39 = vpop.f32.mrf.mxu0  ;;  %v1433_v58 = vpop.f32.mrf.mxu1 }
 0x15f   : > { %4667 = vtanh.f32 %v3130_v34  ;;  %v3135_v14 = vadd.f32 %v4386_v42, %v1442_v35  ;;  %v1434_v8 = vadd.f32 %v1433_v58, %v5357_v41 }
 0x160   : > { %v4387_v62 = vpop.f32.mrf.mxu0  ;;  %v4255_v33 = vpop.f32.mrf.mxu1 }
 0x161   : > { %4669 = vtanh.f32 %v3135_v14  ;;  %v3133_v44 = vadd.f32 %v2634_v39, %v1434_v8  ;;  %v1445_v17 = vadd.f32 %v4255_v33, %v5363_v2  ;;  %v4653_v39 = vld [vmem:[%s4989_s22 + $0x1e0] sm:$0xff]  }
 0x162   : > { %v2637_v22 = vpop.f32.mrf.mxu0  ;;  %v1436_v60 = vpop.f32.mrf.mxu1 }
 0x163   : > { %4671 = vtanh.f32 %v3133_v44  ;;  %v3136_v38 = vadd.f32 %v4387_v62, %v1445_v17  ;;  %v1437_v46 = vadd.f32 %v1436_v60, %v5369_v11 }
 0x164   : > { %v4390_v31 = vpop.f32.mrf.mxu0  ;;  %4485 = vmatmul.mubr.msk.bf16.gmra.mxu0 %vm613_vm1, %v4650_v37  ;;  %v4258_v41 = vpop.f32.mrf.mxu1  ;;  %4353 = vmatmul.mubr.msk.bf16.gmra.mxu1 %vm613_vm1, %v5156_v48 }
 0x165   : > { %4488 = vmatprep.mubr.msk.bf16.mxu0 %vm613_vm1, %v4651_v36  ;;  %4673 = vtanh.f32 %v3136_v38  ;;  %v3134_v2 = vadd.f32 %v2637_v22, %v1437_v46  ;;  %v1458_v11 = vadd.f32 %v4258_v41, %v5373_v12  ;;  %4356 = vmatprep.mubr.msk.bf16.mxu1 %vm613_vm1, %v5162_v50  ;;  %v4654_v46 = vld [vmem:[%s4989_s22 + $0x1e8] sm:$0xff]  }
 0x166   : > { %v2650_v40 = vpop.f32.mrf.mxu0  ;;  %v4662_v0 = vpop.eup %4661 }
 0x167   : > { %v1449_v30 = vpop.f32.mrf.mxu1  ;;  %3388 = vst.msk [vmem:[%s5738_s30 + $0x10] sm:$0xff] %vm3385_vm2, %v4662_v0  ;;  %4675 = vtanh.f32 %v3134_v2  ;;  %v3139_v7 = vadd.f32 %v4390_v31, %v1458_v11  ;;  %v4655_v2 = vld [vmem:[%s4989_s22 + $0x1f0] sm:$0xff]  }
 0x168   : > { %v1450_v48 = vadd.f32 %v1449_v30, %v5381_v45  ;;  %v4391_v42 = vpop.f32.mrf.mxu0  ;;  %v4664_v34 = vpop.eup %4663 }
 0x169   : > { %v4259_v35 = vpop.f32.mrf.mxu1  ;;  %3386 = vst.msk [vmem:[%s5738_s30] sm:$0xff] %vm3385_vm2, %v4664_v34  ;;  %4677 = vtanh.f32 %v3139_v7 }
 0x16a   : > { %v3137_v12 = vadd.f32 %v2650_v40, %v1450_v48  ;;  %v1461_v50 = vadd.f32 %v4259_v35, %v5387_v18  ;;  %v2653_v58 = vpop.f32.mrf.mxu0  ;;  %v4666_v14 = vpop.eup %4665  ;;  %v4931_v35 = vld [vmem:[%s4989_s22 + $0x1d0] sm:$0xff]  }
 0x16b   : > { %v1452_v8 = vpop.f32.mrf.mxu1  ;;  %3389 = vst.msk [vmem:[%s5738_s30 + $0x18] sm:$0xff] %vm3385_vm2, %v4666_v14 }
 0x16c   : > { %4679 = vtanh.f32 %v3137_v12  ;;  %v3140_v62 = vadd.f32 %v4391_v42, %v1461_v50  ;;  %v1453_v45 = vadd.f32 %v1452_v8, %v5393_v26  ;;  %v4394_v37 = vpop.f32.mrf.mxu0  ;;  %4489 = vmatmul.mubr.msk.bf16.gmra.mxu0 %vm613_vm1, %v4652_v32  ;;  %v4668_v33 = vpop.eup %4667  ;;  %4357 = vmatmul.mubr.msk.bf16.gmra.mxu1 %vm613_vm1, %v5176_v52  ;;  %v4930_v32 = vld [vmem:[%s4989_s22 + $0x1c8] sm:$0xff]   ;;  %v4656_v8 = vld [vmem:[%s4989_s22 + $0x1f8] sm:$0xff]  }
 0x16d   : > { %v4262_v36 = vpop.f32.mrf.mxu1  ;;  %4492 = vmatprep.mubr.msk.bf16.mxu0 %vm613_vm1, %v4653_v39  ;;  %3387 = vst.msk [vmem:[%s5738_s30 + $0x8] sm:$0xff] %vm3385_vm2, %v4668_v33  ;;  %4360 = vmatprep.mubr.msk.bf16.mxu1 %vm613_vm1, %v5182_v54 }
 0x16e   : > { %4681 = vtanh.f32 %v3140_v62  ;;  %v3138_v18 = vadd.f32 %v2653_v58, %v1453_v45  ;;  %v1474_v44 = vadd.f32 %v4262_v36, %v5397_v5  ;;  %v2666_v26 = vpop.f32.mrf.mxu0  ;;  %v4670_v17 = vpop.eup %4669 }
 0x16f   : > { %v1465_v22 = vpop.f32.mrf.mxu1  ;;  %3392 = vst.msk [vmem:[%s5738_s30 + $0x30] sm:$0xff] %vm3385_vm2, %v4670_v17 }
 0x170   : > { %4683 = vtanh.f32 %v3138_v18  ;;  %v3143_v52 = vadd.f32 %v4394_v37, %v1474_v44  ;;  %v1466_v60 = vadd.f32 %v1465_v22, %v5405_v49  ;;  %v4395_v38 = vpop.f32.mrf.mxu0  ;;  %v4672_v31 = vpop.eup %4671  ;;  %v4657_v37 = vld [vmem:[%s4989_s22 + $0x200] sm:$0xff]  }
 0x171   : > { %v4263_v41 = vpop.f32.mrf.mxu1  ;;  %3390 = vst.msk [vmem:[%s5738_s30 + $0x20] sm:$0xff] %vm3385_vm2, %v4672_v31 }
 0x172   : > { %4685 = vtanh.f32 %v3143_v52  ;;  %v3141_v5 = vadd.f32 %v2666_v26, %v1466_v60  ;;  %v1477_v54 = vadd.f32 %v4263_v41, %v5411_v15  ;;  %v2669_v11 = vpop.f32.mrf.mxu0  ;;  %v4674_v40 = vpop.eup %4673  ;;  %v4932_v60 = vld [vmem:[%s4989_s22 + $0x1d8] sm:$0xff]  }
 0x173   : > { %v1468_v0 = vpop.f32.mrf.mxu1  ;;  %3393 = vst.msk [vmem:[%s5738_s30 + $0x38] sm:$0xff] %vm3385_vm2, %v4674_v40 }
 0x174   : > { %4687 = vtanh.f32 %v3141_v5  ;;  %v3144_v49 = vadd.f32 %v4395_v38, %v1477_v54  ;;  %v1469_v30 = vadd.f32 %v1468_v0, %v5417_v23  ;;  %v4398_v7 = vpop.f32.mrf.mxu0  ;;  %4493 = vmatmul.mubr.msk.bf16.gmra.mxu0 %vm613_vm1, %v4654_v46  ;;  %v4676_v48 = vpop.eup %4675  ;;  %4361 = vmatmul.mubr.msk.bf16.gmra.mxu1 %vm613_vm1, %v4930_v32  ;;  %v4933_v46 = vld [vmem:[%s4989_s22 + $0x1e0] sm:$0xff]  }
 0x175   : > { %v4266_v42 = vpop.f32.mrf.mxu1  ;;  %4496 = vmatprep.mubr.msk.bf16.mxu0 %vm613_vm1, %v4655_v2  ;;  %3391 = vst.msk [vmem:[%s5738_s30 + $0x28] sm:$0xff] %vm3385_vm2, %v4676_v48  ;;  %4364 = vmatprep.mubr.msk.bf16.mxu1 %vm613_vm1, %v4931_v35  ;;  %v4934_v35 = vld [vmem:[%s4989_s22 + $0x1e8] sm:$0xff]  }
 0x176   : > { %4689 = vtanh.f32 %v3144_v49  ;;  %v3142_v15 = vadd.f32 %v2669_v11, %v1469_v30  ;;  %v1490_v23 = vadd.f32 %v4266_v42, %v5421_v25  ;;  %v2682_v34 = vpop.f32.mrf.mxu0  ;;  %v4678_v39 = vpop.eup %4677  ;;  %v4658_v11 = vld [vmem:[%s4989_s22 + $0x208] sm:$0xff]   ;;  %v4659_v49 = vld [vmem:[%s4989_s22 + $0x210] sm:$0xff]  }
 0x177   : > { %v1481_v12 = vpop.f32.mrf.mxu1  ;;  %3396 = vst.msk [vmem:[%s5738_s30 + $0x50] sm:$0xff] %vm3385_vm2, %v4678_v39 }
 0x178   : > { %4691 = vtanh.f32 %v3142_v15  ;;  %v3147_v50 = vadd.f32 %v4398_v7, %v1490_v23  ;;  %v1482_v58 = vadd.f32 %v1481_v12, %v5429_v53  ;;  %v4399_v14 = vpop.f32.mrf.mxu0  ;;  %v4935_v12 = vld [vmem:[%s4989_s22 + $0x1f0] sm:$0xff]  }
 0x179   : > { %v4680_v62 = vpop.eup %4679  ;;  %v4267_v45 = vpop.f32.mrf.mxu1 }
 0x17a   : > { %3394 = vst.msk [vmem:[%s5738_s30 + $0x40] sm:$0xff] %vm3385_vm2, %v4680_v62  ;;  %4693 = vtanh.f32 %v3147_v50  ;;  %v3145_v25 = vadd.f32 %v2682_v34, %v1482_v58  ;;  %v1493_v33 = vadd.f32 %v4267_v45, %v5435_v29  ;;  %v2685_v36 = vpop.f32.mrf.mxu0  ;;  %v4660_v45 = vld [vmem:[%s4989_s22 + $0x218] sm:$0xff]  }
 0x17b   : > { %v4682_v18 = vpop.eup %4681  ;;  %v1484_v44 = vpop.f32.mrf.mxu1 }
 0x17c   : > { %3397 = vst.msk [vmem:[%s5738_s30 + $0x58] sm:$0xff] %vm3385_vm2, %v4682_v18  ;;  %4695 = vtanh.f32 %v3145_v25  ;;  %v3148_v53 = vadd.f32 %v4399_v14, %v1493_v33  ;;  %v1485_v26 = vadd.f32 %v1484_v44, %v5441_v10  ;;  %v4402_v17 = vpop.f32.mrf.mxu0  ;;  %4497 = vmatmul.mubr.msk.bf16.gmra.mxu0 %vm613_vm1, %v4656_v8  ;;  %4365 = vmatmul.mubr.msk.bf16.gmra.mxu1 %vm613_vm1, %v4932_v60 }
 0x17d   : > { %v4684_v22 = vpop.eup %4683  ;;  %v4270_v52 = vpop.f32.mrf.mxu1  ;;  %4500 = vmatprep.mubr.msk.bf16.mxu0 %vm613_vm1, %v4657_v37  ;;  %4368 = vmatprep.mubr.msk.bf16.mxu1 %vm613_vm1, %v4933_v46 }
 0x17e   : > { %3395 = vst.msk [vmem:[%s5738_s30 + $0x48] sm:$0xff] %vm3385_vm2, %v4684_v22  ;;  %4697 = vtanh.f32 %v3148_v53  ;;  %v3146_v29 = vadd.f32 %v2685_v36, %v1485_v26  ;;  %v1506_v10 = vadd.f32 %v4270_v52, %v5445_v20  ;;  %v2698_v38 = vpop.f32.mrf.mxu0  ;;  %v4936_v52 = vld [vmem:[%s4989_s22 + $0x1f8] sm:$0xff]  }
 0x17f   : > { %v4686_v31 = vpop.eup %4685  ;;  %v1497_v41 = vpop.f32.mrf.mxu1 }
 0x180   : > { %3400 = vst.msk [vmem:[%s5738_s30 + $0x70] sm:$0xff] %vm3385_vm2, %v4686_v31  ;;  %4699 = vtanh.f32 %v3146_v29  ;;  %v3151_v2 = vadd.f32 %v4402_v17, %v1506_v10  ;;  %v1498_v5 = vadd.f32 %v1497_v41, %v5453_v57  ;;  %v4403_v54 = vpop.f32.mrf.mxu0 }
 0x181   : > { %v4688_v40 = vpop.eup %4687  ;;  %v4271_v0 = vpop.f32.mrf.mxu1 }
 0x182   : > { %3398 = vst.msk [vmem:[%s5738_s30 + $0x60] sm:$0xff] %vm3385_vm2, %v4688_v40  ;;  %4701 = vtanh.f32 %v3151_v2  ;;  %v3149_v20 = vadd.f32 %v2698_v38, %v1498_v5  ;;  %v1509_v30 = vadd.f32 %v4271_v0, %v5459_v21  ;;  %v2701_v7 = vpop.f32.mrf.mxu0 }
 0x183   : > { %v4690_v48 = vpop.eup %4689  ;;  %v1500_v42 = vpop.f32.mrf.mxu1 }
 0x184   : > { %3401 = vst.msk [vmem:[%s5738_s30 + $0x78] sm:$0xff] %vm3385_vm2, %v4690_v48  ;;  %4703 = vtanh.f32 %v3149_v20  ;;  %v3152_v57 = vadd.f32 %v4403_v54, %v1509_v30  ;;  %v1501_v32 = vadd.f32 %v1500_v42, %v5465_v56  ;;  %v4406_v15 = vpop.f32.mrf.mxu0  ;;  %4501 = vmatmul.mubr.msk.bf16.gmra.mxu0 %vm613_vm1, %v4658_v11  ;;  %4369 = vmatmul.mubr.msk.bf16.gmra.mxu1 %vm613_vm1, %v4934_v35 }
 0x185   : > { %v4692_v23 = vpop.eup %4691  ;;  %v4274_v34 = vpop.f32.mrf.mxu1  ;;  %4504 = vmatprep.mubr.msk.bf16.mxu0 %vm613_vm1, %v4659_v49  ;;  %4372 = vmatprep.mubr.msk.bf16.mxu1 %vm613_vm1, %v4935_v12 }
 0x186   : > { %3399 = vst.msk [vmem:[%s5738_s30 + $0x68] sm:$0xff] %vm3385_vm2, %v4692_v23  ;;  %4705 = vtanh.f32 %v3152_v57  ;;  %v3150_v21 = vadd.f32 %v2701_v7, %v1501_v32  ;;  %v1522_v39 = vadd.f32 %v4274_v34, %v5469_v4  ;;  %v2714_v56 = vpop.f32.mrf.mxu0 }
 0x187   : > { %v4694_v50 = vpop.eup %4693  ;;  %v1513_v58 = vpop.f32.mrf.mxu1 }
 0x188   : > { %3404 = vst.msk [vmem:[%s5738_s30 + $0x90] sm:$0xff] %vm3385_vm2, %v4694_v50  ;;  %4707 = vtanh.f32 %v3150_v21  ;;  %v3155_v14 = vadd.f32 %v4406_v15, %v1522_v39  ;;  %v1514_v8 = vadd.f32 %v1513_v58, %v5477_v61  ;;  %v4407_v62 = vpop.f32.mrf.mxu0 }
 0x189   : > { %v4696_v37 = vpop.eup %4695  ;;  %v4275_v25 = vpop.f32.mrf.mxu1 }
 0x18a   : > { %3402 = vst.msk [vmem:[%s5738_s30 + $0x80] sm:$0xff] %vm3385_vm2, %v4696_v37  ;;  %4709 = vtanh.f32 %v3155_v14  ;;  %v3153_v4 = vadd.f32 %v2714_v56, %v1514_v8  ;;  %v1525_v33 = vadd.f32 %v4275_v25, %v5483_v59  ;;  %v2717_v36 = vpop.f32.mrf.mxu0 }
 0x18b   : > { %v4698_v18 = vpop.eup %4697  ;;  %v1516_v44 = vpop.f32.mrf.mxu1 }
 0x18c   : > { %3405 = vst.msk [vmem:[%s5738_s30 + $0x98] sm:$0xff] %vm3385_vm2, %v4698_v18  ;;  %4711 = vtanh.f32 %v3153_v4  ;;  %v3156_v61 = vadd.f32 %v4407_v62, %v1525_v33  ;;  %v1517_v53 = vadd.f32 %v1516_v44, %v5489_v27  ;;  %v4410_v26 = vpop.f32.mrf.mxu0  ;;  %4505 = vmatmul.mubr.msk.bf16.gmra.mxu0 %vm613_vm1, %v4660_v45  ;;  %4373 = vmatmul.mubr.msk.bf16.gmra.mxu1 %vm613_vm1, %v4936_v52 }
 0x18d   : > { %v4700_v17 = vpop.eup %4699  ;;  %v4278_v22 = vpop.f32.mrf.mxu1 }
 0x18e   : > { %3403 = vst.msk [vmem:[%s5738_s30 + $0x88] sm:$0xff] %vm3385_vm2, %v4700_v17  ;;  %4713 = vtanh.f32 %v3156_v61  ;;  %v3154_v59 = vadd.f32 %v2717_v36, %v1517_v53  ;;  %v1538_v60 = vadd.f32 %v4278_v22, %v5493_v24  ;;  %v2730_v29 = vpop.f32.mrf.mxu0 }
 0x18f   : > { %v4702_v10 = vpop.eup %4701  ;;  %v1529_v38 = vpop.f32.mrf.mxu1 }
 0x190   : > { %3408 = vst.msk [vmem:[%s5738_s30 + $0xb0] sm:$0xff] %vm3385_vm2, %v4702_v10  ;;  %4715 = vtanh.f32 %v3154_v59  ;;  %v3159_v27 = vadd.f32 %v4410_v26, %v1538_v60  ;;  %v1530_v46 = vadd.f32 %v1529_v38, %v5501_v1  ;;  %v4411_v31 = vpop.f32.mrf.mxu0 }
 0x191   : > { %v4704_v41 = vpop.eup %4703  ;;  %v4279_v2 = vpop.f32.mrf.mxu1 }
 0x192   : > { %3406 = vst.msk [vmem:[%s5738_s30 + $0xa0] sm:$0xff] %vm3385_vm2, %v4704_v41  ;;  %4717 = vtanh.f32 %v3159_v27  ;;  %v3157_v5 = vadd.f32 %v2730_v29, %v1530_v46  ;;  %v1541_v24 = vadd.f32 %v4279_v2, %v5507_v63  ;;  %v2733_v54 = vpop.f32.mrf.mxu0  ;;  %v6249_v2 = vld [vmem:[#allocation44_spill] sm:$0xff] }
 0x193   : > { %v4706_v11 = vpop.eup %4705  ;;  %v1532_v40 = vpop.f32.mrf.mxu1 }
 0x194   : > { %3409 = vst.msk [vmem:[%s5738_s30 + $0xb8] sm:$0xff] %vm3385_vm2, %v4706_v11  ;;  %4719 = vtanh.f32 %v3157_v5  ;;  %v3160_v0 = vadd.f32 %v4411_v31, %v1541_v24  ;;  %v1533_v1 = vadd.f32 %v1532_v40, %v5513_v19  ;;  %v4414_v49 = vpop.f32.mrf.mxu0  ;;  %v6250_v40 = vld [vmem:[#allocation46_spill] sm:$0xff] }
 0x195   : > { %v4708_v20 = vpop.eup %4707  ;;  %v4282_v30 = vpop.f32.mrf.mxu1 }
 0x196   : > { %3407 = vst.msk [vmem:[%s5738_s30 + $0xa8] sm:$0xff] %vm3385_vm2, %v4708_v20  ;;  %4721 = vtanh.f32 %v3160_v0  ;;  %v3158_v7 = vadd.f32 %v2733_v54, %v1533_v1  ;;  %v1554_v63 = vadd.f32 %v4282_v30, %v5517_v28  ;;  %v2746_v48 = vpop.f32.mrf.mxu0  ;;  %v6251_v30 = vld [vmem:[#allocation48_spill] sm:$0xff] }
 0x197   : > { %v4710_v42 = vpop.eup %4709  ;;  %v1545_v57 = vpop.f32.mrf.mxu1 }
 0x198   : > { %3412 = vst.msk [vmem:[%s5738_s30 + $0xd0] sm:$0xff] %vm3385_vm2, %v4710_v42  ;;  %4723 = vtanh.f32 %v3158_v7  ;;  %v3163_v32 = vadd.f32 %v4414_v49, %v1554_v63  ;;  %v1546_v19 = vadd.f32 %v1545_v57, %v5525_v6  ;;  %v4415_v15 = vpop.f32.mrf.mxu0 }
 0x199   : > { %v4712_v23 = vpop.eup %4711  ;;  %v4283_v34 = vpop.f32.mrf.mxu1 }
 0x19a   : > { %3410 = vst.msk [vmem:[%s5738_s30 + $0xc0] sm:$0xff] %vm3385_vm2, %v4712_v23  ;;  %4725 = vtanh.f32 %v3163_v32  ;;  %v3161_v35 = vadd.f32 %v2746_v48, %v1546_v19  ;;  %v1557_v28 = vadd.f32 %v4283_v34, %v5531_v3  ;;  %v2749_v21 = vpop.f32.mrf.mxu0  ;;  %v6252_v32 = vld [vmem:[#allocation50_spill] sm:$0xff] }
 0x19b   : > { %v4714_v39 = vpop.eup %4713  ;;  %v1548_v56 = vpop.f32.mrf.mxu1 }
 0x19c   : > { %3413 = vst.msk [vmem:[%s5738_s30 + $0xd8] sm:$0xff] %vm3385_vm2, %v4714_v39  ;;  %4727 = vtanh.f32 %v3161_v35  ;;  %v3164_v12 = vadd.f32 %v4415_v15, %v1557_v28  ;;  %v1549_v6 = vadd.f32 %v1548_v56, %v5537_v47  ;;  %v4418_v50 = vpop.f32.mrf.mxu0  ;;  %v6253_v28 = vld [vmem:[#allocation52_spill] sm:$0xff] }
 0x19d   : > { %v4716_v58 = vpop.eup %4715  ;;  %v4286_v14 = vpop.f32.mrf.mxu1 }
 0x19e   : > { %3411 = vst.msk [vmem:[%s5738_s30 + $0xc8] sm:$0xff] %vm3385_vm2, %v4716_v58  ;;  %4729 = vtanh.f32 %v3164_v12  ;;  %v3162_v8 = vadd.f32 %v2749_v21, %v1549_v6  ;;  %v1570_v3 = vadd.f32 %v4286_v14, %v5541_v51  ;;  %v2762_v62 = vpop.f32.mrf.mxu0 }
 0x19f   : > { %v4718_v45 = vpop.eup %4717  ;;  %v1561_v37 = vpop.f32.mrf.mxu1 }
 0x1a0   : > { %3416 = vst.msk [vmem:[%s5738_s30 + $0xf0] sm:$0xff] %vm3385_vm2, %v4718_v45  ;;  %4731 = vtanh.f32 %v3162_v8  ;;  %v3167_v25 = vadd.f32 %v4418_v50, %v1570_v3  ;;  %v1562_v47 = vadd.f32 %v1561_v37, %v5549_v55  ;;  %v4419_v4 = vpop.f32.mrf.mxu0  ;;  %v6254_v50 = vld [vmem:[#allocation54_spill] sm:$0xff]  ;;  %v6255_v45 = vld [vmem:[#allocation56_spill] sm:$0xff] }
 0x1a1   : > { %v4720_v33 = vpop.eup %4719  ;;  %v4287_v36 = vpop.f32.mrf.mxu1 }
 0x1a2   : > { %3414 = vst.msk [vmem:[%s5738_s30 + $0xe0] sm:$0xff] %vm3385_vm2, %v4720_v33  ;;  %4733 = vtanh.f32 %v3167_v25  ;;  %v3165_v18 = vadd.f32 %v2762_v62, %v1562_v47  ;;  %v1573_v51 = vadd.f32 %v4287_v36, %v5555_v9  ;;  %v2765_v44 = vpop.f32.mrf.mxu0  ;;  %v6256_v36 = vld [vmem:[#allocation58_spill] sm:$0xff] }
 0x1a3   : > { %v4722_v61 = vpop.eup %4721  ;;  %v1564_v53 = vpop.f32.mrf.mxu1 }
 0x1a4   : > { %3417 = vst.msk [vmem:[%s5738_s30 + $0xf8] sm:$0xff] %vm3385_vm2, %v4722_v61  ;;  %4735 = vtanh.f32 %v3165_v18  ;;  %v3168_v26 = vadd.f32 %v4419_v4, %v1573_v51  ;;  %v1565_v55 = vadd.f32 %v1564_v53, %v5561_v43  ;;  %v4422_v17 = vpop.f32.mrf.mxu0 }
 0x1a5   : > { %v4724_v22 = vpop.eup %4723  ;;  %v4290_v52 = vpop.f32.mrf.mxu1 }
 0x1a6   : > { %3415 = vst.msk [vmem:[%s5738_s30 + $0xe8] sm:$0xff] %vm3385_vm2, %v4724_v22  ;;  %4737 = vtanh.f32 %v3168_v26  ;;  %v3166_v59 = vadd.f32 %v2765_v44, %v1565_v55  ;;  %v1586_v9 = vadd.f32 %v4290_v52, %v5565_v13  ;;  %v2778_v60 = vpop.f32.mrf.mxu0  ;;  %v6257_v26 = vld [vmem:[#allocation60_spill] sm:$0xff] }
 0x1a7   : > { %v4726_v29 = vpop.eup %4725  ;;  %v1577_v10 = vpop.f32.mrf.mxu1 }
 0x1a8   : > { %3420 = vst.msk [vmem:[%s5738_s30 + $0x110] sm:$0xff] %vm3385_vm2, %v4726_v29  ;;  %4739 = vtanh.f32 %v3166_v59  ;;  %v3171_v38 = vadd.f32 %v4422_v17, %v1586_v9  ;;  %v1578_v43 = vadd.f32 %v1577_v10, %v5573_v16  ;;  %v4423_v27 = vpop.f32.mrf.mxu0  ;;  %v6258_v9 = vld [vmem:[#allocation62_spill] sm:$0xff] }
 0x1a9   : > { %v4728_v46 = vpop.eup %4727  ;;  %v4291_v31 = vpop.f32.mrf.mxu1 }
 0x1aa   : > { %3418 = vst.msk [vmem:[%s5738_s30 + $0x100] sm:$0xff] %vm3385_vm2, %v4728_v46  ;;  %4741 = vtanh.f32 %v3171_v38  ;;  %v3169_v41 = vadd.f32 %v2778_v60, %v1578_v43  ;;  %v1589_v13 = vadd.f32 %v4291_v31, %v6249_v2  ;;  %v2781_v5 = vpop.f32.mrf.mxu0 }
 0x1ab   : > { %v4730_v24 = vpop.eup %4729  ;;  %v1580_v54 = vpop.f32.mrf.mxu1 }
 0x1ac   : > { %3421 = vst.msk [vmem:[%s5738_s30 + $0x118] sm:$0xff] %vm3385_vm2, %v4730_v24  ;;  %4743 = vtanh.f32 %v3169_v41  ;;  %v3172_v11 = vadd.f32 %v4423_v27, %v1589_v13  ;;  %v1581_v16 = vadd.f32 %v1580_v54, %v6250_v40  ;;  %v4426_v0 = vpop.f32.mrf.mxu0  ;;  %v6259_v27 = vld [vmem:[#allocation64_spill] sm:$0xff] }
 0x1ad   : > { %v4732_v1 = vpop.eup %4731  ;;  %v4294_v49 = vpop.f32.mrf.mxu1 }
 0x1ae   : > { %3419 = vst.msk [vmem:[%s5738_s30 + $0x108] sm:$0xff] %vm3385_vm2, %v4732_v1  ;;  %4745 = vtanh.f32 %v3172_v11  ;;  %v3170_v20 = vadd.f32 %v2781_v5, %v1581_v16  ;;  %v1602_v7 = vadd.f32 %v4294_v49, %v6251_v30  ;;  %v2794_v63 = vpop.f32.mrf.mxu0  ;;  %v6260_v5 = vld [vmem:[#allocation66_spill] sm:$0xff] }
 0x1af   : > { %v4734_v48 = vpop.eup %4733  ;;  %v1593_v42 = vpop.f32.mrf.mxu1 }
 0x1b0   : > { %3424 = vst.msk [vmem:[%s5738_s30 + $0x130] sm:$0xff] %vm3385_vm2, %v4734_v48  ;;  %4747 = vtanh.f32 %v3170_v20  ;;  %v3175_v57 = vadd.f32 %v4426_v0, %v1602_v7  ;;  %v1594_v19 = vadd.f32 %v1593_v42, %v6252_v32  ;;  %v4427_v15 = vpop.f32.mrf.mxu0  ;;  %v6261_v0 = vld [vmem:[#allocation68_spill] sm:$0xff] }
 0x1b1   : > { %v4736_v23 = vpop.eup %4735  ;;  %v4295_v34 = vpop.f32.mrf.mxu1 }
 0x1b2   : > { %3422 = vst.msk [vmem:[%s5738_s30 + $0x120] sm:$0xff] %vm3385_vm2, %v4736_v23  ;;  %4749 = vtanh.f32 %v3175_v57  ;;  %v3173_v35 = vadd.f32 %v2794_v63, %v1594_v19  ;;  %v1605_v21 = vadd.f32 %v4295_v34, %v6253_v28  ;;  %v2797_v39 = vpop.f32.mrf.mxu0  ;;  %v6262_v63 = vld [vmem:[#allocation70_spill] sm:$0xff] }
 0x1b3   : > { %v4738_v56 = vpop.eup %4737  ;;  %v1596_v12 = vpop.f32.mrf.mxu1 }
 0x1b4   : > { %3425 = vst.msk [vmem:[%s5738_s30 + $0x138] sm:$0xff] %vm3385_vm2, %v4738_v56  ;;  %4751 = vtanh.f32 %v3173_v35  ;;  %v3176_v6 = vadd.f32 %v4427_v15, %v1605_v21  ;;  %v1597_v58 = vadd.f32 %v1596_v12, %v6254_v50  ;;  %v4430_v14 = vpop.f32.mrf.mxu0  ;;  %v6263_v15 = vld [vmem:[#allocation72_spill] sm:$0xff] }
 0x1b5   : > { %v4740_v8 = vpop.eup %4739  ;;  %v4298_v3 = vpop.f32.mrf.mxu1 }
 0x1b6   : > { %3423 = vst.msk [vmem:[%s5738_s30 + $0x128] sm:$0xff] %vm3385_vm2, %v4740_v8  ;;  %4753 = vtanh.f32 %v3176_v6  ;;  %v3174_v62 = vadd.f32 %v2797_v39, %v1597_v58  ;;  %v1618_v37 = vadd.f32 %v4298_v3, %v6255_v45  ;;  %v2810_v25 = vpop.f32.mrf.mxu0  ;;  %v6264_v39 = vld [vmem:[#allocation74_spill] sm:$0xff] }
 0x1b7   : > { %v4742_v47 = vpop.eup %4741  ;;  %v1609_v4 = vpop.f32.mrf.mxu1 }
 0x1b8   : > { %3428 = vst.msk [vmem:[%s5738_s30 + $0x150] sm:$0xff] %vm3385_vm2, %v4742_v47  ;;  %4755 = vtanh.f32 %v3174_v62  ;;  %v3179_v33 = vadd.f32 %v4430_v14, %v1618_v37  ;;  %v1610_v18 = vadd.f32 %v1609_v4, %v6256_v36  ;;  %v4431_v51 = vpop.f32.mrf.mxu0  ;;  %v6265_v14 = vld [vmem:[#allocation76_spill] sm:$0xff] }
 0x1b9   : > { %v4744_v44 = vpop.eup %4743  ;;  %v4299_v61 = vpop.f32.mrf.mxu1 }
 0x1ba   : > { %3426 = vst.msk [vmem:[%s5738_s30 + $0x140] sm:$0xff] %vm3385_vm2, %v4744_v44  ;;  %4757 = vtanh.f32 %v3179_v33  ;;  %v3177_v53 = vadd.f32 %v2810_v25, %v1610_v18  ;;  %v1621_v55 = vadd.f32 %v4299_v61, %v6257_v26  ;;  %v2813_v17 = vpop.f32.mrf.mxu0  ;;  %v6266_v25 = vld [vmem:[#allocation78_spill] sm:$0xff] }
 0x1bb   : > { %v4746_v22 = vpop.eup %4745  ;;  %v1612_v52 = vpop.f32.mrf.mxu1 }
 0x1bc   : > { %3429 = vst.msk [vmem:[%s5738_s30 + $0x158] sm:$0xff] %vm3385_vm2, %v4746_v22  ;;  %4759 = vtanh.f32 %v3177_v53  ;;  %v3180_v59 = vadd.f32 %v4431_v51, %v1621_v55  ;;  %v1613_v60 = vadd.f32 %v1612_v52, %v6258_v9  ;;  %v4434_v29 = vpop.f32.mrf.mxu0  ;;  %v6267_v51 = vld [vmem:[#allocation80_spill] sm:$0xff] }
 0x1bd   : > { %v4748_v10 = vpop.eup %4747  ;;  %v4302_v38 = vpop.f32.mrf.mxu1 }
 0x1be   : > { %3427 = vst.msk [vmem:[%s5738_s30 + $0x148] sm:$0xff] %vm3385_vm2, %v4748_v10  ;;  %4761 = vtanh.f32 %v3180_v59  ;;  %v3178_v43 = vadd.f32 %v2813_v17, %v1613_v60  ;;  %v1634_v46 = vadd.f32 %v4302_v38, %v6259_v27  ;;  %v2826_v31 = vpop.f32.mrf.mxu0  ;;  %v6268_v17 = vld [vmem:[#allocation82_spill] sm:$0xff] }
 0x1bf   : > { %v4750_v41 = vpop.eup %4749  ;;  %v1625_v2 = vpop.f32.mrf.mxu1 }
 0x1c0   : > { %3432 = vst.msk [vmem:[%s5738_s30 + $0x170] sm:$0xff] %vm3385_vm2, %v4750_v41  ;;  %4763 = vtanh.f32 %v3178_v43  ;;  %v3183_v13 = vadd.f32 %v4434_v29, %v1634_v46  ;;  %v1626_v24 = vadd.f32 %v1625_v2, %v6260_v5  ;;  %v4435_v54 = vpop.f32.mrf.mxu0  ;;  %v6269_v29 = vld [vmem:[#allocation84_spill] sm:$0xff] }
 0x1c1   : > { %v4752_v11 = vpop.eup %4751  ;;  %v4303_v40 = vpop.f32.mrf.mxu1 }
 0x1c2   : > { %3430 = vst.msk [vmem:[%s5738_s30 + $0x160] sm:$0xff] %vm3385_vm2, %v4752_v11  ;;  %4765 = vtanh.f32 %v3183_v13  ;;  %v3181_v16 = vadd.f32 %v2826_v31, %v1626_v24  ;;  %v1637_v1 = vadd.f32 %v4303_v40, %v6261_v0  ;;  %v2829_v49 = vpop.f32.mrf.mxu0  ;;  %v6270_v31 = vld [vmem:[#allocation86_spill] sm:$0xff] }
 0x1c3   : > { %v4754_v20 = vpop.eup %4753  ;;  %v1628_v30 = vpop.f32.mrf.mxu1 }
 0x1c4   : > { %3433 = vst.msk [vmem:[%s5738_s30 + $0x178] sm:$0xff] %vm3385_vm2, %v4754_v20  ;;  %4767 = vtanh.f32 %v3181_v16  ;;  %v3184_v7 = vadd.f32 %v4435_v54, %v1637_v1  ;;  %v1629_v48 = vadd.f32 %v1628_v30, %v6262_v63  ;;  %v4438_v42 = vpop.f32.mrf.mxu0  ;;  %v6271_v54 = vld [vmem:[#allocation2_spill] sm:$0xff] }
 0x1c5   : > { %v4756_v57 = vpop.eup %4755  ;;  %v4306_v32 = vpop.f32.mrf.mxu1 }
 0x1c6   : > { %3431 = vst.msk [vmem:[%s5738_s30 + $0x168] sm:$0xff] %vm3385_vm2, %v4756_v57  ;;  %4769 = vtanh.f32 %v3184_v7  ;;  %v3182_v19 = vadd.f32 %v2829_v49, %v1629_v48  ;;  %v1650_v23 = vadd.f32 %v4306_v32, %v6263_v15  ;;  %v2842_v34 = vpop.f32.mrf.mxu0  ;;  %v6272_v49 = vld [vmem:[#allocation3_spill] sm:$0xff] }
 0x1c7   : > { %v4758_v35 = vpop.eup %4757  ;;  %v1641_v28 = vpop.f32.mrf.mxu1 }
 0x1c8   : > { %3436 = vst.msk [vmem:[%s5738_s30 + $0x190] sm:$0xff] %vm3385_vm2, %v4758_v35  ;;  %4771 = vtanh.f32 %v3182_v19  ;;  %v3187_v21 = vadd.f32 %v4438_v42, %v1650_v23  ;;  %v1642_v56 = vadd.f32 %v1641_v28, %v6264_v39  ;;  %v4439_v12 = vpop.f32.mrf.mxu0  ;;  %v6273_v42 = vld [vmem:[#allocation4_spill] sm:$0xff] }
 0x1c9   : > { %v4760_v6 = vpop.eup %4759  ;;  %v4307_v50 = vpop.f32.mrf.mxu1 }
 0x1ca   : > { %3434 = vst.msk [vmem:[%s5738_s30 + $0x180] sm:$0xff] %vm3385_vm2, %v4760_v6  ;;  %4773 = vtanh.f32 %v3187_v21  ;;  %v3185_v58 = vadd.f32 %v2842_v34, %v1642_v56  ;;  %v1653_v8 = vadd.f32 %v4307_v50, %v6265_v14  ;;  %v2845_v3 = vpop.f32.mrf.mxu0  ;;  %v6274_v34 = vld [vmem:[#allocation5_spill] sm:$0xff] }
 0x1cb   : > { %v4762_v62 = vpop.eup %4761  ;;  %v1644_v45 = vpop.f32.mrf.mxu1 }
 0x1cc   : > { %3437 = vst.msk [vmem:[%s5738_s30 + $0x198] sm:$0xff] %vm3385_vm2, %v4762_v62  ;;  %4775 = vtanh.f32 %v3185_v58  ;;  %v3188_v37 = vadd.f32 %v4439_v12, %v1653_v8  ;;  %v1645_v47 = vadd.f32 %v1644_v45, %v6266_v25  ;;  %v4442_v4 = vpop.f32.mrf.mxu0  ;;  %v6275_v12 = vld [vmem:[#allocation6_spill] sm:$0xff] }
 0x1cd   : > { %v4764_v33 = vpop.eup %4763  ;;  %v4310_v36 = vpop.f32.mrf.mxu1 }
 0x1ce   : > { %3435 = vst.msk [vmem:[%s5738_s30 + $0x188] sm:$0xff] %vm3385_vm2, %v4764_v33  ;;  %4777 = vtanh.f32 %v3188_v37  ;;  %v3186_v18 = vadd.f32 %v2845_v3, %v1645_v47  ;;  %v1666_v44 = vadd.f32 %v4310_v36, %v6267_v51  ;;  %v2858_v61 = vpop.f32.mrf.mxu0  ;;  %v6276_v3 = vld [vmem:[#allocation7_spill] sm:$0xff] }
 0x1cf   : > { %v4766_v53 = vpop.eup %4765  ;;  %v1657_v26 = vpop.f32.mrf.mxu1 }
 0x1d0   : > { %3440 = vst.msk [vmem:[%s5738_s30 + $0x1b0] sm:$0xff] %vm3385_vm2, %v4766_v53  ;;  %4779 = vtanh.f32 %v3186_v18  ;;  %v3191_v55 = vadd.f32 %v4442_v4, %v1666_v44  ;;  %v1658_v22 = vadd.f32 %v1657_v26, %v6268_v17  ;;  %v4443_v52 = vpop.f32.mrf.mxu0  ;;  %v6277_v4 = vld [vmem:[#allocation8_spill] sm:$0xff] }
 0x1d1   : > { %v4768_v59 = vpop.eup %4767  ;;  %v4311_v9 = vpop.f32.mrf.mxu1 }
 0x1d2   : > { %3438 = vst.msk [vmem:[%s5738_s30 + $0x1a0] sm:$0xff] %vm3385_vm2, %v4768_v59  ;;  %4781 = vtanh.f32 %v3191_v55  ;;  %v3189_v60 = vadd.f32 %v2858_v61, %v1658_v22  ;;  %v1669_v10 = vadd.f32 %v4311_v9, %v6269_v29  ;;  %v2861_v38 = vpop.f32.mrf.mxu0  ;;  %v6278_v61 = vld [vmem:[#allocation9_spill] sm:$0xff] }
 0x1d3   : > { %v4770_v43 = vpop.eup %4769  ;;  %v1660_v27 = vpop.f32.mrf.mxu1 }
 0x1d4   : > { %3441 = vst.msk [vmem:[%s5738_s30 + $0x1b8] sm:$0xff] %vm3385_vm2, %v4770_v43  ;;  %4783 = vtanh.f32 %v3189_v60  ;;  %v3192_v46 = vadd.f32 %v4443_v52, %v1669_v10  ;;  %v1661_v41 = vadd.f32 %v1660_v27, %v6270_v31  ;;  %v4446_v2 = vpop.f32.mrf.mxu0  ;;  %v6279_v52 = vld [vmem:[#allocation10_spill] sm:$0xff] }
 0x1d5   : > { %v4772_v13 = vpop.eup %4771  ;;  %v4314_v5 = vpop.f32.mrf.mxu1 }
 0x1d6   : > { %3439 = vst.msk [vmem:[%s5738_s30 + $0x1a8] sm:$0xff] %vm3385_vm2, %v4772_v13  ;;  %4785 = vtanh.f32 %v3192_v46  ;;  %v3190_v24 = vadd.f32 %v2861_v38, %v1661_v41  ;;  %v1682_v11 = vadd.f32 %v4314_v5, %v6271_v54  ;;  %v2874_v40 = vpop.f32.mrf.mxu0  ;;  %v6280_v38 = vld [vmem:[#allocation11_spill] sm:$0xff] }
 0x1d7   : > { %v4774_v16 = vpop.eup %4773  ;;  %v1673_v0 = vpop.f32.mrf.mxu1 }
 0x1d8   : > { %3444 = vst.msk [vmem:[%s5738_s30 + $0x1d0] sm:$0xff] %vm3385_vm2, %v4774_v16  ;;  %4787 = vtanh.f32 %v3190_v24  ;;  %v3195_v1 = vadd.f32 %v4446_v2, %v1682_v11  ;;  %v1674_v20 = vadd.f32 %v1673_v0, %v6272_v49  ;;  %v4447_v30 = vpop.f32.mrf.mxu0  ;;  %v6281_v2 = vld [vmem:[#allocation12_spill] sm:$0xff] }
 0x1d9   : > { %v4776_v7 = vpop.eup %4775  ;;  %v4315_v63 = vpop.f32.mrf.mxu1 }
 0x1da   : > { %3442 = vst.msk [vmem:[%s5738_s30 + $0x1c0] sm:$0xff] %vm3385_vm2, %v4776_v7  ;;  %4789 = vtanh.f32 %v3195_v1  ;;  %v3193_v48 = vadd.f32 %v2874_v40, %v1674_v20  ;;  %v1685_v57 = vadd.f32 %v4315_v63, %v6273_v42  ;;  %v2877_v32 = vpop.f32.mrf.mxu0  ;;  %v6282_v40 = vld [vmem:[#allocation13_spill] sm:$0xff] }
 0x1db   : > { %v4778_v19 = vpop.eup %4777  ;;  %v1676_v15 = vpop.f32.mrf.mxu1 }
 0x1dc   : > { %3445 = vst.msk [vmem:[%s5738_s30 + $0x1d8] sm:$0xff] %vm3385_vm2, %v4778_v19  ;;  %4791 = vtanh.f32 %v3193_v48  ;;  %v3196_v23 = vadd.f32 %v4447_v30, %v1685_v57  ;;  %v1677_v35 = vadd.f32 %v1676_v15, %v6274_v34  ;;  %v4450_v28 = vpop.f32.mrf.mxu0  ;;  %v6283_v30 = vld [vmem:[#allocation14_spill] sm:$0xff] }
 0x1dd   : > { %v4780_v21 = vpop.eup %4779  ;;  %v4318_v39 = vpop.f32.mrf.mxu1 }
 0x1de   : > { %3443 = vst.msk [vmem:[%s5738_s30 + $0x1c8] sm:$0xff] %vm3385_vm2, %v4780_v21  ;;  %4793 = vtanh.f32 %v3196_v23  ;;  %v3194_v56 = vadd.f32 %v2877_v32, %v1677_v35  ;;  %v1698_v6 = vadd.f32 %v4318_v39, %v6275_v12  ;;  %v2890_v50 = vpop.f32.mrf.mxu0  ;;  %v6284_v32 = vld [vmem:[#allocation15_spill] sm:$0xff] }
 0x1df   : > { %v4782_v58 = vpop.eup %4781  ;;  %v1689_v14 = vpop.f32.mrf.mxu1 }
 0x1e0   : > { %3448 = vst.msk [vmem:[%s5738_s30 + $0x1f0] sm:$0xff] %vm3385_vm2, %v4782_v58  ;;  %4795 = vtanh.f32 %v3194_v56  ;;  %v3199_v8 = vadd.f32 %v4450_v28, %v1698_v6  ;;  %v1690_v62 = vadd.f32 %v1689_v14, %v6276_v3  ;;  %v4451_v45 = vpop.f32.mrf.mxu0  ;;  %v6285_v28 = vld [vmem:[#allocation16_spill] sm:$0xff] }
 0x1e1   : > { %v4784_v37 = vpop.eup %4783  ;;  %v4319_v25 = vpop.f32.mrf.mxu1 }
 0x1e2   : > { %3446 = vst.msk [vmem:[%s5738_s30 + $0x1e0] sm:$0xff] %vm3385_vm2, %v4784_v37  ;;  %4797 = vtanh.f32 %v3199_v8  ;;  %v3197_v47 = vadd.f32 %v2890_v50, %v1690_v62  ;;  %v1701_v33 = vadd.f32 %v4319_v25, %v6277_v4  ;;  %v2893_v36 = vpop.f32.mrf.mxu0  ;;  %v6286_v50 = vld [vmem:[#allocation17_spill] sm:$0xff] }
 0x1e3   : > { %v4786_v18 = vpop.eup %4785  ;;  %v1692_v51 = vpop.f32.mrf.mxu1 }
 0x1e4   : > { %3449 = vst.msk [vmem:[%s5738_s30 + $0x1f8] sm:$0xff] %vm3385_vm2, %v4786_v18  ;;  %4799 = vtanh.f32 %v3197_v47  ;;  %v3200_v44 = vadd.f32 %v4451_v45, %v1701_v33  ;;  %v1693_v53 = vadd.f32 %v1692_v51, %v6278_v61  ;;  %v4454_v26 = vpop.f32.mrf.mxu0  ;;  %v6287_v45 = vld [vmem:[#allocation18_spill] sm:$0xff] }
 0x1e5   : > { %v4788_v55 = vpop.eup %4787  ;;  %v4322_v17 = vpop.f32.mrf.mxu1 }
 0x1e6   : > { %3447 = vst.msk [vmem:[%s5738_s30 + $0x1e8] sm:$0xff] %vm3385_vm2, %v4788_v55  ;;  %4801 = vtanh.f32 %v3200_v44  ;;  %v3198_v22 = vadd.f32 %v2893_v36, %v1693_v53  ;;  %v1714_v59 = vadd.f32 %v4322_v17, %v6279_v52  ;;  %v2906_v9 = vpop.f32.mrf.mxu0  ;;  %v6288_v36 = vld [vmem:[#allocation19_spill] sm:$0xff] }
 0x1e7   : > { %v4790_v60 = vpop.eup %4789  ;;  %v1705_v29 = vpop.f32.mrf.mxu1 }
 0x1e8   : > { %3452 = vst.msk [vmem:[%s5738_s30 + $0x210] sm:$0xff] %vm3385_vm2, %v4790_v60  ;;  %4803 = vtanh.f32 %v3198_v22  ;;  %v3203_v10 = vadd.f32 %v4454_v26, %v1714_v59  ;;  %v1706_v43 = vadd.f32 %v1705_v29, %v6280_v38  ;;  %v4455_v27 = vpop.f32.mrf.mxu0  ;;  %v6289_v26 = vld [vmem:[#allocation20_spill] sm:$0xff] }
 0x1e9   : > { %v4792_v46 = vpop.eup %4791  ;;  %v4323_v31 = vpop.f32.mrf.mxu1 }
 0x1ea   : > { %3450 = vst.msk [vmem:[%s5738_s30 + $0x200] sm:$0xff] %vm3385_vm2, %v4792_v46  ;;  %4805 = vtanh.f32 %v3203_v10  ;;  %v3201_v41 = vadd.f32 %v2906_v9, %v1706_v43  ;;  %v1717_v13 = vadd.f32 %v4323_v31, %v6281_v2  ;;  %v2909_v5 = vpop.f32.mrf.mxu0  ;;  %v6290_v9 = vld [vmem:[#allocation21_spill] sm:$0xff] }
 0x1eb   : > { %v4794_v24 = vpop.eup %4793  ;;  %v1708_v54 = vpop.f32.mrf.mxu1 }
 0x1ec   : > { %3453 = vst.msk [vmem:[%s5738_s30 + $0x218] sm:$0xff] %vm3385_vm2, %v4794_v24  ;;  %4807 = vtanh.f32 %v3201_v41  ;;  %v3204_v11 = vadd.f32 %v4455_v27, %v1717_v13  ;;  %v1709_v16 = vadd.f32 %v1708_v54, %v6282_v40  ;;  %v4458_v0 = vpop.f32.mrf.mxu0  ;;  %v6291_v27 = vld [vmem:[#allocation22_spill] sm:$0xff] }
 0x1ed   : > { %v4796_v1 = vpop.eup %4795  ;;  %v4326_v49 = vpop.f32.mrf.mxu1 }
 0x1ee   : > { %3451 = vst.msk [vmem:[%s5738_s30 + $0x208] sm:$0xff] %vm3385_vm2, %v4796_v1  ;;  %4809 = vtanh.f32 %v3204_v11  ;;  %v3202_v20 = vadd.f32 %v2909_v5, %v1709_v16  ;;  %v1730_v7 = vadd.f32 %v4326_v49, %v6283_v30  ;;  %v2922_v63 = vpop.f32.mrf.mxu0  ;;  %v6292_v5 = vld [vmem:[#allocation23_spill] sm:$0xff] }
 0x1ef   : > { %v4798_v48 = vpop.eup %4797  ;;  %v1721_v42 = vpop.f32.mrf.mxu1 }
 0x1f0   : > { %3456 = vst.msk [vmem:[%s5738_s30 + $0x230] sm:$0xff] %vm3385_vm2, %v4798_v48  ;;  %4811 = vtanh.f32 %v3202_v20  ;;  %v3207_v57 = vadd.f32 %v4458_v0, %v1730_v7  ;;  %v1722_v19 = vadd.f32 %v1721_v42, %v6284_v32  ;;  %v4459_v15 = vpop.f32.mrf.mxu0  ;;  %v6293_v0 = vld [vmem:[#allocation24_spill] sm:$0xff] }
 0x1f1   : > { %v4800_v23 = vpop.eup %4799  ;;  %v4327_v34 = vpop.f32.mrf.mxu1 }
 0x1f2   : > { %3454 = vst.msk [vmem:[%s5738_s30 + $0x220] sm:$0xff] %vm3385_vm2, %v4800_v23  ;;  %4813 = vtanh.f32 %v3207_v57  ;;  %v3205_v35 = vadd.f32 %v2922_v63, %v1722_v19  ;;  %v1733_v21 = vadd.f32 %v4327_v34, %v6285_v28  ;;  %v2925_v39 = vpop.f32.mrf.mxu0  ;;  %v6294_v63 = vld [vmem:[#allocation25_spill] sm:$0xff] }
 0x1f3   : > { %v4802_v56 = vpop.eup %4801  ;;  %v1724_v12 = vpop.f32.mrf.mxu1 }
 0x1f4   : > { %3457 = vst.msk [vmem:[%s5738_s30 + $0x238] sm:$0xff] %vm3385_vm2, %v4802_v56  ;;  %4815 = vtanh.f32 %v3205_v35  ;;  %v3208_v6 = vadd.f32 %v4459_v15, %v1733_v21  ;;  %v1725_v58 = vadd.f32 %v1724_v12, %v6286_v50  ;;  %v4462_v14 = vpop.f32.mrf.mxu0  ;;  %v6295_v15 = vld [vmem:[#allocation26_spill] sm:$0xff] }
 0x1f5   : > { %v4804_v8 = vpop.eup %4803  ;;  %v4330_v3 = vpop.f32.mrf.mxu1 }
 0x1f6   : > { %3455 = vst.msk [vmem:[%s5738_s30 + $0x228] sm:$0xff] %vm3385_vm2, %v4804_v8  ;;  %4817 = vtanh.f32 %v3208_v6  ;;  %v3206_v62 = vadd.f32 %v2925_v39, %v1725_v58  ;;  %v1746_v37 = vadd.f32 %v4330_v3, %v6287_v45  ;;  %v2938_v25 = vpop.f32.mrf.mxu0  ;;  %v6296_v39 = vld [vmem:[#allocation27_spill] sm:$0xff] }
 0x1f7   : > { %v4806_v47 = vpop.eup %4805  ;;  %v1737_v4 = vpop.f32.mrf.mxu1 }
 0x1f8   : > { %3460 = vst.msk [vmem:[%s5738_s30 + $0x250] sm:$0xff] %vm3385_vm2, %v4806_v47  ;;  %4819 = vtanh.f32 %v3206_v62  ;;  %v3211_v33 = vadd.f32 %v4462_v14, %v1746_v37  ;;  %v1738_v18 = vadd.f32 %v1737_v4, %v6288_v36  ;;  %v4463_v51 = vpop.f32.mrf.mxu0  ;;  %v6297_v14 = vld [vmem:[#allocation28_spill] sm:$0xff] }
 0x1f9   : > { %v4808_v44 = vpop.eup %4807  ;;  %v4331_v61 = vpop.f32.mrf.mxu1 }
 0x1fa   : > { %3458 = vst.msk [vmem:[%s5738_s30 + $0x240] sm:$0xff] %vm3385_vm2, %v4808_v44  ;;  %4821 = vtanh.f32 %v3211_v33  ;;  %v3209_v53 = vadd.f32 %v2938_v25, %v1738_v18  ;;  %v1749_v55 = vadd.f32 %v4331_v61, %v6289_v26  ;;  %v2941_v17 = vpop.f32.mrf.mxu0  ;;  %v6298_v25 = vld [vmem:[#allocation29_spill] sm:$0xff] }
 0x1fb   : > { %v4810_v22 = vpop.eup %4809  ;;  %v1740_v52 = vpop.f32.mrf.mxu1 }
 0x1fc   : > { %3461 = vst.msk [vmem:[%s5738_s30 + $0x258] sm:$0xff] %vm3385_vm2, %v4810_v22  ;;  %4823 = vtanh.f32 %v3209_v53  ;;  %v3212_v59 = vadd.f32 %v4463_v51, %v1749_v55  ;;  %v1741_v60 = vadd.f32 %v1740_v52, %v6290_v9  ;;  %v4466_v29 = vpop.f32.mrf.mxu0  ;;  %v6299_v51 = vld [vmem:[#allocation30_spill] sm:$0xff] }
 0x1fd   : > { %v4812_v10 = vpop.eup %4811  ;;  %v4334_v38 = vpop.f32.mrf.mxu1 }
 0x1fe   : > { %3459 = vst.msk [vmem:[%s5738_s30 + $0x248] sm:$0xff] %vm3385_vm2, %v4812_v10  ;;  %4825 = vtanh.f32 %v3212_v59  ;;  %v3210_v43 = vadd.f32 %v2941_v17, %v1741_v60  ;;  %v1762_v46 = vadd.f32 %v4334_v38, %v6291_v27  ;;  %v2954_v31 = vpop.f32.mrf.mxu0  ;;  %v6300_v17 = vld [vmem:[#allocation31_spill] sm:$0xff] }
 0x1ff   : > { %v4814_v41 = vpop.eup %4813  ;;  %v1753_v2 = vpop.f32.mrf.mxu1 }
 0x200   : > { %3464 = vst.msk [vmem:[%s5738_s30 + $0x270] sm:$0xff] %vm3385_vm2, %v4814_v41  ;;  %4827 = vtanh.f32 %v3210_v43  ;;  %v3215_v13 = vadd.f32 %v4466_v29, %v1762_v46  ;;  %v1754_v24 = vadd.f32 %v1753_v2, %v6292_v5  ;;  %v4467_v54 = vpop.f32.mrf.mxu0  ;;  %v6301_v29 = vld [vmem:[#allocation32_spill] sm:$0xff] }
 0x201   : > { %v4816_v11 = vpop.eup %4815  ;;  %v4335_v40 = vpop.f32.mrf.mxu1 }
 0x202   : > { %3462 = vst.msk [vmem:[%s5738_s30 + $0x260] sm:$0xff] %vm3385_vm2, %v4816_v11  ;;  %4829 = vtanh.f32 %v3215_v13  ;;  %v3213_v16 = vadd.f32 %v2954_v31, %v1754_v24  ;;  %v1765_v1 = vadd.f32 %v4335_v40, %v6293_v0  ;;  %v2957_v49 = vpop.f32.mrf.mxu0  ;;  %v6302_v31 = vld [vmem:[#allocation33_spill] sm:$0xff] }
 0x203   : > { %v4818_v20 = vpop.eup %4817  ;;  %v1756_v30 = vpop.f32.mrf.mxu1 }
 0x204   : > { %3465 = vst.msk [vmem:[%s5738_s30 + $0x278] sm:$0xff] %vm3385_vm2, %v4818_v20  ;;  %4831 = vtanh.f32 %v3213_v16  ;;  %v3216_v7 = vadd.f32 %v4467_v54, %v1765_v1  ;;  %v1757_v48 = vadd.f32 %v1756_v30, %v6294_v63  ;;  %v4470_v42 = vpop.f32.mrf.mxu0  ;;  %v6303_v54 = vld [vmem:[#allocation34_spill] sm:$0xff] }
 0x205   : > { %v4820_v57 = vpop.eup %4819  ;;  %v4338_v32 = vpop.f32.mrf.mxu1 }
 0x206   : > { %3463 = vst.msk [vmem:[%s5738_s30 + $0x268] sm:$0xff] %vm3385_vm2, %v4820_v57  ;;  %4833 = vtanh.f32 %v3216_v7  ;;  %v3214_v19 = vadd.f32 %v2957_v49, %v1757_v48  ;;  %v1778_v23 = vadd.f32 %v4338_v32, %v6295_v15  ;;  %v2970_v34 = vpop.f32.mrf.mxu0  ;;  %v6304_v49 = vld [vmem:[#allocation35_spill] sm:$0xff] }
 0x207   : > { %v4822_v35 = vpop.eup %4821  ;;  %v1769_v28 = vpop.f32.mrf.mxu1 }
 0x208   : > { %3468 = vst.msk [vmem:[%s5738_s30 + $0x290] sm:$0xff] %vm3385_vm2, %v4822_v35  ;;  %4835 = vtanh.f32 %v3214_v19  ;;  %v3219_v21 = vadd.f32 %v4470_v42, %v1778_v23  ;;  %v1770_v56 = vadd.f32 %v1769_v28, %v6296_v39  ;;  %v4471_v12 = vpop.f32.mrf.mxu0  ;;  %v6305_v42 = vld [vmem:[#allocation36_spill] sm:$0xff] }
 0x209   : > { %v4824_v6 = vpop.eup %4823  ;;  %v4339_v50 = vpop.f32.mrf.mxu1 }
 0x20a   : > { %3466 = vst.msk [vmem:[%s5738_s30 + $0x280] sm:$0xff] %vm3385_vm2, %v4824_v6  ;;  %4837 = vtanh.f32 %v3219_v21  ;;  %v3217_v58 = vadd.f32 %v2970_v34, %v1770_v56  ;;  %v1781_v8 = vadd.f32 %v4339_v50, %v6297_v14  ;;  %v2973_v3 = vpop.f32.mrf.mxu0  ;;  %v6306_v34 = vld [vmem:[#allocation37_spill] sm:$0xff] }
 0x20b   : > { %v4826_v62 = vpop.eup %4825  ;;  %v1772_v45 = vpop.f32.mrf.mxu1 }
 0x20c   : > { %3469 = vst.msk [vmem:[%s5738_s30 + $0x298] sm:$0xff] %vm3385_vm2, %v4826_v62  ;;  %4839 = vtanh.f32 %v3217_v58  ;;  %v3220_v37 = vadd.f32 %v4471_v12, %v1781_v8  ;;  %v1773_v47 = vadd.f32 %v1772_v45, %v6298_v25  ;;  %v4474_v4 = vpop.f32.mrf.mxu0  ;;  %v6307_v12 = vld [vmem:[#allocation38_spill] sm:$0xff] }
 0x20d   : > { %v4828_v33 = vpop.eup %4827  ;;  %v4342_v36 = vpop.f32.mrf.mxu1 }
 0x20e   : > { %3467 = vst.msk [vmem:[%s5738_s30 + $0x288] sm:$0xff] %vm3385_vm2, %v4828_v33  ;;  %4841 = vtanh.f32 %v3220_v37  ;;  %v3218_v18 = vadd.f32 %v2973_v3, %v1773_v47  ;;  %v1794_v44 = vadd.f32 %v4342_v36, %v6299_v51  ;;  %v2986_v61 = vpop.f32.mrf.mxu0  ;;  %v6308_v3 = vld [vmem:[#allocation39_spill] sm:$0xff] }
 0x20f   : > { %v4830_v53 = vpop.eup %4829  ;;  %v1785_v26 = vpop.f32.mrf.mxu1 }
 0x210   : > { %3472 = vst.msk [vmem:[%s5738_s30 + $0x2b0] sm:$0xff] %vm3385_vm2, %v4830_v53  ;;  %4843 = vtanh.f32 %v3218_v18  ;;  %v3223_v55 = vadd.f32 %v4474_v4, %v1794_v44  ;;  %v1786_v22 = vadd.f32 %v1785_v26, %v6300_v17  ;;  %v4475_v52 = vpop.f32.mrf.mxu0  ;;  %v6309_v4 = vld [vmem:[#allocation40_spill] sm:$0xff] }
 0x211   : > { %v4832_v59 = vpop.eup %4831  ;;  %v4343_v9 = vpop.f32.mrf.mxu1 }
 0x212   : > { %3470 = vst.msk [vmem:[%s5738_s30 + $0x2a0] sm:$0xff] %vm3385_vm2, %v4832_v59  ;;  %4845 = vtanh.f32 %v3223_v55  ;;  %v3221_v60 = vadd.f32 %v2986_v61, %v1786_v22  ;;  %v1797_v10 = vadd.f32 %v4343_v9, %v6301_v29  ;;  %v2989_v38 = vpop.f32.mrf.mxu0  ;;  %v6310_v61 = vld [vmem:[#allocation41_spill] sm:$0xff] }
 0x213   : > { %v4834_v43 = vpop.eup %4833  ;;  %v1788_v27 = vpop.f32.mrf.mxu1 }
 0x214   : > { %3473 = vst.msk [vmem:[%s5738_s30 + $0x2b8] sm:$0xff] %vm3385_vm2, %v4834_v43  ;;  %4847 = vtanh.f32 %v3221_v60  ;;  %v3224_v46 = vadd.f32 %v4475_v52, %v1797_v10  ;;  %v1789_v41 = vadd.f32 %v1788_v27, %v6302_v31  ;;  %v4478_v2 = vpop.f32.mrf.mxu0  ;;  %v6311_v52 = vld [vmem:[#allocation42_spill] sm:$0xff] }
 0x215   : > { %v4836_v13 = vpop.eup %4835  ;;  %v4346_v5 = vpop.f32.mrf.mxu1 }
 0x216   : > { %3471 = vst.msk [vmem:[%s5738_s30 + $0x2a8] sm:$0xff] %vm3385_vm2, %v4836_v13  ;;  %4849 = vtanh.f32 %v3224_v46  ;;  %v3222_v24 = vadd.f32 %v2989_v38, %v1789_v41  ;;  %v1810_v11 = vadd.f32 %v4346_v5, %v6303_v54  ;;  %v3002_v40 = vpop.f32.mrf.mxu0  ;;  %v6312_v38 = vld [vmem:[#allocation43_spill] sm:$0xff] }
 0x217   : > { %v4838_v16 = vpop.eup %4837  ;;  %v1801_v0 = vpop.f32.mrf.mxu1 }
 0x218   : > { %3476 = vst.msk [vmem:[%s5738_s30 + $0x2d0] sm:$0xff] %vm3385_vm2, %v4838_v16  ;;  %4851 = vtanh.f32 %v3222_v24  ;;  %v3227_v1 = vadd.f32 %v4478_v2, %v1810_v11  ;;  %v1802_v20 = vadd.f32 %v1801_v0, %v6304_v49  ;;  %v4479_v30 = vpop.f32.mrf.mxu0  ;;  %v6313_v2 = vld [vmem:[#allocation45_spill] sm:$0xff] }
 0x219   : > { %v4840_v7 = vpop.eup %4839  ;;  %v4347_v63 = vpop.f32.mrf.mxu1 }
 0x21a   : > { %3474 = vst.msk [vmem:[%s5738_s30 + $0x2c0] sm:$0xff] %vm3385_vm2, %v4840_v7  ;;  %4853 = vtanh.f32 %v3227_v1  ;;  %v3225_v48 = vadd.f32 %v3002_v40, %v1802_v20  ;;  %v1813_v57 = vadd.f32 %v4347_v63, %v6305_v42  ;;  %v3005_v32 = vpop.f32.mrf.mxu0  ;;  %v6314_v40 = vld [vmem:[#allocation47_spill] sm:$0xff] }
 0x21b   : > { %v4842_v19 = vpop.eup %4841  ;;  %v1804_v15 = vpop.f32.mrf.mxu1 }
 0x21c   : > { %3477 = vst.msk [vmem:[%s5738_s30 + $0x2d8] sm:$0xff] %vm3385_vm2, %v4842_v19  ;;  %4855 = vtanh.f32 %v3225_v48  ;;  %v3228_v23 = vadd.f32 %v4479_v30, %v1813_v57  ;;  %v1805_v35 = vadd.f32 %v1804_v15, %v6306_v34  ;;  %v4482_v28 = vpop.f32.mrf.mxu0  ;;  %v6315_v30 = vld [vmem:[#allocation49_spill] sm:$0xff] }
 0x21d   : > { %v4844_v21 = vpop.eup %4843  ;;  %v4350_v39 = vpop.f32.mrf.mxu1 }
 0x21e   : > { %3475 = vst.msk [vmem:[%s5738_s30 + $0x2c8] sm:$0xff] %vm3385_vm2, %v4844_v21  ;;  %4857 = vtanh.f32 %v3228_v23  ;;  %v3226_v56 = vadd.f32 %v3005_v32, %v1805_v35  ;;  %v1826_v6 = vadd.f32 %v4350_v39, %v6307_v12  ;;  %v3018_v50 = vpop.f32.mrf.mxu0  ;;  %v6316_v32 = vld [vmem:[#allocation51_spill] sm:$0xff] }
 0x21f   : > { %v4846_v58 = vpop.eup %4845  ;;  %v1817_v14 = vpop.f32.mrf.mxu1 }
 0x220   : > { %3480 = vst.msk [vmem:[%s5738_s30 + $0x2f0] sm:$0xff] %vm3385_vm2, %v4846_v58  ;;  %4859 = vtanh.f32 %v3226_v56  ;;  %v3231_v8 = vadd.f32 %v4482_v28, %v1826_v6  ;;  %v1818_v62 = vadd.f32 %v1817_v14, %v6308_v3  ;;  %v4483_v45 = vpop.f32.mrf.mxu0  ;;  %v6317_v28 = vld [vmem:[#allocation53_spill] sm:$0xff] }
 0x221   : > { %v4848_v37 = vpop.eup %4847  ;;  %v4351_v25 = vpop.f32.mrf.mxu1 }
 0x222   : > { %3478 = vst.msk [vmem:[%s5738_s30 + $0x2e0] sm:$0xff] %vm3385_vm2, %v4848_v37  ;;  %4861 = vtanh.f32 %v3231_v8  ;;  %v3229_v47 = vadd.f32 %v3018_v50, %v1818_v62  ;;  %v1829_v33 = vadd.f32 %v4351_v25, %v6309_v4  ;;  %v3021_v36 = vpop.f32.mrf.mxu0  ;;  %v6318_v50 = vld [vmem:[#allocation55_spill] sm:$0xff] }
 0x223   : > { %v4850_v18 = vpop.eup %4849  ;;  %v1820_v51 = vpop.f32.mrf.mxu1 }
 0x224   : > { %3481 = vst.msk [vmem:[%s5738_s30 + $0x2f8] sm:$0xff] %vm3385_vm2, %v4850_v18  ;;  %4863 = vtanh.f32 %v3229_v47  ;;  %v3232_v44 = vadd.f32 %v4483_v45, %v1829_v33  ;;  %v1821_v53 = vadd.f32 %v1820_v51, %v6310_v61  ;;  %v4486_v26 = vpop.f32.mrf.mxu0  ;;  %v6319_v45 = vld [vmem:[#allocation57_spill] sm:$0xff] }
 0x225   : > { %v4852_v55 = vpop.eup %4851  ;;  %v4354_v17 = vpop.f32.mrf.mxu1 }
 0x226   : > { %3479 = vst.msk [vmem:[%s5738_s30 + $0x2e8] sm:$0xff] %vm3385_vm2, %v4852_v55  ;;  %4865 = vtanh.f32 %v3232_v44  ;;  %v3230_v22 = vadd.f32 %v3021_v36, %v1821_v53  ;;  %v1842_v59 = vadd.f32 %v4354_v17, %v6311_v52  ;;  %v3034_v9 = vpop.f32.mrf.mxu0  ;;  %v6320_v36 = vld [vmem:[#allocation59_spill] sm:$0xff] }
 0x227   : > { %v4854_v60 = vpop.eup %4853  ;;  %v1833_v29 = vpop.f32.mrf.mxu1 }
 0x228   : > { %3484 = vst.msk [vmem:[%s5738_s30 + $0x310] sm:$0xff] %vm3385_vm2, %v4854_v60  ;;  %4867 = vtanh.f32 %v3230_v22  ;;  %v3235_v10 = vadd.f32 %v4486_v26, %v1842_v59  ;;  %v1834_v43 = vadd.f32 %v1833_v29, %v6312_v38  ;;  %v4487_v27 = vpop.f32.mrf.mxu0  ;;  %v6321_v26 = vld [vmem:[#allocation61_spill] sm:$0xff] }
 0x229   : > { %v4856_v46 = vpop.eup %4855  ;;  %v4355_v31 = vpop.f32.mrf.mxu1 }
 0x22a   : > { %3482 = vst.msk [vmem:[%s5738_s30 + $0x300] sm:$0xff] %vm3385_vm2, %v4856_v46  ;;  %4869 = vtanh.f32 %v3235_v10  ;;  %v3233_v41 = vadd.f32 %v3034_v9, %v1834_v43  ;;  %v1845_v13 = vadd.f32 %v4355_v31, %v6313_v2  ;;  %v3037_v5 = vpop.f32.mrf.mxu0  ;;  %v6322_v9 = vld [vmem:[#allocation63_spill] sm:$0xff] }
 0x22b   : > { %v4858_v24 = vpop.eup %4857  ;;  %v1836_v54 = vpop.f32.mrf.mxu1 }
 0x22c   : > { %3485 = vst.msk [vmem:[%s5738_s30 + $0x318] sm:$0xff] %vm3385_vm2, %v4858_v24  ;;  %4871 = vtanh.f32 %v3233_v41  ;;  %v3236_v11 = vadd.f32 %v4487_v27, %v1845_v13  ;;  %v1837_v16 = vadd.f32 %v1836_v54, %v6314_v40  ;;  %v4490_v0 = vpop.f32.mrf.mxu0  ;;  %v6323_v27 = vld [vmem:[#allocation65_spill] sm:$0xff] }
 0x22d   : > { %v4860_v1 = vpop.eup %4859  ;;  %v4358_v49 = vpop.f32.mrf.mxu1 }
 0x22e   : > { %3483 = vst.msk [vmem:[%s5738_s30 + $0x308] sm:$0xff] %vm3385_vm2, %v4860_v1  ;;  %4873 = vtanh.f32 %v3236_v11  ;;  %v3234_v20 = vadd.f32 %v3037_v5, %v1837_v16  ;;  %v1858_v7 = vadd.f32 %v4358_v49, %v6315_v30  ;;  %v3050_v63 = vpop.f32.mrf.mxu0  ;;  %v6324_v5 = vld [vmem:[#allocation67_spill] sm:$0xff] }
 0x22f   : > { %v4862_v48 = vpop.eup %4861  ;;  %v1849_v42 = vpop.f32.mrf.mxu1 }
 0x230   : > { %3488 = vst.msk [vmem:[%s5738_s30 + $0x330] sm:$0xff] %vm3385_vm2, %v4862_v48  ;;  %4875 = vtanh.f32 %v3234_v20  ;;  %v3239_v57 = vadd.f32 %v4490_v0, %v1858_v7  ;;  %v1850_v19 = vadd.f32 %v1849_v42, %v6316_v32  ;;  %v4491_v15 = vpop.f32.mrf.mxu0  ;;  %v6325_v0 = vld [vmem:[#allocation69_spill] sm:$0xff] }
 0x231   : > { %v4864_v23 = vpop.eup %4863  ;;  %v4359_v34 = vpop.f32.mrf.mxu1 }
 0x232   : > { %3486 = vst.msk [vmem:[%s5738_s30 + $0x320] sm:$0xff] %vm3385_vm2, %v4864_v23  ;;  %4877 = vtanh.f32 %v3239_v57  ;;  %v3237_v35 = vadd.f32 %v3050_v63, %v1850_v19  ;;  %v1861_v21 = vadd.f32 %v4359_v34, %v6317_v28  ;;  %v3053_v39 = vpop.f32.mrf.mxu0  ;;  %v6326_v63 = vld [vmem:[#allocation71_spill] sm:$0xff] }
 0x233   : > { %v4866_v56 = vpop.eup %4865  ;;  %v1852_v12 = vpop.f32.mrf.mxu1 }
 0x234   : > { %3489 = vst.msk [vmem:[%s5738_s30 + $0x338] sm:$0xff] %vm3385_vm2, %v4866_v56  ;;  %4879 = vtanh.f32 %v3237_v35  ;;  %v3240_v6 = vadd.f32 %v4491_v15, %v1861_v21  ;;  %v1853_v58 = vadd.f32 %v1852_v12, %v6318_v50  ;;  %v4494_v14 = vpop.f32.mrf.mxu0  ;;  %v6327_v15 = vld [vmem:[#allocation73_spill] sm:$0xff] }
 0x235   : > { %v4868_v8 = vpop.eup %4867  ;;  %v4362_v3 = vpop.f32.mrf.mxu1 }
 0x236   : > { %3487 = vst.msk [vmem:[%s5738_s30 + $0x328] sm:$0xff] %vm3385_vm2, %v4868_v8  ;;  %4881 = vtanh.f32 %v3240_v6  ;;  %v3238_v62 = vadd.f32 %v3053_v39, %v1853_v58  ;;  %v1874_v37 = vadd.f32 %v4362_v3, %v6319_v45  ;;  %v3066_v25 = vpop.f32.mrf.mxu0  ;;  %v6328_v39 = vld [vmem:[#allocation75_spill] sm:$0xff] }
 0x237   : > { %v4870_v47 = vpop.eup %4869  ;;  %v1865_v4 = vpop.f32.mrf.mxu1 }
 0x238   : > { %3492 = vst.msk [vmem:[%s5738_s30 + $0x350] sm:$0xff] %vm3385_vm2, %v4870_v47  ;;  %4883 = vtanh.f32 %v3238_v62  ;;  %v3243_v33 = vadd.f32 %v4494_v14, %v1874_v37  ;;  %v1866_v18 = vadd.f32 %v1865_v4, %v6320_v36  ;;  %v4495_v51 = vpop.f32.mrf.mxu0  ;;  %v6329_v14 = vld [vmem:[#allocation77_spill] sm:$0xff] }
 0x239   : > { %v4872_v44 = vpop.eup %4871  ;;  %v4363_v61 = vpop.f32.mrf.mxu1 }
 0x23a   : > { %3490 = vst.msk [vmem:[%s5738_s30 + $0x340] sm:$0xff] %vm3385_vm2, %v4872_v44  ;;  %4885 = vtanh.f32 %v3243_v33  ;;  %v3241_v53 = vadd.f32 %v3066_v25, %v1866_v18  ;;  %v1877_v55 = vadd.f32 %v4363_v61, %v6321_v26  ;;  %v3069_v17 = vpop.f32.mrf.mxu0  ;;  %v6330_v25 = vld [vmem:[#allocation79_spill] sm:$0xff] }
 0x23b   : > { %v4874_v22 = vpop.eup %4873  ;;  %v1868_v52 = vpop.f32.mrf.mxu1 }
 0x23c   : > { %3493 = vst.msk [vmem:[%s5738_s30 + $0x358] sm:$0xff] %vm3385_vm2, %v4874_v22  ;;  %4887 = vtanh.f32 %v3241_v53  ;;  %v3244_v59 = vadd.f32 %v4495_v51, %v1877_v55  ;;  %v1869_v60 = vadd.f32 %v1868_v52, %v6322_v9  ;;  %v4498_v29 = vpop.f32.mrf.mxu0  ;;  %v6331_v51 = vld [vmem:[#allocation81_spill] sm:$0xff] }
 0x23d   : > { %v4876_v10 = vpop.eup %4875  ;;  %v4366_v38 = vpop.f32.mrf.mxu1 }
 0x23e   : > { %3491 = vst.msk [vmem:[%s5738_s30 + $0x348] sm:$0xff] %vm3385_vm2, %v4876_v10  ;;  %4889 = vtanh.f32 %v3244_v59  ;;  %v3242_v43 = vadd.f32 %v3069_v17, %v1869_v60  ;;  %v1890_v46 = vadd.f32 %v4366_v38, %v6323_v27  ;;  %v3082_v31 = vpop.f32.mrf.mxu0  ;;  %v6332_v17 = vld [vmem:[#allocation83_spill] sm:$0xff] }
 0x23f   : > { %v4878_v41 = vpop.eup %4877  ;;  %v1881_v2 = vpop.f32.mrf.mxu1 }
 0x240   : > { %3496 = vst.msk [vmem:[%s5738_s30 + $0x370] sm:$0xff] %vm3385_vm2, %v4878_v41  ;;  %4891 = vtanh.f32 %v3242_v43  ;;  %v3247_v13 = vadd.f32 %v4498_v29, %v1890_v46  ;;  %v1882_v24 = vadd.f32 %v1881_v2, %v6324_v5  ;;  %v4499_v54 = vpop.f32.mrf.mxu0  ;;  %v6333_v29 = vld [vmem:[#allocation85_spill] sm:$0xff]  ;;  %v6334_v46 = vld [vmem:[#allocation87_spill] sm:$0xff] }
 0x241   : > { %v4880_v11 = vpop.eup %4879  ;;  %v4367_v40 = vpop.f32.mrf.mxu1 }
 0x242   : > { %3494 = vst.msk [vmem:[%s5738_s30 + $0x360] sm:$0xff] %vm3385_vm2, %v4880_v11  ;;  %4893 = vtanh.f32 %v3247_v13  ;;  %v3245_v16 = vadd.f32 %v3082_v31, %v1882_v24  ;;  %v1893_v1 = vadd.f32 %v4367_v40, %v6325_v0  ;;  %v3085_v49 = vpop.f32.mrf.mxu0 }
 0x243   : > { %v4882_v20 = vpop.eup %4881  ;;  %v1884_v30 = vpop.f32.mrf.mxu1 }
 0x244   : > { %3497 = vst.msk [vmem:[%s5738_s30 + $0x378] sm:$0xff] %vm3385_vm2, %v4882_v20  ;;  %4895 = vtanh.f32 %v3245_v16  ;;  %v3248_v7 = vadd.f32 %v4499_v54, %v1893_v1  ;;  %v1885_v48 = vadd.f32 %v1884_v30, %v6326_v63  ;;  %v4502_v42 = vpop.f32.mrf.mxu0 }
 0x245   : > { %v4884_v57 = vpop.eup %4883  ;;  %v4370_v32 = vpop.f32.mrf.mxu1 }
 0x246   : > { %3495 = vst.msk [vmem:[%s5738_s30 + $0x368] sm:$0xff] %vm3385_vm2, %v4884_v57  ;;  %4897 = vtanh.f32 %v3248_v7  ;;  %v3246_v19 = vadd.f32 %v3085_v49, %v1885_v48  ;;  %v1906_v23 = vadd.f32 %v4370_v32, %v6327_v15  ;;  %v3098_v34 = vpop.f32.mrf.mxu0 }
 0x247   : > { %v4886_v35 = vpop.eup %4885  ;;  %v1897_v28 = vpop.f32.mrf.mxu1 }
 0x248   : > { %3500 = vst.msk [vmem:[%s5738_s30 + $0x390] sm:$0xff] %vm3385_vm2, %v4886_v35  ;;  %4899 = vtanh.f32 %v3246_v19  ;;  %v3251_v21 = vadd.f32 %v4502_v42, %v1906_v23  ;;  %v1898_v56 = vadd.f32 %v1897_v28, %v6328_v39  ;;  %v4503_v12 = vpop.f32.mrf.mxu0 }
 0x249   : > { %v4888_v6 = vpop.eup %4887  ;;  %v4371_v50 = vpop.f32.mrf.mxu1 }
 0x24a   : > { %3498 = vst.msk [vmem:[%s5738_s30 + $0x380] sm:$0xff] %vm3385_vm2, %v4888_v6  ;;  %4901 = vtanh.f32 %v3251_v21  ;;  %v3249_v58 = vadd.f32 %v3098_v34, %v1898_v56  ;;  %v1909_v8 = vadd.f32 %v4371_v50, %v6329_v14  ;;  %v3101_v3 = vpop.f32.mrf.mxu0 }
 0x24b   : > { %v4890_v62 = vpop.eup %4889  ;;  %v1900_v45 = vpop.f32.mrf.mxu1 }
 0x24c   : > { %3501 = vst.msk [vmem:[%s5738_s30 + $0x398] sm:$0xff] %vm3385_vm2, %v4890_v62  ;;  %4903 = vtanh.f32 %v3249_v58  ;;  %v3252_v37 = vadd.f32 %v4503_v12, %v1909_v8  ;;  %v1901_v47 = vadd.f32 %v1900_v45, %v6330_v25  ;;  %v4506_v4 = vpop.f32.mrf.mxu0 }
 0x24d   : > { %v4892_v33 = vpop.eup %4891  ;;  %v4374_v36 = vpop.f32.mrf.mxu1 }
 0x24e   : > { %3499 = vst.msk [vmem:[%s5738_s30 + $0x388] sm:$0xff] %vm3385_vm2, %v4892_v33  ;;  %4905 = vtanh.f32 %v3252_v37  ;;  %v3250_v18 = vadd.f32 %v3101_v3, %v1901_v47  ;;  %v1922_v44 = vadd.f32 %v4374_v36, %v6331_v51  ;;  %v3114_v61 = vpop.f32.mrf.mxu0 }
 0x24f   : > { %v4894_v53 = vpop.eup %4893  ;;  %v1913_v26 = vpop.f32.mrf.mxu1 }
 0x250   : > { %3504 = vst.msk [vmem:[%s5738_s30 + $0x3b0] sm:$0xff] %vm3385_vm2, %v4894_v53  ;;  %4907 = vtanh.f32 %v3250_v18  ;;  %v3255_v55 = vadd.f32 %v4506_v4, %v1922_v44  ;;  %v1914_v22 = vadd.f32 %v1913_v26, %v6332_v17  ;;  %v4507_v9 = vpop.f32.mrf.mxu0 }
 0x251   : > { %v4896_v52 = vpop.eup %4895  ;;  %v4375_v59 = vpop.f32.mrf.mxu1 }
 0x252   : > { %3502 = vst.msk [vmem:[%s5738_s30 + $0x3a0] sm:$0xff] %vm3385_vm2, %v4896_v52  ;;  %4909 = vtanh.f32 %v3255_v55  ;;  %v3253_v60 = vadd.f32 %v3114_v61, %v1914_v22  ;;  %v1925_v10 = vadd.f32 %v4375_v59, %v6333_v29  ;;  %v3117_v2 = vpop.f32.mrf.mxu0 }
 0x253   : > { %v4898_v38 = vpop.eup %4897  ;;  %v1916_v43 = vpop.f32.mrf.mxu1 }
 0x254   : > { %3505 = vst.msk [vmem:[%s5738_s30 + $0x3b8] sm:$0xff] %vm3385_vm2, %v4898_v38  ;;  %4911 = vtanh.f32 %v3253_v60  ;;  %v3256_v27 = vadd.f32 %v4507_v9, %v1925_v10  ;;  %v1917_v31 = vadd.f32 %v1916_v43, %v6334_v46 }
 0x255   : > { %v4900_v41 = vpop.eup %4899 }
 0x256   : > { %3503 = vst.msk [vmem:[%s5738_s30 + $0x3a8] sm:$0xff] %vm3385_vm2, %v4900_v41  ;;  %4913 = vtanh.f32 %v3256_v27  ;;  %v3254_v13 = vadd.f32 %v3117_v2, %v1917_v31 }
 0x257   : > { %v4902_v5 = vpop.eup %4901 }
 0x258   : > { %3508 = vst.msk [vmem:[%s5738_s30 + $0x3d0] sm:$0xff] %vm3385_vm2, %v4902_v5  ;;  %4915 = vtanh.f32 %v3254_v13 }
 0x259   : > { %v4904_v24 = vpop.eup %4903 }
 0x25a   : > { %3506 = vst.msk [vmem:[%s5738_s30 + $0x3c0] sm:$0xff] %vm3385_vm2, %v4904_v24 }
 0x25b   : > { %v4906_v54 = vpop.eup %4905 }
 0x25c   : > { %3509 = vst.msk [vmem:[%s5738_s30 + $0x3d8] sm:$0xff] %vm3385_vm2, %v4906_v54 }
 0x25d   : > { %v4908_v11 = vpop.eup %4907 }
 0x25e   : > { %3507 = vst.msk [vmem:[%s5738_s30 + $0x3c8] sm:$0xff] %vm3385_vm2, %v4908_v11 }
 0x25f   : > { %v4910_v40 = vpop.eup %4909 }
 0x260   : > { %3512 = vst.msk [vmem:[%s5738_s30 + $0x3f0] sm:$0xff] %vm3385_vm2, %v4910_v40 }
 0x261   : > { %v4912_v16 = vpop.eup %4911 }
 0x262   : > { %3510 = vst.msk [vmem:[%s5738_s30 + $0x3e0] sm:$0xff] %vm3385_vm2, %v4912_v16 }
 0x263   : > { %v4914_v0 = vpop.eup %4913 }
 0x264   : > { %3513 = vst.msk [vmem:[%s5738_s30 + $0x3f8] sm:$0xff] %vm3385_vm2, %v4914_v0 }
 0x265   : > { %v4916_v1 = vpop.eup %4915 }
 0x266   : > { %3511 = vst.msk [vmem:[%s5738_s30 + $0x3e8] sm:$0xff] %vm3385_vm2, %v4916_v1 }
 0x267 PF: > { %s12_s9 = sadd.s32 1, %s4943_s9  }
 0x268   : > { %p9_p4 = scmp.ge.s32.totalorder %s12_s9, 4  }
 0x26a   :  { %11 = sbr.rel (!%p9_p4) target bundleno = 1 (0x1), region = 60 }

</bundles_post_ra>
